<compile_context>
chip_gen: v7x
topology: tpu7x:2x2x1
jax: 0.10.0
libtpu: 0.0.40
codegen_flags: <defaults>
</compile_context>

<pallas_src>
import functools

import jax
import jax.numpy as jnp
from jax import lax
from jax.experimental import pallas as pl
from jax.experimental.pallas import tpu as pltpu

NEG_INF = -1e30


# ---------------------------------------------------------------------------
# Fused layer kernel: one grid step per (batch element, q tile).
# ---------------------------------------------------------------------------
def _layer_kernel(selfq_ref, selffull_ref, cross_ref, smask_ref, cmask_ref,
                  s_wq, s_bq, s_wkv, s_bkv, s_wo, s_bo,
                  c_wq, c_bq, c_wkv, c_bkv, c_wo, c_bo,
                  f_w1, f_b1, f_w2, f_b2, f_g, f_bt,
                  out_ref, slf_attn_ref, cross_attn_ref,
                  *, n_head, matmul_dtype):
    f32 = jnp.float32

    def mha(x_q, x_kv, add_mask, wq, bq, wkv, bkv, wo, bo):
        tq = x_q.shape[0]
        tk = x_kv.shape[0]
        dq = wq.shape[1]                 # projection width (= d_model)
        dh = dq // n_head

        # Full-width projections: one wide matmul for Q, one for fused K|V.
        # (1/sqrt(dh) is already folded into wq / bq by the wrapper.)
        q = jnp.dot(x_q.astype(matmul_dtype), wq[...],
                    preferred_element_type=f32) + bq[...]
        kv = jnp.dot(x_kv.astype(matmul_dtype), wkv[...],
                     preferred_element_type=f32) + bkv[...]
        k = kv[:, :dq]
        v = kv[:, dq:]

        # Head split via static lane slices + stack (XLU/VPU only; the MXU
        # never sees dh-wide operands for the projections).
        def heads(x):
            return jnp.stack(
                [x[:, h * dh:(h + 1) * dh] for h in range(n_head)], axis=0)

        qh = heads(q).astype(matmul_dtype)   # (n_head, tq, dh)
        kh = heads(k).astype(matmul_dtype)   # (n_head, tk, dh)
        vh = heads(v).astype(matmul_dtype)   # (n_head, tk, dh)

        # Scores for all heads in one batched contraction + precomputed
        # additive causal mask (0 / NEG_INF).
        s = jnp.einsum('hqd,hkd->hqk', qh, kh, preferred_element_type=f32)
        s = s + add_mask[None]

        s = s - jnp.max(s, axis=-1, keepdims=True)
        p = jnp.exp(s)
        p = p * pl.reciprocal(jnp.sum(p, axis=-1, keepdims=True), approx=True)

        ctx = jnp.einsum('hqk,hkd->hqd', p.astype(matmul_dtype), vh,
                         preferred_element_type=f32)

        # Merge heads along lanes, then ONE output projection with K = d_model.
        merged = jnp.concatenate([ctx[h] for h in range(n_head)], axis=-1)
        out = jnp.dot(merged.astype(matmul_dtype), wo[...],
                      preferred_element_type=f32) + bo[...]
        return out, p

    x_q = selfq_ref[0]           # (TQ, d_model)  query rows of this q-tile
    x_self = selffull_ref[0]     # (T,  d_model)  full self sequence (K/V)
    x_cross = cross_ref[0]       # (Tc, d_model)  full cross sequence (K/V)

    # --- self attention -----------------------------------------------------
    self_out, slf_p = mha(x_q, x_self, smask_ref[...],
                          s_wq, s_bq, s_wkv, s_bkv, s_wo, s_bo)
    slf_attn_ref[0] = slf_p.astype(slf_attn_ref.dtype)

    # --- cross attention (query = self_out, key/value = cross input) --------
    cross_out, cross_p = mha(self_out, x_cross, cmask_ref[...],
                             c_wq, c_bq, c_wkv, c_bkv, c_wo, c_bo)
    cross_attn_ref[0] = cross_p.astype(cross_attn_ref.dtype)

    # --- position-wise FFN + residual + LayerNorm (eps = 1e-6) --------------
    y = cross_out                # (TQ, d_v) f32
    h1 = jnp.maximum(
        jnp.dot(y.astype(matmul_dtype), f_w1[...],
                preferred_element_type=f32) + f_b1[...], 0.0)
    z = jnp.dot(h1.astype(matmul_dtype), f_w2[...],
                preferred_element_type=f32) + f_b2[...] + y
    mean = jnp.mean(z, axis=-1, keepdims=True)
    var = jnp.mean((z - mean) ** 2, axis=-1, keepdims=True)
    out_ref[0] = ((z - mean) * lax.rsqrt(var + 1e-6)
                  * f_g[...] + f_bt[...]).astype(out_ref.dtype)


# ---------------------------------------------------------------------------
# Wrapper helpers (pure JAX, outside the kernel)
# ---------------------------------------------------------------------------
def _prep_mha_params(p, n_head, matmul_dtype):
    d_in, d = p["wq"].shape
    dh = d // n_head
    scale = dh ** -0.5
    wq = (p["wq"] * scale).astype(matmul_dtype)                 # scale folded in
    bq = (p["bq"].reshape(1, d) * scale).astype(jnp.float32)
    wkv = jnp.concatenate([p["wk"], p["wv"]], axis=1).astype(matmul_dtype)
    bkv = jnp.concatenate([p["bk"].reshape(1, -1), p["bv"].reshape(1, -1)],
                          axis=1).astype(jnp.float32)
    wo = p["wo"].astype(matmul_dtype)
    bo = p["bo"].reshape(1, -1).astype(jnp.float32)
    return (wq, bq, wkv, bkv, wo, bo)


def _additive_future_mask(tq, tk, causal):
    if not causal:
        return jnp.zeros((tq, tk), jnp.float32)
    row = jnp.arange(tq, dtype=jnp.int32)[:, None]
    col = jnp.arange(tk, dtype=jnp.int32)[None, :]
    return jnp.where(col <= row, 0.0, NEG_INF).astype(jnp.float32)


def _pick_q_tile(t):
    # MXU-friendly q tiles (256 for v6e/v7x, 128 for v5e); fall back to the
    # full sequence when T does not divide evenly (small / odd T).
    for cand in (256, 128):
        if t % cand == 0:
            return cand
    return t


def _vmem_limit_bytes(tq, t, tc, d_model, d_v, d_inner, n_head,
                      weight_bytes, probs_itemsize, weight_buffers):
    f32 = 4
    act_in = f32 * (tq * d_model + t * d_model + tc * d_model
                    + tq * t + tq * tc)
    act_out = f32 * tq * d_v + probs_itemsize * n_head * tq * (t + tc)
    interm = f32 * (4 * n_head * tq * (t + tc)       # scores / exp / probs
                    + 6 * max(t, tc) * d_model       # q, k|v (f32 + bf16 views)
                    + 4 * tq * d_model + 2 * tq * d_inner)
    need = 2 * act_in + weight_buffers * weight_bytes + 2 * act_out + interm
    need = int(need * 1.25) + (2 << 20)              # relayout / spill headroom
    try:
        cap = int(pltpu.get_tpu_info().vmem_capacity_bytes) * 3 // 4
    except Exception:
        cap = 48 * 1024 * 1024                       # conservative (v7x: 64 MiB)
    return max(min(need, cap), min(32 * 1024 * 1024, cap))


def _call_layer(params, self_inp, cross_inp, causal, matmul_dtype, probs_dtype,
                weight_buffers):
    B, T, d_model = self_inp.shape
    Tc = cross_inp.shape[1]
    n_head = params["n_head"]
    d_v = params["slf_attn"]["wo"].shape[1]
    d_inner = params["pos_ffn"]["w1"].shape[1]
    assert d_model % n_head == 0
    assert d_v == d_model  # cross-attn query is the self-attn output

    TQ = _pick_q_tile(T)
    n_q = T // TQ

    slf = _prep_mha_params(params["slf_attn"], n_head, matmul_dtype)
    crs = _prep_mha_params(params["cross_attn"], n_head, matmul_dtype)
    ffn = params["pos_ffn"]
    ffn_args = (ffn["w1"].astype(matmul_dtype), ffn["b1"].astype(jnp.float32),
                ffn["w2"].astype(matmul_dtype), ffn["b2"].astype(jnp.float32),
                ffn["gamma"].astype(jnp.float32), ffn["beta"].astype(jnp.float32))
    weight_args = slf + crs + ffn_args

    smask = _additive_future_mask(T, T, causal)
    cmask = _additive_future_mask(T, Tc, causal)

    def weight_spec(arr):
        nd = arr.ndim
        idx = lambda b, q, _nd=nd: (0,) * _nd
        if weight_buffers == 1:
            # Constant block index across the grid -> single buffer is enough.
            return pl.BlockSpec(arr.shape, idx, pipeline_mode=pl.Buffered(1))
        return pl.BlockSpec(arr.shape, idx)

    in_specs = [
        pl.BlockSpec((1, TQ, d_model), lambda b, q: (b, q, 0)),   # q-tile rows
        pl.BlockSpec((1, T, d_model), lambda b, q: (b, 0, 0)),    # full self K/V
        pl.BlockSpec((1, Tc, d_model), lambda b, q: (b, 0, 0)),   # full cross K/V
        pl.BlockSpec((TQ, T), lambda b, q: (q, 0)),               # self add. mask
        pl.BlockSpec((TQ, Tc), lambda b, q: (q, 0)),              # cross add. mask
    ] + [weight_spec(a) for a in weight_args]

    out_specs = (
        pl.BlockSpec((1, TQ, d_v), lambda b, q: (b, q, 0)),
        pl.BlockSpec((1, n_head, TQ, T), lambda b, q: (b, 0, q, 0)),
        pl.BlockSpec((1, n_head, TQ, Tc), lambda b, q: (b, 0, q, 0)),
    )
    out_shape = (
        jax.ShapeDtypeStruct((B, T, d_v), jnp.float32),
        jax.ShapeDtypeStruct((B, n_head, T, T), probs_dtype),
        jax.ShapeDtypeStruct((B, n_head, T, Tc), probs_dtype),
    )

    # Advisory cost estimate from the actual per-step matmul shapes
    # (includes the K/V recompute across q tiles).
    def mm(m, k, n):
        return 2 * m * k * n
    per_step = (
        mm(TQ, d_model, d_model) + mm(T, d_model, 2 * d_model)
        + 2 * mm(TQ, T, d_model) + mm(TQ, d_model, d_v)            # self attn
        + mm(TQ, d_v, d_model) + mm(Tc, d_model, 2 * d_model)
        + 2 * mm(TQ, Tc, d_model) + mm(TQ, d_model, d_v)           # cross attn
        + mm(TQ, d_v, d_inner) + mm(TQ, d_inner, d_v))             # FFN
    flops = B * n_q * per_step
    transcendentals = B * n_head * T * (T + Tc)
    weight_bytes = sum(int(a.size) * a.dtype.itemsize for a in weight_args)
    probs_itemsize = jnp.dtype(probs_dtype).itemsize
    bytes_accessed = (2 * self_inp.nbytes + cross_inp.nbytes
                      + smask.nbytes + cmask.nbytes + weight_bytes
                      + 4 * B * T * d_v
                      + probs_itemsize * B * n_head * T * (T + Tc))

    kernel = functools.partial(_layer_kernel, n_head=n_head,
                               matmul_dtype=matmul_dtype)

    return pl.pallas_call(
        kernel,
        grid=(B, n_q),
        in_specs=in_specs,
        out_specs=out_specs,
        out_shape=out_shape,
        compiler_params=pltpu.CompilerParams(
            dimension_semantics=("parallel", "parallel"),
            vmem_limit_bytes=_vmem_limit_bytes(
                TQ, T, Tc, d_model, d_v, d_inner, n_head,
                weight_bytes, probs_itemsize, weight_buffers)),
        cost_estimate=pl.CostEstimate(
            flops=int(flops), transcendentals=int(transcendentals),
            bytes_accessed=int(bytes_accessed)),
    )(self_inp, self_inp, cross_inp, smask, cmask, *weight_args)


def cross_attention_layer(params, self_inp, cross_inp, slf_attn_mask=True,
                          matmul_dtype=jnp.bfloat16, probs_dtype=jnp.float32):
    causal = bool(slf_attn_mask)
    try:
        out = _call_layer(params, self_inp, cross_inp, causal, matmul_dtype,
                          probs_dtype, weight_buffers=1)
        jax.block_until_ready(out)
        return out
    except Exception:
        # pipeline_mode=pl.Buffered(1) not supported by this jax / Mosaic
        # version: fall back to the default double-buffered weight specs.
        return _call_layer(params, self_inp, cross_inp, causal, matmul_dtype,
                           probs_dtype, weight_buffers=2)


# ---------------------------------------------------------------------------
# Deterministic parameter construction
# ---------------------------------------------------------------------------
def init_mha_params(key, d_model, d_v):
    ks = jax.random.split(key, 4)
    s = 0.05
    return {
        "wq": jax.random.normal(ks[0], (d_model, d_model), jnp.float32) * s,
        "bq": jnp.zeros((1, d_model), jnp.float32),
        "wk": jax.random.normal(ks[1], (d_model, d_model), jnp.float32) * s,
        "bk": jnp.zeros((1, d_model), jnp.float32),
        "wv": jax.random.normal(ks[2], (d_model, d_model), jnp.float32) * s,
        "bv": jnp.zeros((1, d_model), jnp.float32),
        "wo": jax.random.normal(ks[3], (d_model, d_v), jnp.float32) * s,
        "bo": jnp.zeros((1, d_v), jnp.float32),
    }


def init_ffn_params(key, d_in, d_hid):
    ks = jax.random.split(key, 2)
    s = 0.05
    return {
        "w1": jax.random.normal(ks[0], (d_in, d_hid), jnp.float32) * s,
        "b1": jnp.zeros((1, d_hid), jnp.float32),
        "w2": jax.random.normal(ks[1], (d_hid, d_in), jnp.float32) * s,
        "b2": jnp.zeros((1, d_in), jnp.float32),
        "gamma": jnp.ones((1, d_in), jnp.float32),
        "beta": jnp.zeros((1, d_in), jnp.float32),
    }


def init_cross_attention_layer(key, d_model, d_inner, n_head, d_v):
    assert d_model % n_head == 0
    assert d_v == d_model  # required: cross-attn query = self-attn output
    k1, k2, k3 = jax.random.split(key, 3)
    return {
        "n_head": n_head,
        "slf_attn": init_mha_params(k1, d_model, d_v),
        "cross_attn": init_mha_params(k2, d_model, d_v),
        "pos_ffn": init_ffn_params(k3, d_v, d_inner),
    }


if __name__ == "__main__":
    B, T = 2, 8
    d_model, d_inner, n_head, d_v = 32, 64, 4, 32

    key = jax.random.PRNGKey(0)
    k_p, k_x, k_c = jax.random.split(key, 3)
    params = init_cross_attention_layer(k_p, d_model, d_inner, n_head, d_v)

    self_inp = jax.random.normal(k_x, (B, T, d_model), jnp.float32)
    cross_inp = jax.random.normal(k_c, (B, T, d_model), jnp.float32)

    out, slf_attn, cross_attn = cross_attention_layer(
        params, self_inp, cross_inp, slf_attn_mask=True)
    jax.block_until_ready((out, slf_attn, cross_attn))

    assert out.shape == (B, T, d_v)
    assert slf_attn.shape == (B, n_head, T, T)
    assert cross_attn.shape == (B, n_head, T, T)
    print("KERNEL_OK")
</pallas_src>

<mosaic_0001>
module attributes {stable_mosaic.version = 11 : i64} {
  func.func @_layer_kernel(%arg0: i32, %arg1: i32, %arg2: memref<1x8x32xf32, #tpu.memory_space<vmem>>, %arg3: memref<1x8x32xf32, #tpu.memory_space<vmem>>, %arg4: memref<1x8x32xf32, #tpu.memory_space<vmem>>, %arg5: memref<8x8xf32, #tpu.memory_space<vmem>>, %arg6: memref<8x8xf32, #tpu.memory_space<vmem>>, %arg7: memref<32x32xbf16, #tpu.memory_space<vmem>>, %arg8: memref<1x32xf32, #tpu.memory_space<vmem>>, %arg9: memref<32x64xbf16, #tpu.memory_space<vmem>>, %arg10: memref<1x64xf32, #tpu.memory_space<vmem>>, %arg11: memref<32x32xbf16, #tpu.memory_space<vmem>>, %arg12: memref<1x32xf32, #tpu.memory_space<vmem>>, %arg13: memref<32x32xbf16, #tpu.memory_space<vmem>>, %arg14: memref<1x32xf32, #tpu.memory_space<vmem>>, %arg15: memref<32x64xbf16, #tpu.memory_space<vmem>>, %arg16: memref<1x64xf32, #tpu.memory_space<vmem>>, %arg17: memref<32x32xbf16, #tpu.memory_space<vmem>>, %arg18: memref<1x32xf32, #tpu.memory_space<vmem>>, %arg19: memref<32x64xbf16, #tpu.memory_space<vmem>>, %arg20: memref<1x64xf32, #tpu.memory_space<vmem>>, %arg21: memref<64x32xbf16, #tpu.memory_space<vmem>>, %arg22: memref<1x32xf32, #tpu.memory_space<vmem>>, %arg23: memref<1x32xf32, #tpu.memory_space<vmem>>, %arg24: memref<1x32xf32, #tpu.memory_space<vmem>>, %arg25: memref<1x8x32xf32, #tpu.memory_space<vmem>>, %arg26: memref<1x4x8x8xf32, #tpu.memory_space<vmem>>, %arg27: memref<1x4x8x8xf32, #tpu.memory_space<vmem>>) attributes {dimension_semantics = [#tpu.dimension_semantics<parallel>, #tpu.dimension_semantics<parallel>], iteration_bounds = array<i64: 2, 1>, scalar_prefetch = 0 : i64, scratch_operands = 0 : i64, tpu.core_type = #tpu.core_type<tc>, window_params = [{transform_indices = @transform_0, window_bounds = array<i64: 1, 8, 32>}, {transform_indices = @transform_1, window_bounds = array<i64: 1, 8, 32>}, {transform_indices = @transform_2, window_bounds = array<i64: 1, 8, 32>}, {transform_indices = @transform_3, window_bounds = array<i64: 8, 8>}, {transform_indices = @transform_4, window_bounds = array<i64: 8, 8>}, {pipeline_mode = #tpu.pipeline_mode<synchronous>, transform_indices = @transform_5, window_bounds = array<i64: 32, 32>}, {pipeline_mode = #tpu.pipeline_mode<synchronous>, transform_indices = @transform_6, window_bounds = array<i64: 1, 32>}, {pipeline_mode = #tpu.pipeline_mode<synchronous>, transform_indices = @transform_7, window_bounds = array<i64: 32, 64>}, {pipeline_mode = #tpu.pipeline_mode<synchronous>, transform_indices = @transform_8, window_bounds = array<i64: 1, 64>}, {pipeline_mode = #tpu.pipeline_mode<synchronous>, transform_indices = @transform_9, window_bounds = array<i64: 32, 32>}, {pipeline_mode = #tpu.pipeline_mode<synchronous>, transform_indices = @transform_10, window_bounds = array<i64: 1, 32>}, {pipeline_mode = #tpu.pipeline_mode<synchronous>, transform_indices = @transform_11, window_bounds = array<i64: 32, 32>}, {pipeline_mode = #tpu.pipeline_mode<synchronous>, transform_indices = @transform_12, window_bounds = array<i64: 1, 32>}, {pipeline_mode = #tpu.pipeline_mode<synchronous>, transform_indices = @transform_13, window_bounds = array<i64: 32, 64>}, {pipeline_mode = #tpu.pipeline_mode<synchronous>, transform_indices = @transform_14, window_bounds = array<i64: 1, 64>}, {pipeline_mode = #tpu.pipeline_mode<synchronous>, transform_indices = @transform_15, window_bounds = array<i64: 32, 32>}, {pipeline_mode = #tpu.pipeline_mode<synchronous>, transform_indices = @transform_16, window_bounds = array<i64: 1, 32>}, {pipeline_mode = #tpu.pipeline_mode<synchronous>, transform_indices = @transform_17, window_bounds = array<i64: 32, 64>}, {pipeline_mode = #tpu.pipeline_mode<synchronous>, transform_indices = @transform_18, window_bounds = array<i64: 1, 64>}, {pipeline_mode = #tpu.pipeline_mode<synchronous>, transform_indices = @transform_19, window_bounds = array<i64: 64, 32>}, {pipeline_mode = #tpu.pipeline_mode<synchronous>, transform_indices = @transform_20, window_bounds = array<i64: 1, 32>}, {pipeline_mode = #tpu.pipeline_mode<synchronous>, transform_indices = @transform_21, window_bounds = array<i64: 1, 32>}, {pipeline_mode = #tpu.pipeline_mode<synchronous>, transform_indices = @transform_22, window_bounds = array<i64: 1, 32>}, {transform_indices = @transform_23, window_bounds = array<i64: 1, 8, 32>}, {transform_indices = @transform_24, window_bounds = array<i64: 1, 4, 8, 8>}, {transform_indices = @transform_25, window_bounds = array<i64: 1, 4, 8, 8>}]} {
    %c0 = arith.constant 0 : index
    %c0_0 = arith.constant 0 : index
    %c0_1 = arith.constant 0 : index
    %0 = vector.load %arg2[%c0, %c0_0, %c0_1] : memref<1x8x32xf32, #tpu.memory_space<vmem>>, vector<1x8x32xf32>
    %1 = vector.shape_cast %0 : vector<1x8x32xf32> to vector<8x32xf32>
    %c0_2 = arith.constant 0 : index
    %c0_3 = arith.constant 0 : index
    %c0_4 = arith.constant 0 : index
    %2 = vector.load %arg3[%c0_2, %c0_3, %c0_4] : memref<1x8x32xf32, #tpu.memory_space<vmem>>, vector<1x8x32xf32>
    %3 = vector.shape_cast %2 : vector<1x8x32xf32> to vector<8x32xf32>
    %c0_5 = arith.constant 0 : index
    %c0_6 = arith.constant 0 : index
    %c0_7 = arith.constant 0 : index
    %4 = vector.load %arg4[%c0_5, %c0_6, %c0_7] : memref<1x8x32xf32, #tpu.memory_space<vmem>>, vector<1x8x32xf32>
    %5 = vector.shape_cast %4 : vector<1x8x32xf32> to vector<8x32xf32>
    %c0_8 = arith.constant 0 : index
    %c0_9 = arith.constant 0 : index
    %6 = vector.load %arg5[%c0_8, %c0_9] : memref<8x8xf32, #tpu.memory_space<vmem>>, vector<8x8xf32>
    %7 = arith.truncf %1 : vector<8x32xf32> to vector<8x32xbf16>
    %c0_10 = arith.constant 0 : index
    %c0_11 = arith.constant 0 : index
    %8 = vector.load %arg7[%c0_10, %c0_11] : memref<32x32xbf16, #tpu.memory_space<vmem>>, vector<32x32xbf16>
    %cst = arith.constant dense<0.000000e+00> : vector<8x32xf32>
    %9 = tpu.matmul %7, %8, %cst {dimension_numbers = #tpu.dot_dimension_numbers<[1], [0], [0], [1], [0, 0, 1, 1], [], []>} : vector<8x32xbf16>, vector<32x32xbf16>, vector<8x32xf32> -> vector<8x32xf32>
    %c0_12 = arith.constant 0 : index
    %c0_13 = arith.constant 0 : index
    %10 = vector.load %arg8[%c0_12, %c0_13] : memref<1x32xf32, #tpu.memory_space<vmem>>, vector<1x32xf32>
    %11 = vector.broadcast %10 : vector<1x32xf32> to vector<8x32xf32>
    %12 = arith.addf %9, %11 : vector<8x32xf32>
    %13 = arith.truncf %3 : vector<8x32xf32> to vector<8x32xbf16>
    %c0_14 = arith.constant 0 : index
    %c0_15 = arith.constant 0 : index
    %14 = vector.load %arg9[%c0_14, %c0_15] : memref<32x64xbf16, #tpu.memory_space<vmem>>, vector<32x64xbf16>
    %cst_16 = arith.constant dense<0.000000e+00> : vector<8x64xf32>
    %15 = tpu.matmul %13, %14, %cst_16 {dimension_numbers = #tpu.dot_dimension_numbers<[1], [0], [0], [1], [0, 0, 1, 1], [], []>} : vector<8x32xbf16>, vector<32x64xbf16>, vector<8x64xf32> -> vector<8x64xf32>
    %c0_17 = arith.constant 0 : index
    %c0_18 = arith.constant 0 : index
    %16 = vector.load %arg10[%c0_17, %c0_18] : memref<1x64xf32, #tpu.memory_space<vmem>>, vector<1x64xf32>
    %17 = vector.broadcast %16 : vector<1x64xf32> to vector<8x64xf32>
    %18 = arith.addf %15, %17 : vector<8x64xf32>
    %19 = vector.extract_strided_slice %18 {offsets = [0, 0], sizes = [8, 32], strides = [1, 1]} : vector<8x64xf32> to vector<8x32xf32>
    %20 = vector.extract_strided_slice %18 {offsets = [0, 32], sizes = [8, 32], strides = [1, 1]} : vector<8x64xf32> to vector<8x32xf32>
    %21 = vector.extract_strided_slice %12 {offsets = [0, 0], sizes = [8, 8], strides = [1, 1]} : vector<8x32xf32> to vector<8x8xf32>
    %22 = vector.extract_strided_slice %12 {offsets = [0, 8], sizes = [8, 8], strides = [1, 1]} : vector<8x32xf32> to vector<8x8xf32>
    %23 = vector.extract_strided_slice %12 {offsets = [0, 16], sizes = [8, 8], strides = [1, 1]} : vector<8x32xf32> to vector<8x8xf32>
    %24 = vector.extract_strided_slice %12 {offsets = [0, 24], sizes = [8, 8], strides = [1, 1]} : vector<8x32xf32> to vector<8x8xf32>
    %25 = vector.shape_cast %21 : vector<8x8xf32> to vector<1x8x8xf32>
    %26 = vector.shape_cast %22 : vector<8x8xf32> to vector<1x8x8xf32>
    %27 = vector.shape_cast %23 : vector<8x8xf32> to vector<1x8x8xf32>
    %28 = vector.shape_cast %24 : vector<8x8xf32> to vector<1x8x8xf32>
    %29 = tpu.concatenate %25, %26, %27, %28 in 0 : vector<1x8x8xf32>, vector<1x8x8xf32>, vector<1x8x8xf32>, vector<1x8x8xf32> -> vector<4x8x8xf32>
    %30 = arith.truncf %29 : vector<4x8x8xf32> to vector<4x8x8xbf16>
    %31 = vector.extract_strided_slice %19 {offsets = [0, 0], sizes = [8, 8], strides = [1, 1]} : vector<8x32xf32> to vector<8x8xf32>
    %32 = vector.extract_strided_slice %19 {offsets = [0, 8], sizes = [8, 8], strides = [1, 1]} : vector<8x32xf32> to vector<8x8xf32>
    %33 = vector.extract_strided_slice %19 {offsets = [0, 16], sizes = [8, 8], strides = [1, 1]} : vector<8x32xf32> to vector<8x8xf32>
    %34 = vector.extract_strided_slice %19 {offsets = [0, 24], sizes = [8, 8], strides = [1, 1]} : vector<8x32xf32> to vector<8x8xf32>
    %35 = vector.shape_cast %31 : vector<8x8xf32> to vector<1x8x8xf32>
    %36 = vector.shape_cast %32 : vector<8x8xf32> to vector<1x8x8xf32>
    %37 = vector.shape_cast %33 : vector<8x8xf32> to vector<1x8x8xf32>
    %38 = vector.shape_cast %34 : vector<8x8xf32> to vector<1x8x8xf32>
    %39 = tpu.concatenate %35, %36, %37, %38 in 0 : vector<1x8x8xf32>, vector<1x8x8xf32>, vector<1x8x8xf32>, vector<1x8x8xf32> -> vector<4x8x8xf32>
    %40 = arith.truncf %39 : vector<4x8x8xf32> to vector<4x8x8xbf16>
    %41 = vector.extract_strided_slice %20 {offsets = [0, 0], sizes = [8, 8], strides = [1, 1]} : vector<8x32xf32> to vector<8x8xf32>
    %42 = vector.extract_strided_slice %20 {offsets = [0, 8], sizes = [8, 8], strides = [1, 1]} : vector<8x32xf32> to vector<8x8xf32>
    %43 = vector.extract_strided_slice %20 {offsets = [0, 16], sizes = [8, 8], strides = [1, 1]} : vector<8x32xf32> to vector<8x8xf32>
    %44 = vector.extract_strided_slice %20 {offsets = [0, 24], sizes = [8, 8], strides = [1, 1]} : vector<8x32xf32> to vector<8x8xf32>
    %45 = vector.shape_cast %41 : vector<8x8xf32> to vector<1x8x8xf32>
    %46 = vector.shape_cast %42 : vector<8x8xf32> to vector<1x8x8xf32>
    %47 = vector.shape_cast %43 : vector<8x8xf32> to vector<1x8x8xf32>
    %48 = vector.shape_cast %44 : vector<8x8xf32> to vector<1x8x8xf32>
    %49 = tpu.concatenate %45, %46, %47, %48 in 0 : vector<1x8x8xf32>, vector<1x8x8xf32>, vector<1x8x8xf32>, vector<1x8x8xf32> -> vector<4x8x8xf32>
    %50 = arith.truncf %49 : vector<4x8x8xf32> to vector<4x8x8xbf16>
    "tpu.trace_start"() <{level = 10 : i32, message = "hqd,hkd->hqk"}> : () -> ()
    %cst_19 = arith.constant dense<0.000000e+00> : vector<4x8x8xf32>
    %51 = tpu.matmul %30, %40, %cst_19 {dimension_numbers = #tpu.dot_dimension_numbers<[2], [2], [1], [1], [0, 0, 0, 1, 1, 1], [0], [0]>} : vector<4x8x8xbf16>, vector<4x8x8xbf16>, vector<4x8x8xf32> -> vector<4x8x8xf32>
    "tpu.trace_stop"() : () -> ()
    %52 = vector.shape_cast %6 : vector<8x8xf32> to vector<1x8x8xf32>
    %53 = vector.broadcast %52 : vector<1x8x8xf32> to vector<4x8x8xf32>
    %54 = arith.addf %51, %53 : vector<4x8x8xf32>
    %cst_20 = arith.constant dense<0xFF800000> : vector<4x8xf32>
    %55 = vector.multi_reduction <maximumf>, %54, %cst_20 [2] : vector<4x8x8xf32> to vector<4x8xf32>
    %56 = vector.shape_cast %55 : vector<4x8xf32> to vector<4x8x1xf32>
    %57 = vector.broadcast %56 : vector<4x8x1xf32> to vector<4x8x8xf32>
    %58 = arith.subf %54, %57 : vector<4x8x8xf32>
    %59 = math.exp %58 : vector<4x8x8xf32>
    %cst_21 = arith.constant dense<0.000000e+00> : vector<4x8xf32>
    %60 = vector.multi_reduction <add>, %59, %cst_21 [2] : vector<4x8x8xf32> to vector<4x8xf32>
    %61 = vector.shape_cast %60 : vector<4x8xf32> to vector<4x8x1xf32>
    %62 = tpu.reciprocal %61 {approx = true} : vector<4x8x1xf32> -> vector<4x8x1xf32>
    %63 = vector.broadcast %62 : vector<4x8x1xf32> to vector<4x8x8xf32>
    %64 = arith.mulf %59, %63 : vector<4x8x8xf32>
    %65 = arith.truncf %64 : vector<4x8x8xf32> to vector<4x8x8xbf16>
    "tpu.trace_start"() <{level = 10 : i32, message = "hqk,hkd->hqd"}> : () -> ()
    %cst_22 = arith.constant dense<0.000000e+00> : vector<4x8x8xf32>
    %66 = tpu.matmul %65, %50, %cst_22 {dimension_numbers = #tpu.dot_dimension_numbers<[2], [1], [1], [2], [0, 0, 0, 1, 1, 2], [0], [0]>} : vector<4x8x8xbf16>, vector<4x8x8xbf16>, vector<4x8x8xf32> -> vector<4x8x8xf32>
    "tpu.trace_stop"() : () -> ()
    %67 = vector.extract_strided_slice %66 {offsets = [0, 0, 0], sizes = [1, 8, 8], strides = [1, 1, 1]} : vector<4x8x8xf32> to vector<1x8x8xf32>
    %68 = vector.shape_cast %67 : vector<1x8x8xf32> to vector<8x8xf32>
    %69 = vector.extract_strided_slice %66 {offsets = [1, 0, 0], sizes = [1, 8, 8], strides = [1, 1, 1]} : vector<4x8x8xf32> to vector<1x8x8xf32>
    %70 = vector.shape_cast %69 : vector<1x8x8xf32> to vector<8x8xf32>
    %71 = vector.extract_strided_slice %66 {offsets = [2, 0, 0], sizes = [1, 8, 8], strides = [1, 1, 1]} : vector<4x8x8xf32> to vector<1x8x8xf32>
    %72 = vector.shape_cast %71 : vector<1x8x8xf32> to vector<8x8xf32>
    %73 = vector.extract_strided_slice %66 {offsets = [3, 0, 0], sizes = [1, 8, 8], strides = [1, 1, 1]} : vector<4x8x8xf32> to vector<1x8x8xf32>
    %74 = vector.shape_cast %73 : vector<1x8x8xf32> to vector<8x8xf32>
    %75 = tpu.concatenate %68, %70, %72, %74 in 1 : vector<8x8xf32>, vector<8x8xf32>, vector<8x8xf32>, vector<8x8xf32> -> vector<8x32xf32>
    %76 = arith.truncf %75 : vector<8x32xf32> to vector<8x32xbf16>
    %c0_23 = arith.constant 0 : index
    %c0_24 = arith.constant 0 : index
    %77 = vector.load %arg11[%c0_23, %c0_24] : memref<32x32xbf16, #tpu.memory_space<vmem>>, vector<32x32xbf16>
    %cst_25 = arith.constant dense<0.000000e+00> : vector<8x32xf32>
    %78 = tpu.matmul %76, %77, %cst_25 {dimension_numbers = #tpu.dot_dimension_numbers<[1], [0], [0], [1], [0, 0, 1, 1], [], []>} : vector<8x32xbf16>, vector<32x32xbf16>, vector<8x32xf32> -> vector<8x32xf32>
    %c0_26 = arith.constant 0 : index
    %c0_27 = arith.constant 0 : index
    %79 = vector.load %arg12[%c0_26, %c0_27] : memref<1x32xf32, #tpu.memory_space<vmem>>, vector<1x32xf32>
    %80 = vector.broadcast %79 : vector<1x32xf32> to vector<8x32xf32>
    %81 = arith.addf %78, %80 : vector<8x32xf32>
    %c0_28 = arith.constant 0 : index
    %c0_29 = arith.constant 0 : index
    %c0_30 = arith.constant 0 : index
    %c0_31 = arith.constant 0 : index
    %82 = vector.load %arg26[%c0_28, %c0_29, %c0_30, %c0_31] : memref<1x4x8x8xf32, #tpu.memory_space<vmem>>, vector<1x4x8x8xf32>
    %83 = vector.shape_cast %82 : vector<1x4x8x8xf32> to vector<4x8x8xf32>
    %84 = vector.shape_cast %64 : vector<4x8x8xf32> to vector<1x4x8x8xf32>
    tpu.vector_store %arg26[%c0_28, %c0_29, %c0_30, %c0_31], %84 {strides = array<i32>} : memref<1x4x8x8xf32, #tpu.memory_space<vmem>>, vector<1x4x8x8xf32>,
    %c0_32 = arith.constant 0 : index
    %c0_33 = arith.constant 0 : index
    %85 = vector.load %arg6[%c0_32, %c0_33] : memref<8x8xf32, #tpu.memory_space<vmem>>, vector<8x8xf32>
    %86 = arith.truncf %81 : vector<8x32xf32> to vector<8x32xbf16>
    %c0_34 = arith.constant 0 : index
    %c0_35 = arith.constant 0 : index
    %87 = vector.load %arg13[%c0_34, %c0_35] : memref<32x32xbf16, #tpu.memory_space<vmem>>, vector<32x32xbf16>
    %cst_36 = arith.constant dense<0.000000e+00> : vector<8x32xf32>
    %88 = tpu.matmul %86, %87, %cst_36 {dimension_numbers = #tpu.dot_dimension_numbers<[1], [0], [0], [1], [0, 0, 1, 1], [], []>} : vector<8x32xbf16>, vector<32x32xbf16>, vector<8x32xf32> -> vector<8x32xf32>
    %c0_37 = arith.constant 0 : index
    %c0_38 = arith.constant 0 : index
    %89 = vector.load %arg14[%c0_37, %c0_38] : memref<1x32xf32, #tpu.memory_space<vmem>>, vector<1x32xf32>
    %90 = vector.broadcast %89 : vector<1x32xf32> to vector<8x32xf32>
    %91 = arith.addf %88, %90 : vector<8x32xf32>
    %92 = arith.truncf %5 : vector<8x32xf32> to vector<8x32xbf16>
    %c0_39 = arith.constant 0 : index
    %c0_40 = arith.constant 0 : index
    %93 = vector.load %arg15[%c0_39, %c0_40] : memref<32x64xbf16, #tpu.memory_space<vmem>>, vector<32x64xbf16>
    %cst_41 = arith.constant dense<0.000000e+00> : vector<8x64xf32>
    %94 = tpu.matmul %92, %93, %cst_41 {dimension_numbers = #tpu.dot_dimension_numbers<[1], [0], [0], [1], [0, 0, 1, 1], [], []>} : vector<8x32xbf16>, vector<32x64xbf16>, vector<8x64xf32> -> vector<8x64xf32>
    %c0_42 = arith.constant 0 : index
    %c0_43 = arith.constant 0 : index
    %95 = vector.load %arg16[%c0_42, %c0_43] : memref<1x64xf32, #tpu.memory_space<vmem>>, vector<1x64xf32>
    %96 = vector.broadcast %95 : vector<1x64xf32> to vector<8x64xf32>
    %97 = arith.addf %94, %96 : vector<8x64xf32>
    %98 = vector.extract_strided_slice %97 {offsets = [0, 0], sizes = [8, 32], strides = [1, 1]} : vector<8x64xf32> to vector<8x32xf32>
    %99 = vector.extract_strided_slice %97 {offsets = [0, 32], sizes = [8, 32], strides = [1, 1]} : vector<8x64xf32> to vector<8x32xf32>
    %100 = vector.extract_strided_slice %91 {offsets = [0, 0], sizes = [8, 8], strides = [1, 1]} : vector<8x32xf32> to vector<8x8xf32>
    %101 = vector.extract_strided_slice %91 {offsets = [0, 8], sizes = [8, 8], strides = [1, 1]} : vector<8x32xf32> to vector<8x8xf32>
    %102 = vector.extract_strided_slice %91 {offsets = [0, 16], sizes = [8, 8], strides = [1, 1]} : vector<8x32xf32> to vector<8x8xf32>
    %103 = vector.extract_strided_slice %91 {offsets = [0, 24], sizes = [8, 8], strides = [1, 1]} : vector<8x32xf32> to vector<8x8xf32>
    %104 = vector.shape_cast %100 : vector<8x8xf32> to vector<1x8x8xf32>
    %105 = vector.shape_cast %101 : vector<8x8xf32> to vector<1x8x8xf32>
    %106 = vector.shape_cast %102 : vector<8x8xf32> to vector<1x8x8xf32>
    %107 = vector.shape_cast %103 : vector<8x8xf32> to vector<1x8x8xf32>
    %108 = tpu.concatenate %104, %105, %106, %107 in 0 : vector<1x8x8xf32>, vector<1x8x8xf32>, vector<1x8x8xf32>, vector<1x8x8xf32> -> vector<4x8x8xf32>
    %109 = arith.truncf %108 : vector<4x8x8xf32> to vector<4x8x8xbf16>
    %110 = vector.extract_strided_slice %98 {offsets = [0, 0], sizes = [8, 8], strides = [1, 1]} : vector<8x32xf32> to vector<8x8xf32>
    %111 = vector.extract_strided_slice %98 {offsets = [0, 8], sizes = [8, 8], strides = [1, 1]} : vector<8x32xf32> to vector<8x8xf32>
    %112 = vector.extract_strided_slice %98 {offsets = [0, 16], sizes = [8, 8], strides = [1, 1]} : vector<8x32xf32> to vector<8x8xf32>
    %113 = vector.extract_strided_slice %98 {offsets = [0, 24], sizes = [8, 8], strides = [1, 1]} : vector<8x32xf32> to vector<8x8xf32>
    %114 = vector.shape_cast %110 : vector<8x8xf32> to vector<1x8x8xf32>
    %115 = vector.shape_cast %111 : vector<8x8xf32> to vector<1x8x8xf32>
    %116 = vector.shape_cast %112 : vector<8x8xf32> to vector<1x8x8xf32>
    %117 = vector.shape_cast %113 : vector<8x8xf32> to vector<1x8x8xf32>
    %118 = tpu.concatenate %114, %115, %116, %117 in 0 : vector<1x8x8xf32>, vector<1x8x8xf32>, vector<1x8x8xf32>, vector<1x8x8xf32> -> vector<4x8x8xf32>
    %119 = arith.truncf %118 : vector<4x8x8xf32> to vector<4x8x8xbf16>
    %120 = vector.extract_strided_slice %99 {offsets = [0, 0], sizes = [8, 8], strides = [1, 1]} : vector<8x32xf32> to vector<8x8xf32>
    %121 = vector.extract_strided_slice %99 {offsets = [0, 8], sizes = [8, 8], strides = [1, 1]} : vector<8x32xf32> to vector<8x8xf32>
    %122 = vector.extract_strided_slice %99 {offsets = [0, 16], sizes = [8, 8], strides = [1, 1]} : vector<8x32xf32> to vector<8x8xf32>
    %123 = vector.extract_strided_slice %99 {offsets = [0, 24], sizes = [8, 8], strides = [1, 1]} : vector<8x32xf32> to vector<8x8xf32>
    %124 = vector.shape_cast %120 : vector<8x8xf32> to vector<1x8x8xf32>
    %125 = vector.shape_cast %121 : vector<8x8xf32> to vector<1x8x8xf32>
    %126 = vector.shape_cast %122 : vector<8x8xf32> to vector<1x8x8xf32>
    %127 = vector.shape_cast %123 : vector<8x8xf32> to vector<1x8x8xf32>
    %128 = tpu.concatenate %124, %125, %126, %127 in 0 : vector<1x8x8xf32>, vector<1x8x8xf32>, vector<1x8x8xf32>, vector<1x8x8xf32> -> vector<4x8x8xf32>
    %129 = arith.truncf %128 : vector<4x8x8xf32> to vector<4x8x8xbf16>
    "tpu.trace_start"() <{level = 10 : i32, message = "hqd,hkd->hqk"}> : () -> ()
    %cst_44 = arith.constant dense<0.000000e+00> : vector<4x8x8xf32>
    %130 = tpu.matmul %109, %119, %cst_44 {dimension_numbers = #tpu.dot_dimension_numbers<[2], [2], [1], [1], [0, 0, 0, 1, 1, 1], [0], [0]>} : vector<4x8x8xbf16>, vector<4x8x8xbf16>, vector<4x8x8xf32> -> vector<4x8x8xf32>
    "tpu.trace_stop"() : () -> ()
    %131 = vector.shape_cast %85 : vector<8x8xf32> to vector<1x8x8xf32>
    %132 = vector.broadcast %131 : vector<1x8x8xf32> to vector<4x8x8xf32>
    %133 = arith.addf %130, %132 : vector<4x8x8xf32>
    %cst_45 = arith.constant dense<0xFF800000> : vector<4x8xf32>
    %134 = vector.multi_reduction <maximumf>, %133, %cst_45 [2] : vector<4x8x8xf32> to vector<4x8xf32>
    %135 = vector.shape_cast %134 : vector<4x8xf32> to vector<4x8x1xf32>
    %136 = vector.broadcast %135 : vector<4x8x1xf32> to vector<4x8x8xf32>
    %137 = arith.subf %133, %136 : vector<4x8x8xf32>
    %138 = math.exp %137 : vector<4x8x8xf32>
    %cst_46 = arith.constant dense<0.000000e+00> : vector<4x8xf32>
    %139 = vector.multi_reduction <add>, %138, %cst_46 [2] : vector<4x8x8xf32> to vector<4x8xf32>
    %140 = vector.shape_cast %139 : vector<4x8xf32> to vector<4x8x1xf32>
    %141 = tpu.reciprocal %140 {approx = true} : vector<4x8x1xf32> -> vector<4x8x1xf32>
    %142 = vector.broadcast %141 : vector<4x8x1xf32> to vector<4x8x8xf32>
    %143 = arith.mulf %138, %142 : vector<4x8x8xf32>
    %144 = arith.truncf %143 : vector<4x8x8xf32> to vector<4x8x8xbf16>
    "tpu.trace_start"() <{level = 10 : i32, message = "hqk,hkd->hqd"}> : () -> ()
    %cst_47 = arith.constant dense<0.000000e+00> : vector<4x8x8xf32>
    %145 = tpu.matmul %144, %129, %cst_47 {dimension_numbers = #tpu.dot_dimension_numbers<[2], [1], [1], [2], [0, 0, 0, 1, 1, 2], [0], [0]>} : vector<4x8x8xbf16>, vector<4x8x8xbf16>, vector<4x8x8xf32> -> vector<4x8x8xf32>
    "tpu.trace_stop"() : () -> ()
    %146 = vector.extract_strided_slice %145 {offsets = [0, 0, 0], sizes = [1, 8, 8], strides = [1, 1, 1]} : vector<4x8x8xf32> to vector<1x8x8xf32>
    %147 = vector.shape_cast %146 : vector<1x8x8xf32> to vector<8x8xf32>
    %148 = vector.extract_strided_slice %145 {offsets = [1, 0, 0], sizes = [1, 8, 8], strides = [1, 1, 1]} : vector<4x8x8xf32> to vector<1x8x8xf32>
    %149 = vector.shape_cast %148 : vector<1x8x8xf32> to vector<8x8xf32>
    %150 = vector.extract_strided_slice %145 {offsets = [2, 0, 0], sizes = [1, 8, 8], strides = [1, 1, 1]} : vector<4x8x8xf32> to vector<1x8x8xf32>
    %151 = vector.shape_cast %150 : vector<1x8x8xf32> to vector<8x8xf32>
    %152 = vector.extract_strided_slice %145 {offsets = [3, 0, 0], sizes = [1, 8, 8], strides = [1, 1, 1]} : vector<4x8x8xf32> to vector<1x8x8xf32>
    %153 = vector.shape_cast %152 : vector<1x8x8xf32> to vector<8x8xf32>
    %154 = tpu.concatenate %147, %149, %151, %153 in 1 : vector<8x8xf32>, vector<8x8xf32>, vector<8x8xf32>, vector<8x8xf32> -> vector<8x32xf32>
    %155 = arith.truncf %154 : vector<8x32xf32> to vector<8x32xbf16>
    %c0_48 = arith.constant 0 : index
    %c0_49 = arith.constant 0 : index
    %156 = vector.load %arg17[%c0_48, %c0_49] : memref<32x32xbf16, #tpu.memory_space<vmem>>, vector<32x32xbf16>
    %cst_50 = arith.constant dense<0.000000e+00> : vector<8x32xf32>
    %157 = tpu.matmul %155, %156, %cst_50 {dimension_numbers = #tpu.dot_dimension_numbers<[1], [0], [0], [1], [0, 0, 1, 1], [], []>} : vector<8x32xbf16>, vector<32x32xbf16>, vector<8x32xf32> -> vector<8x32xf32>
    %c0_51 = arith.constant 0 : index
    %c0_52 = arith.constant 0 : index
    %158 = vector.load %arg18[%c0_51, %c0_52] : memref<1x32xf32, #tpu.memory_space<vmem>>, vector<1x32xf32>
    %159 = vector.broadcast %158 : vector<1x32xf32> to vector<8x32xf32>
    %160 = arith.addf %157, %159 : vector<8x32xf32>
    %c0_53 = arith.constant 0 : index
    %c0_54 = arith.constant 0 : index
    %c0_55 = arith.constant 0 : index
    %c0_56 = arith.constant 0 : index
    %161 = vector.load %arg27[%c0_53, %c0_54, %c0_55, %c0_56] : memref<1x4x8x8xf32, #tpu.memory_space<vmem>>, vector<1x4x8x8xf32>
    %162 = vector.shape_cast %161 : vector<1x4x8x8xf32> to vector<4x8x8xf32>
    %163 = vector.shape_cast %143 : vector<4x8x8xf32> to vector<1x4x8x8xf32>
    tpu.vector_store %arg27[%c0_53, %c0_54, %c0_55, %c0_56], %163 {strides = array<i32>} : memref<1x4x8x8xf32, #tpu.memory_space<vmem>>, vector<1x4x8x8xf32>,
    %164 = arith.truncf %160 : vector<8x32xf32> to vector<8x32xbf16>
    %c0_57 = arith.constant 0 : index
    %c0_58 = arith.constant 0 : index
    %165 = vector.load %arg19[%c0_57, %c0_58] : memref<32x64xbf16, #tpu.memory_space<vmem>>, vector<32x64xbf16>
    %cst_59 = arith.constant dense<0.000000e+00> : vector<8x64xf32>
    %166 = tpu.matmul %164, %165, %cst_59 {dimension_numbers = #tpu.dot_dimension_numbers<[1], [0], [0], [1], [0, 0, 1, 1], [], []>} : vector<8x32xbf16>, vector<32x64xbf16>, vector<8x64xf32> -> vector<8x64xf32>
    %c0_60 = arith.constant 0 : index
    %c0_61 = arith.constant 0 : index
    %167 = vector.load %arg20[%c0_60, %c0_61] : memref<1x64xf32, #tpu.memory_space<vmem>>, vector<1x64xf32>
    %168 = vector.broadcast %167 : vector<1x64xf32> to vector<8x64xf32>
    %169 = arith.addf %166, %168 : vector<8x64xf32>
    %cst_62 = arith.constant 0.000000e+00 : f32
    %170 = vector.broadcast %cst_62 : f32 to vector<8x64xf32>
    %171 = arith.maximumf %169, %170 : vector<8x64xf32>
    %172 = arith.truncf %171 : vector<8x64xf32> to vector<8x64xbf16>
    %c0_63 = arith.constant 0 : index
    %c0_64 = arith.constant 0 : index
    %173 = vector.load %arg21[%c0_63, %c0_64] : memref<64x32xbf16, #tpu.memory_space<vmem>>, vector<64x32xbf16>
    %cst_65 = arith.constant dense<0.000000e+00> : vector<8x32xf32>
    %174 = tpu.matmul %172, %173, %cst_65 {dimension_numbers = #tpu.dot_dimension_numbers<[1], [0], [0], [1], [0, 0, 1, 1], [], []>} : vector<8x64xbf16>, vector<64x32xbf16>, vector<8x32xf32> -> vector<8x32xf32>
    %c0_66 = arith.constant 0 : index
    %c0_67 = arith.constant 0 : index
    %175 = vector.load %arg22[%c0_66, %c0_67] : memref<1x32xf32, #tpu.memory_space<vmem>>, vector<1x32xf32>
    %176 = vector.broadcast %175 : vector<1x32xf32> to vector<8x32xf32>
    %177 = arith.addf %174, %176 : vector<8x32xf32>
    %178 = arith.addf %177, %160 : vector<8x32xf32>
    %cst_68 = arith.constant dense<0.000000e+00> : vector<8xf32>
    %179 = vector.multi_reduction <add>, %178, %cst_68 [1] : vector<8x32xf32> to vector<8xf32>
    %180 = vector.shape_cast %179 : vector<8xf32> to vector<8x1xf32>
    %cst_69 = arith.constant 3.200000e+01 : f32
    %181 = vector.broadcast %cst_69 : f32 to vector<8x1xf32>
    %182 = arith.divf %180, %181 : vector<8x1xf32>
    %183 = vector.broadcast %182 : vector<8x1xf32> to vector<8x32xf32>
    %184 = arith.subf %178, %183 : vector<8x32xf32>
    %185 = arith.mulf %184, %184 : vector<8x32xf32>
    %cst_70 = arith.constant dense<0.000000e+00> : vector<8xf32>
    %186 = vector.multi_reduction <add>, %185, %cst_70 [1] : vector<8x32xf32> to vector<8xf32>
    %187 = vector.shape_cast %186 : vector<8xf32> to vector<8x1xf32>
    %cst_71 = arith.constant 3.200000e+01 : f32
    %188 = vector.broadcast %cst_71 : f32 to vector<8x1xf32>
    %189 = arith.divf %187, %188 : vector<8x1xf32>
    %190 = vector.broadcast %182 : vector<8x1xf32> to vector<8x32xf32>
    %191 = arith.subf %178, %190 : vector<8x32xf32>
    %cst_72 = arith.constant 9.99999997E-7 : f32
    %192 = vector.broadcast %cst_72 : f32 to vector<8x1xf32>
    %193 = arith.addf %189, %192 : vector<8x1xf32>
    %194 = math.rsqrt %193 : vector<8x1xf32>
    %195 = vector.broadcast %194 : vector<8x1xf32> to vector<8x32xf32>
    %196 = arith.mulf %191, %195 : vector<8x32xf32>
    %c0_73 = arith.constant 0 : index
    %c0_74 = arith.constant 0 : index
    %197 = vector.load %arg23[%c0_73, %c0_74] : memref<1x32xf32, #tpu.memory_space<vmem>>, vector<1x32xf32>
    %198 = vector.broadcast %197 : vector<1x32xf32> to vector<8x32xf32>
    %199 = arith.mulf %196, %198 : vector<8x32xf32>
    %c0_75 = arith.constant 0 : index
    %c0_76 = arith.constant 0 : index
    %200 = vector.load %arg24[%c0_75, %c0_76] : memref<1x32xf32, #tpu.memory_space<vmem>>, vector<1x32xf32>
    %201 = vector.broadcast %200 : vector<1x32xf32> to vector<8x32xf32>
    %202 = arith.addf %199, %201 : vector<8x32xf32>
    %c0_77 = arith.constant 0 : index
    %c0_78 = arith.constant 0 : index
    %c0_79 = arith.constant 0 : index
    %203 = vector.load %arg25[%c0_77, %c0_78, %c0_79] : memref<1x8x32xf32, #tpu.memory_space<vmem>>, vector<1x8x32xf32>
    %204 = vector.shape_cast %203 : vector<1x8x32xf32> to vector<8x32xf32>
    %205 = vector.shape_cast %202 : vector<8x32xf32> to vector<1x8x32xf32>
    tpu.vector_store %arg25[%c0_77, %c0_78, %c0_79], %205 {strides = array<i32>} : memref<1x8x32xf32, #tpu.memory_space<vmem>>, vector<1x8x32xf32>,
    return
  }
  func.func @transform_0(%arg0: i32, %arg1: i32) -> (i32, i32, i32) {
    %c0_i32 = arith.constant 0 : i32
    %c0_i32_0 = arith.constant 0 : i32
    return %arg0, %arg1, %c0_i32 : i32, i32, i32
  }
  func.func @transform_1(%arg0: i32, %arg1: i32) -> (i32, i32, i32) {
    %c0_i32 = arith.constant 0 : i32
    %c0_i32_0 = arith.constant 0 : i32
    %c0_i32_1 = arith.constant 0 : i32
    return %arg0, %c0_i32, %c0_i32_0 : i32, i32, i32
  }
  func.func @transform_2(%arg0: i32, %arg1: i32) -> (i32, i32, i32) {
    %c0_i32 = arith.constant 0 : i32
    %c0_i32_0 = arith.constant 0 : i32
    %c0_i32_1 = arith.constant 0 : i32
    return %arg0, %c0_i32, %c0_i32_0 : i32, i32, i32
  }
  func.func @transform_3(%arg0: i32, %arg1: i32) -> (i32, i32) {
    %c0_i32 = arith.constant 0 : i32
    %c0_i32_0 = arith.constant 0 : i32
    return %arg1, %c0_i32 : i32, i32
  }
  func.func @transform_4(%arg0: i32, %arg1: i32) -> (i32, i32) {
    %c0_i32 = arith.constant 0 : i32
    %c0_i32_0 = arith.constant 0 : i32
    return %arg1, %c0_i32 : i32, i32
  }
  func.func @transform_5(%arg0: i32, %arg1: i32) -> (i32, i32) {
    %c0_i32 = arith.constant 0 : i32
    %c0_i32_0 = arith.constant 0 : i32
    %c0_i32_1 = arith.constant 0 : i32
    return %c0_i32, %c0_i32_0 : i32, i32
  }
  func.func @transform_6(%arg0: i32, %arg1: i32) -> (i32, i32) {
    %c0_i32 = arith.constant 0 : i32
    %c0_i32_0 = arith.constant 0 : i32
    %c0_i32_1 = arith.constant 0 : i32
    return %c0_i32, %c0_i32_0 : i32, i32
  }
  func.func @transform_7(%arg0: i32, %arg1: i32) -> (i32, i32) {
    %c0_i32 = arith.constant 0 : i32
    %c0_i32_0 = arith.constant 0 : i32
    %c0_i32_1 = arith.constant 0 : i32
    return %c0_i32, %c0_i32_0 : i32, i32
  }
  func.func @transform_8(%arg0: i32, %arg1: i32) -> (i32, i32) {
    %c0_i32 = arith.constant 0 : i32
    %c0_i32_0 = arith.constant 0 : i32
    %c0_i32_1 = arith.constant 0 : i32
    return %c0_i32, %c0_i32_0 : i32, i32
  }
  func.func @transform_9(%arg0: i32, %arg1: i32) -> (i32, i32) {
    %c0_i32 = arith.constant 0 : i32
    %c0_i32_0 = arith.constant 0 : i32
    %c0_i32_1 = arith.constant 0 : i32
    return %c0_i32, %c0_i32_0 : i32, i32
  }
  func.func @transform_10(%arg0: i32, %arg1: i32) -> (i32, i32) {
    %c0_i32 = arith.constant 0 : i32
    %c0_i32_0 = arith.constant 0 : i32
    %c0_i32_1 = arith.constant 0 : i32
    return %c0_i32, %c0_i32_0 : i32, i32
  }
  func.func @transform_11(%arg0: i32, %arg1: i32) -> (i32, i32) {
    %c0_i32 = arith.constant 0 : i32
    %c0_i32_0 = arith.constant 0 : i32
    %c0_i32_1 = arith.constant 0 : i32
    return %c0_i32, %c0_i32_0 : i32, i32
  }
  func.func @transform_12(%arg0: i32, %arg1: i32) -> (i32, i32) {
    %c0_i32 = arith.constant 0 : i32
    %c0_i32_0 = arith.constant 0 : i32
    %c0_i32_1 = arith.constant 0 : i32
    return %c0_i32, %c0_i32_0 : i32, i32
  }
  func.func @transform_13(%arg0: i32, %arg1: i32) -> (i32, i32) {
    %c0_i32 = arith.constant 0 : i32
    %c0_i32_0 = arith.constant 0 : i32
    %c0_i32_1 = arith.constant 0 : i32
    return %c0_i32, %c0_i32_0 : i32, i32
  }
  func.func @transform_14(%arg0: i32, %arg1: i32) -> (i32, i32) {
    %c0_i32 = arith.constant 0 : i32
    %c0_i32_0 = arith.constant 0 : i32
    %c0_i32_1 = arith.constant 0 : i32
    return %c0_i32, %c0_i32_0 : i32, i32
  }
  func.func @transform_15(%arg0: i32, %arg1: i32) -> (i32, i32) {
    %c0_i32 = arith.constant 0 : i32
    %c0_i32_0 = arith.constant 0 : i32
    %c0_i32_1 = arith.constant 0 : i32
    return %c0_i32, %c0_i32_0 : i32, i32
  }
  func.func @transform_16(%arg0: i32, %arg1: i32) -> (i32, i32) {
    %c0_i32 = arith.constant 0 : i32
    %c0_i32_0 = arith.constant 0 : i32
    %c0_i32_1 = arith.constant 0 : i32
    return %c0_i32, %c0_i32_0 : i32, i32
  }
  func.func @transform_17(%arg0: i32, %arg1: i32) -> (i32, i32) {
    %c0_i32 = arith.constant 0 : i32
    %c0_i32_0 = arith.constant 0 : i32
    %c0_i32_1 = arith.constant 0 : i32
    return %c0_i32, %c0_i32_0 : i32, i32
  }
  func.func @transform_18(%arg0: i32, %arg1: i32) -> (i32, i32) {
    %c0_i32 = arith.constant 0 : i32
    %c0_i32_0 = arith.constant 0 : i32
    %c0_i32_1 = arith.constant 0 : i32
    return %c0_i32, %c0_i32_0 : i32, i32
  }
  func.func @transform_19(%arg0: i32, %arg1: i32) -> (i32, i32) {
    %c0_i32 = arith.constant 0 : i32
    %c0_i32_0 = arith.constant 0 : i32
    %c0_i32_1 = arith.constant 0 : i32
    return %c0_i32, %c0_i32_0 : i32, i32
  }
  func.func @transform_20(%arg0: i32, %arg1: i32) -> (i32, i32) {
    %c0_i32 = arith.constant 0 : i32
    %c0_i32_0 = arith.constant 0 : i32
    %c0_i32_1 = arith.constant 0 : i32
    return %c0_i32, %c0_i32_0 : i32, i32
  }
  func.func @transform_21(%arg0: i32, %arg1: i32) -> (i32, i32) {
    %c0_i32 = arith.constant 0 : i32
    %c0_i32_0 = arith.constant 0 : i32
    %c0_i32_1 = arith.constant 0 : i32
    return %c0_i32, %c0_i32_0 : i32, i32
  }
  func.func @transform_22(%arg0: i32, %arg1: i32) -> (i32, i32) {
    %c0_i32 = arith.constant 0 : i32
    %c0_i32_0 = arith.constant 0 : i32
    %c0_i32_1 = arith.constant 0 : i32
    return %c0_i32, %c0_i32_0 : i32, i32
  }
  func.func @transform_23(%arg0: i32, %arg1: i32) -> (i32, i32, i32) {
    %c0_i32 = arith.constant 0 : i32
    %c0_i32_0 = arith.constant 0 : i32
    return %arg0, %arg1, %c0_i32 : i32, i32, i32
  }
  func.func @transform_24(%arg0: i32, %arg1: i32) -> (i32, i32, i32, i32) {
    %c0_i32 = arith.constant 0 : i32
    %c0_i32_0 = arith.constant 0 : i32
    %c0_i32_1 = arith.constant 0 : i32
    return %arg0, %c0_i32, %arg1, %c0_i32_0 : i32, i32, i32, i32
  }
  func.func @transform_25(%arg0: i32, %arg1: i32) -> (i32, i32, i32, i32) {
    %c0_i32 = arith.constant 0 : i32
    %c0_i32_0 = arith.constant 0 : i32
    %c0_i32_1 = arith.constant 0 : i32
    return %arg0, %c0_i32, %arg1, %c0_i32_0 : i32, i32, i32, i32
  }
}

module attributes {stable_mosaic.version = 11 : i64} {
  func.func @_layer_kernel(%arg0: i32, %arg1: i32, %arg2: memref<1x8x32xf32, #tpu.memory_space<vmem>>, %arg3: memref<1x8x32xf32, #tpu.memory_space<vmem>>, %arg4: memref<1x8x32xf32, #tpu.memory_space<vmem>>, %arg5: memref<8x8xf32, #tpu.memory_space<vmem>>, %arg6: memref<8x8xf32, #tpu.memory_space<vmem>>, %arg7: memref<32x32xbf16, #tpu.memory_space<vmem>>, %arg8: memref<1x32xf32, #tpu.memory_space<vmem>>, %arg9: memref<32x64xbf16, #tpu.memory_space<vmem>>, %arg10: memref<1x64xf32, #tpu.memory_space<vmem>>, %arg11: memref<32x32xbf16, #tpu.memory_space<vmem>>, %arg12: memref<1x32xf32, #tpu.memory_space<vmem>>, %arg13: memref<32x32xbf16, #tpu.memory_space<vmem>>, %arg14: memref<1x32xf32, #tpu.memory_space<vmem>>, %arg15: memref<32x64xbf16, #tpu.memory_space<vmem>>, %arg16: memref<1x64xf32, #tpu.memory_space<vmem>>, %arg17: memref<32x32xbf16, #tpu.memory_space<vmem>>, %arg18: memref<1x32xf32, #tpu.memory_space<vmem>>, %arg19: memref<32x64xbf16, #tpu.memory_space<vmem>>, %arg20: memref<1x64xf32, #tpu.memory_space<vmem>>, %arg21: memref<64x32xbf16, #tpu.memory_space<vmem>>, %arg22: memref<1x32xf32, #tpu.memory_space<vmem>>, %arg23: memref<1x32xf32, #tpu.memory_space<vmem>>, %arg24: memref<1x32xf32, #tpu.memory_space<vmem>>, %arg25: memref<1x8x32xf32, #tpu.memory_space<vmem>>, %arg26: memref<1x4x8x8xf32, #tpu.memory_space<vmem>>, %arg27: memref<1x4x8x8xf32, #tpu.memory_space<vmem>>) attributes {dimension_semantics = [#tpu.dimension_semantics<parallel>, #tpu.dimension_semantics<parallel>], iteration_bounds = array<i64: 2, 1>, scalar_prefetch = 0 : i64, scratch_operands = 0 : i64, tpu.core_type = #tpu.core_type<tc>, window_params = [{transform_indices = @transform_0, window_bounds = array<i64: 1, 8, 32>}, {transform_indices = @transform_1, window_bounds = array<i64: 1, 8, 32>}, {transform_indices = @transform_2, window_bounds = array<i64: 1, 8, 32>}, {transform_indices = @transform_3, window_bounds = array<i64: 8, 8>}, {transform_indices = @transform_4, window_bounds = array<i64: 8, 8>}, {pipeline_mode = #tpu.pipeline_mode<synchronous>, transform_indices = @transform_5, window_bounds = array<i64: 32, 32>}, {pipeline_mode = #tpu.pipeline_mode<synchronous>, transform_indices = @transform_6, window_bounds = array<i64: 1, 32>}, {pipeline_mode = #tpu.pipeline_mode<synchronous>, transform_indices = @transform_7, window_bounds = array<i64: 32, 64>}, {pipeline_mode = #tpu.pipeline_mode<synchronous>, transform_indices = @transform_8, window_bounds = array<i64: 1, 64>}, {pipeline_mode = #tpu.pipeline_mode<synchronous>, transform_indices = @transform_9, window_bounds = array<i64: 32, 32>}, {pipeline_mode = #tpu.pipeline_mode<synchronous>, transform_indices = @transform_10, window_bounds = array<i64: 1, 32>}, {pipeline_mode = #tpu.pipeline_mode<synchronous>, transform_indices = @transform_11, window_bounds = array<i64: 32, 32>}, {pipeline_mode = #tpu.pipeline_mode<synchronous>, transform_indices = @transform_12, window_bounds = array<i64: 1, 32>}, {pipeline_mode = #tpu.pipeline_mode<synchronous>, transform_indices = @transform_13, window_bounds = array<i64: 32, 64>}, {pipeline_mode = #tpu.pipeline_mode<synchronous>, transform_indices = @transform_14, window_bounds = array<i64: 1, 64>}, {pipeline_mode = #tpu.pipeline_mode<synchronous>, transform_indices = @transform_15, window_bounds = array<i64: 32, 32>}, {pipeline_mode = #tpu.pipeline_mode<synchronous>, transform_indices = @transform_16, window_bounds = array<i64: 1, 32>}, {pipeline_mode = #tpu.pipeline_mode<synchronous>, transform_indices = @transform_17, window_bounds = array<i64: 32, 64>}, {pipeline_mode = #tpu.pipeline_mode<synchronous>, transform_indices = @transform_18, window_bounds = array<i64: 1, 64>}, {pipeline_mode = #tpu.pipeline_mode<synchronous>, transform_indices = @transform_19, window_bounds = array<i64: 64, 32>}, {pipeline_mode = #tpu.pipeline_mode<synchronous>, transform_indices = @transform_20, window_bounds = array<i64: 1, 32>}, {pipeline_mode = #tpu.pipeline_mode<synchronous>, transform_indices = @transform_21, window_bounds = array<i64: 1, 32>}, {pipeline_mode = #tpu.pipeline_mode<synchronous>, transform_indices = @transform_22, window_bounds = array<i64: 1, 32>}, {transform_indices = @transform_23, window_bounds = array<i64: 1, 8, 32>}, {transform_indices = @transform_24, window_bounds = array<i64: 1, 4, 8, 8>}, {transform_indices = @transform_25, window_bounds = array<i64: 1, 4, 8, 8>}]} {
    %c0 = arith.constant 0 : index
    %c0_0 = arith.constant 0 : index
    %c0_1 = arith.constant 0 : index
    %0 = vector.load %arg2[%c0, %c0_0, %c0_1] : memref<1x8x32xf32, #tpu.memory_space<vmem>>, vector<1x8x32xf32>
    %1 = vector.shape_cast %0 : vector<1x8x32xf32> to vector<8x32xf32>
    %c0_2 = arith.constant 0 : index
    %c0_3 = arith.constant 0 : index
    %c0_4 = arith.constant 0 : index
    %2 = vector.load %arg3[%c0_2, %c0_3, %c0_4] : memref<1x8x32xf32, #tpu.memory_space<vmem>>, vector<1x8x32xf32>
    %3 = vector.shape_cast %2 : vector<1x8x32xf32> to vector<8x32xf32>
    %c0_5 = arith.constant 0 : index
    %c0_6 = arith.constant 0 : index
    %c0_7 = arith.constant 0 : index
    %4 = vector.load %arg4[%c0_5, %c0_6, %c0_7] : memref<1x8x32xf32, #tpu.memory_space<vmem>>, vector<1x8x32xf32>
    %5 = vector.shape_cast %4 : vector<1x8x32xf32> to vector<8x32xf32>
    %c0_8 = arith.constant 0 : index
    %c0_9 = arith.constant 0 : index
    %6 = vector.load %arg5[%c0_8, %c0_9] : memref<8x8xf32, #tpu.memory_space<vmem>>, vector<8x8xf32>
    %7 = arith.truncf %1 : vector<8x32xf32> to vector<8x32xbf16>
    %c0_10 = arith.constant 0 : index
    %c0_11 = arith.constant 0 : index
    %8 = vector.load %arg7[%c0_10, %c0_11] : memref<32x32xbf16, #tpu.memory_space<vmem>>, vector<32x32xbf16>
    %cst = arith.constant dense<0.000000e+00> : vector<8x32xf32>
    %9 = tpu.matmul %7, %8, %cst {dimension_numbers = #tpu.dot_dimension_numbers<[1], [0], [0], [1], [0, 0, 1, 1], [], []>} : vector<8x32xbf16>, vector<32x32xbf16>, vector<8x32xf32> -> vector<8x32xf32>
    %c0_12 = arith.constant 0 : index
    %c0_13 = arith.constant 0 : index
    %10 = vector.load %arg8[%c0_12, %c0_13] : memref<1x32xf32, #tpu.memory_space<vmem>>, vector<1x32xf32>
    %11 = vector.broadcast %10 : vector<1x32xf32> to vector<8x32xf32>
    %12 = arith.addf %9, %11 : vector<8x32xf32>
    %13 = arith.truncf %3 : vector<8x32xf32> to vector<8x32xbf16>
    %c0_14 = arith.constant 0 : index
    %c0_15 = arith.constant 0 : index
    %14 = vector.load %arg9[%c0_14, %c0_15] : memref<32x64xbf16, #tpu.memory_space<vmem>>, vector<32x64xbf16>
    %cst_16 = arith.constant dense<0.000000e+00> : vector<8x64xf32>
    %15 = tpu.matmul %13, %14, %cst_16 {dimension_numbers = #tpu.dot_dimension_numbers<[1], [0], [0], [1], [0, 0, 1, 1], [], []>} : vector<8x32xbf16>, vector<32x64xbf16>, vector<8x64xf32> -> vector<8x64xf32>
    %c0_17 = arith.constant 0 : index
    %c0_18 = arith.constant 0 : index
    %16 = vector.load %arg10[%c0_17, %c0_18] : memref<1x64xf32, #tpu.memory_space<vmem>>, vector<1x64xf32>
    %17 = vector.broadcast %16 : vector<1x64xf32> to vector<8x64xf32>
    %18 = arith.addf %15, %17 : vector<8x64xf32>
    %19 = vector.extract_strided_slice %18 {offsets = [0, 0], sizes = [8, 32], strides = [1, 1]} : vector<8x64xf32> to vector<8x32xf32>
    %20 = vector.extract_strided_slice %18 {offsets = [0, 32], sizes = [8, 32], strides = [1, 1]} : vector<8x64xf32> to vector<8x32xf32>
    %21 = vector.extract_strided_slice %12 {offsets = [0, 0], sizes = [8, 8], strides = [1, 1]} : vector<8x32xf32> to vector<8x8xf32>
    %22 = vector.extract_strided_slice %12 {offsets = [0, 8], sizes = [8, 8], strides = [1, 1]} : vector<8x32xf32> to vector<8x8xf32>
    %23 = vector.extract_strided_slice %12 {offsets = [0, 16], sizes = [8, 8], strides = [1, 1]} : vector<8x32xf32> to vector<8x8xf32>
    %24 = vector.extract_strided_slice %12 {offsets = [0, 24], sizes = [8, 8], strides = [1, 1]} : vector<8x32xf32> to vector<8x8xf32>
    %25 = vector.shape_cast %21 : vector<8x8xf32> to vector<1x8x8xf32>
    %26 = vector.shape_cast %22 : vector<8x8xf32> to vector<1x8x8xf32>
    %27 = vector.shape_cast %23 : vector<8x8xf32> to vector<1x8x8xf32>
    %28 = vector.shape_cast %24 : vector<8x8xf32> to vector<1x8x8xf32>
    %29 = tpu.concatenate %25, %26, %27, %28 in 0 : vector<1x8x8xf32>, vector<1x8x8xf32>, vector<1x8x8xf32>, vector<1x8x8xf32> -> vector<4x8x8xf32>
    %30 = arith.truncf %29 : vector<4x8x8xf32> to vector<4x8x8xbf16>
    %31 = vector.extract_strided_slice %19 {offsets = [0, 0], sizes = [8, 8], strides = [1, 1]} : vector<8x32xf32> to vector<8x8xf32>
    %32 = vector.extract_strided_slice %19 {offsets = [0, 8], sizes = [8, 8], strides = [1, 1]} : vector<8x32xf32> to vector<8x8xf32>
    %33 = vector.extract_strided_slice %19 {offsets = [0, 16], sizes = [8, 8], strides = [1, 1]} : vector<8x32xf32> to vector<8x8xf32>
    %34 = vector.extract_strided_slice %19 {offsets = [0, 24], sizes = [8, 8], strides = [1, 1]} : vector<8x32xf32> to vector<8x8xf32>
    %35 = vector.shape_cast %31 : vector<8x8xf32> to vector<1x8x8xf32>
    %36 = vector.shape_cast %32 : vector<8x8xf32> to vector<1x8x8xf32>
    %37 = vector.shape_cast %33 : vector<8x8xf32> to vector<1x8x8xf32>
    %38 = vector.shape_cast %34 : vector<8x8xf32> to vector<1x8x8xf32>
    %39 = tpu.concatenate %35, %36, %37, %38 in 0 : vector<1x8x8xf32>, vector<1x8x8xf32>, vector<1x8x8xf32>, vector<1x8x8xf32> -> vector<4x8x8xf32>
    %40 = arith.truncf %39 : vector<4x8x8xf32> to vector<4x8x8xbf16>
    %41 = vector.extract_strided_slice %20 {offsets = [0, 0], sizes = [8, 8], strides = [1, 1]} : vector<8x32xf32> to vector<8x8xf32>
    %42 = vector.extract_strided_slice %20 {offsets = [0, 8], sizes = [8, 8], strides = [1, 1]} : vector<8x32xf32> to vector<8x8xf32>
    %43 = vector.extract_strided_slice %20 {offsets = [0, 16], sizes = [8, 8], strides = [1, 1]} : vector<8x32xf32> to vector<8x8xf32>
    %44 = vector.extract_strided_slice %20 {offsets = [0, 24], sizes = [8, 8], strides = [1, 1]} : vector<8x32xf32> to vector<8x8xf32>
    %45 = vector.shape_cast %41 : vector<8x8xf32> to vector<1x8x8xf32>
    %46 = vector.shape_cast %42 : vector<8x8xf32> to vector<1x8x8xf32>
    %47 = vector.shape_cast %43 : vector<8x8xf32> to vector<1x8x8xf32>
    %48 = vector.shape_cast %44 : vector<8x8xf32> to vector<1x8x8xf32>
    %49 = tpu.concatenate %45, %46, %47, %48 in 0 : vector<1x8x8xf32>, vector<1x8x8xf32>, vector<1x8x8xf32>, vector<1x8x8xf32> -> vector<4x8x8xf32>
    %50 = arith.truncf %49 : vector<4x8x8xf32> to vector<4x8x8xbf16>
    "tpu.trace_start"() <{level = 10 : i32, message = "hqd,hkd->hqk"}> : () -> ()
    %cst_19 = arith.constant dense<0.000000e+00> : vector<4x8x8xf32>
    %51 = tpu.matmul %30, %40, %cst_19 {dimension_numbers = #tpu.dot_dimension_numbers<[2], [2], [1], [1], [0, 0, 0, 1, 1, 1], [0], [0]>} : vector<4x8x8xbf16>, vector<4x8x8xbf16>, vector<4x8x8xf32> -> vector<4x8x8xf32>
    "tpu.trace_stop"() : () -> ()
    %52 = vector.shape_cast %6 : vector<8x8xf32> to vector<1x8x8xf32>
    %53 = vector.broadcast %52 : vector<1x8x8xf32> to vector<4x8x8xf32>
    %54 = arith.addf %51, %53 : vector<4x8x8xf32>
    %cst_20 = arith.constant dense<0xFF800000> : vector<4x8xf32>
    %55 = vector.multi_reduction <maximumf>, %54, %cst_20 [2] : vector<4x8x8xf32> to vector<4x8xf32>
    %56 = vector.shape_cast %55 : vector<4x8xf32> to vector<4x8x1xf32>
    %57 = vector.broadcast %56 : vector<4x8x1xf32> to vector<4x8x8xf32>
    %58 = arith.subf %54, %57 : vector<4x8x8xf32>
    %59 = math.exp %58 : vector<4x8x8xf32>
    %cst_21 = arith.constant dense<0.000000e+00> : vector<4x8xf32>
    %60 = vector.multi_reduction <add>, %59, %cst_21 [2] : vector<4x8x8xf32> to vector<4x8xf32>
    %61 = vector.shape_cast %60 : vector<4x8xf32> to vector<4x8x1xf32>
    %62 = tpu.reciprocal %61 {approx = true} : vector<4x8x1xf32> -> vector<4x8x1xf32>
    %63 = vector.broadcast %62 : vector<4x8x1xf32> to vector<4x8x8xf32>
    %64 = arith.mulf %59, %63 : vector<4x8x8xf32>
    %65 = arith.truncf %64 : vector<4x8x8xf32> to vector<4x8x8xbf16>
    "tpu.trace_start"() <{level = 10 : i32, message = "hqk,hkd->hqd"}> : () -> ()
    %cst_22 = arith.constant dense<0.000000e+00> : vector<4x8x8xf32>
    %66 = tpu.matmul %65, %50, %cst_22 {dimension_numbers = #tpu.dot_dimension_numbers<[2], [1], [1], [2], [0, 0, 0, 1, 1, 2], [0], [0]>} : vector<4x8x8xbf16>, vector<4x8x8xbf16>, vector<4x8x8xf32> -> vector<4x8x8xf32>
    "tpu.trace_stop"() : () -> ()
    %67 = vector.extract_strided_slice %66 {offsets = [0, 0, 0], sizes = [1, 8, 8], strides = [1, 1, 1]} : vector<4x8x8xf32> to vector<1x8x8xf32>
    %68 = vector.shape_cast %67 : vector<1x8x8xf32> to vector<8x8xf32>
    %69 = vector.extract_strided_slice %66 {offsets = [1, 0, 0], sizes = [1, 8, 8], strides = [1, 1, 1]} : vector<4x8x8xf32> to vector<1x8x8xf32>
    %70 = vector.shape_cast %69 : vector<1x8x8xf32> to vector<8x8xf32>
    %71 = vector.extract_strided_slice %66 {offsets = [2, 0, 0], sizes = [1, 8, 8], strides = [1, 1, 1]} : vector<4x8x8xf32> to vector<1x8x8xf32>
    %72 = vector.shape_cast %71 : vector<1x8x8xf32> to vector<8x8xf32>
    %73 = vector.extract_strided_slice %66 {offsets = [3, 0, 0], sizes = [1, 8, 8], strides = [1, 1, 1]} : vector<4x8x8xf32> to vector<1x8x8xf32>
    %74 = vector.shape_cast %73 : vector<1x8x8xf32> to vector<8x8xf32>
    %75 = tpu.concatenate %68, %70, %72, %74 in 1 : vector<8x8xf32>, vector<8x8xf32>, vector<8x8xf32>, vector<8x8xf32> -> vector<8x32xf32>
    %76 = arith.truncf %75 : vector<8x32xf32> to vector<8x32xbf16>
    %c0_23 = arith.constant 0 : index
    %c0_24 = arith.constant 0 : index
    %77 = vector.load %arg11[%c0_23, %c0_24] : memref<32x32xbf16, #tpu.memory_space<vmem>>, vector<32x32xbf16>
    %cst_25 = arith.constant dense<0.000000e+00> : vector<8x32xf32>
    %78 = tpu.matmul %76, %77, %cst_25 {dimension_numbers = #tpu.dot_dimension_numbers<[1], [0], [0], [1], [0, 0, 1, 1], [], []>} : vector<8x32xbf16>, vector<32x32xbf16>, vector<8x32xf32> -> vector<8x32xf32>
    %c0_26 = arith.constant 0 : index
    %c0_27 = arith.constant 0 : index
    %79 = vector.load %arg12[%c0_26, %c0_27] : memref<1x32xf32, #tpu.memory_space<vmem>>, vector<1x32xf32>
    %80 = vector.broadcast %79 : vector<1x32xf32> to vector<8x32xf32>
    %81 = arith.addf %78, %80 : vector<8x32xf32>
    %c0_28 = arith.constant 0 : index
    %c0_29 = arith.constant 0 : index
    %c0_30 = arith.constant 0 : index
    %c0_31 = arith.constant 0 : index
    %82 = vector.load %arg26[%c0_28, %c0_29, %c0_30, %c0_31] : memref<1x4x8x8xf32, #tpu.memory_space<vmem>>, vector<1x4x8x8xf32>
    %83 = vector.shape_cast %82 : vector<1x4x8x8xf32> to vector<4x8x8xf32>
    %84 = vector.shape_cast %64 : vector<4x8x8xf32> to vector<1x4x8x8xf32>
    tpu.vector_store %arg26[%c0_28, %c0_29, %c0_30, %c0_31], %84 {strides = array<i32>} : memref<1x4x8x8xf32, #tpu.memory_space<vmem>>, vector<1x4x8x8xf32>,
    %c0_32 = arith.constant 0 : index
    %c0_33 = arith.constant 0 : index
    %85 = vector.load %arg6[%c0_32, %c0_33] : memref<8x8xf32, #tpu.memory_space<vmem>>, vector<8x8xf32>
    %86 = arith.truncf %81 : vector<8x32xf32> to vector<8x32xbf16>
    %c0_34 = arith.constant 0 : index
    %c0_35 = arith.constant 0 : index
    %87 = vector.load %arg13[%c0_34, %c0_35] : memref<32x32xbf16, #tpu.memory_space<vmem>>, vector<32x32xbf16>
    %cst_36 = arith.constant dense<0.000000e+00> : vector<8x32xf32>
    %88 = tpu.matmul %86, %87, %cst_36 {dimension_numbers = #tpu.dot_dimension_numbers<[1], [0], [0], [1], [0, 0, 1, 1], [], []>} : vector<8x32xbf16>, vector<32x32xbf16>, vector<8x32xf32> -> vector<8x32xf32>
    %c0_37 = arith.constant 0 : index
    %c0_38 = arith.constant 0 : index
    %89 = vector.load %arg14[%c0_37, %c0_38] : memref<1x32xf32, #tpu.memory_space<vmem>>, vector<1x32xf32>
    %90 = vector.broadcast %89 : vector<1x32xf32> to vector<8x32xf32>
    %91 = arith.addf %88, %90 : vector<8x32xf32>
    %92 = arith.truncf %5 : vector<8x32xf32> to vector<8x32xbf16>
    %c0_39 = arith.constant 0 : index
    %c0_40 = arith.constant 0 : index
    %93 = vector.load %arg15[%c0_39, %c0_40] : memref<32x64xbf16, #tpu.memory_space<vmem>>, vector<32x64xbf16>
    %cst_41 = arith.constant dense<0.000000e+00> : vector<8x64xf32>
    %94 = tpu.matmul %92, %93, %cst_41 {dimension_numbers = #tpu.dot_dimension_numbers<[1], [0], [0], [1], [0, 0, 1, 1], [], []>} : vector<8x32xbf16>, vector<32x64xbf16>, vector<8x64xf32> -> vector<8x64xf32>
    %c0_42 = arith.constant 0 : index
    %c0_43 = arith.constant 0 : index
    %95 = vector.load %arg16[%c0_42, %c0_43] : memref<1x64xf32, #tpu.memory_space<vmem>>, vector<1x64xf32>
    %96 = vector.broadcast %95 : vector<1x64xf32> to vector<8x64xf32>
    %97 = arith.addf %94, %96 : vector<8x64xf32>
    %98 = vector.extract_strided_slice %97 {offsets = [0, 0], sizes = [8, 32], strides = [1, 1]} : vector<8x64xf32> to vector<8x32xf32>
    %99 = vector.extract_strided_slice %97 {offsets = [0, 32], sizes = [8, 32], strides = [1, 1]} : vector<8x64xf32> to vector<8x32xf32>
    %100 = vector.extract_strided_slice %91 {offsets = [0, 0], sizes = [8, 8], strides = [1, 1]} : vector<8x32xf32> to vector<8x8xf32>
    %101 = vector.extract_strided_slice %91 {offsets = [0, 8], sizes = [8, 8], strides = [1, 1]} : vector<8x32xf32> to vector<8x8xf32>
    %102 = vector.extract_strided_slice %91 {offsets = [0, 16], sizes = [8, 8], strides = [1, 1]} : vector<8x32xf32> to vector<8x8xf32>
    %103 = vector.extract_strided_slice %91 {offsets = [0, 24], sizes = [8, 8], strides = [1, 1]} : vector<8x32xf32> to vector<8x8xf32>
    %104 = vector.shape_cast %100 : vector<8x8xf32> to vector<1x8x8xf32>
    %105 = vector.shape_cast %101 : vector<8x8xf32> to vector<1x8x8xf32>
    %106 = vector.shape_cast %102 : vector<8x8xf32> to vector<1x8x8xf32>
    %107 = vector.shape_cast %103 : vector<8x8xf32> to vector<1x8x8xf32>
    %108 = tpu.concatenate %104, %105, %106, %107 in 0 : vector<1x8x8xf32>, vector<1x8x8xf32>, vector<1x8x8xf32>, vector<1x8x8xf32> -> vector<4x8x8xf32>
    %109 = arith.truncf %108 : vector<4x8x8xf32> to vector<4x8x8xbf16>
    %110 = vector.extract_strided_slice %98 {offsets = [0, 0], sizes = [8, 8], strides = [1, 1]} : vector<8x32xf32> to vector<8x8xf32>
    %111 = vector.extract_strided_slice %98 {offsets = [0, 8], sizes = [8, 8], strides = [1, 1]} : vector<8x32xf32> to vector<8x8xf32>
    %112 = vector.extract_strided_slice %98 {offsets = [0, 16], sizes = [8, 8], strides = [1, 1]} : vector<8x32xf32> to vector<8x8xf32>
    %113 = vector.extract_strided_slice %98 {offsets = [0, 24], sizes = [8, 8], strides = [1, 1]} : vector<8x32xf32> to vector<8x8xf32>
    %114 = vector.shape_cast %110 : vector<8x8xf32> to vector<1x8x8xf32>
    %115 = vector.shape_cast %111 : vector<8x8xf32> to vector<1x8x8xf32>
    %116 = vector.shape_cast %112 : vector<8x8xf32> to vector<1x8x8xf32>
    %117 = vector.shape_cast %113 : vector<8x8xf32> to vector<1x8x8xf32>
    %118 = tpu.concatenate %114, %115, %116, %117 in 0 : vector<1x8x8xf32>, vector<1x8x8xf32>, vector<1x8x8xf32>, vector<1x8x8xf32> -> vector<4x8x8xf32>
    %119 = arith.truncf %118 : vector<4x8x8xf32> to vector<4x8x8xbf16>
    %120 = vector.extract_strided_slice %99 {offsets = [0, 0], sizes = [8, 8], strides = [1, 1]} : vector<8x32xf32> to vector<8x8xf32>
    %121 = vector.extract_strided_slice %99 {offsets = [0, 8], sizes = [8, 8], strides = [1, 1]} : vector<8x32xf32> to vector<8x8xf32>
    %122 = vector.extract_strided_slice %99 {offsets = [0, 16], sizes = [8, 8], strides = [1, 1]} : vector<8x32xf32> to vector<8x8xf32>
    %123 = vector.extract_strided_slice %99 {offsets = [0, 24], sizes = [8, 8], strides = [1, 1]} : vector<8x32xf32> to vector<8x8xf32>
    %124 = vector.shape_cast %120 : vector<8x8xf32> to vector<1x8x8xf32>
    %125 = vector.shape_cast %121 : vector<8x8xf32> to vector<1x8x8xf32>
    %126 = vector.shape_cast %122 : vector<8x8xf32> to vector<1x8x8xf32>
    %127 = vector.shape_cast %123 : vector<8x8xf32> to vector<1x8x8xf32>
    %128 = tpu.concatenate %124, %125, %126, %127 in 0 : vector<1x8x8xf32>, vector<1x8x8xf32>, vector<1x8x8xf32>, vector<1x8x8xf32> -> vector<4x8x8xf32>
    %129 = arith.truncf %128 : vector<4x8x8xf32> to vector<4x8x8xbf16>
    "tpu.trace_start"() <{level = 10 : i32, message = "hqd,hkd->hqk"}> : () -> ()
    %cst_44 = arith.constant dense<0.000000e+00> : vector<4x8x8xf32>
    %130 = tpu.matmul %109, %119, %cst_44 {dimension_numbers = #tpu.dot_dimension_numbers<[2], [2], [1], [1], [0, 0, 0, 1, 1, 1], [0], [0]>} : vector<4x8x8xbf16>, vector<4x8x8xbf16>, vector<4x8x8xf32> -> vector<4x8x8xf32>
    "tpu.trace_stop"() : () -> ()
    %131 = vector.shape_cast %85 : vector<8x8xf32> to vector<1x8x8xf32>
    %132 = vector.broadcast %131 : vector<1x8x8xf32> to vector<4x8x8xf32>
    %133 = arith.addf %130, %132 : vector<4x8x8xf32>
    %cst_45 = arith.constant dense<0xFF800000> : vector<4x8xf32>
    %134 = vector.multi_reduction <maximumf>, %133, %cst_45 [2] : vector<4x8x8xf32> to vector<4x8xf32>
    %135 = vector.shape_cast %134 : vector<4x8xf32> to vector<4x8x1xf32>
    %136 = vector.broadcast %135 : vector<4x8x1xf32> to vector<4x8x8xf32>
    %137 = arith.subf %133, %136 : vector<4x8x8xf32>
    %138 = math.exp %137 : vector<4x8x8xf32>
    %cst_46 = arith.constant dense<0.000000e+00> : vector<4x8xf32>
    %139 = vector.multi_reduction <add>, %138, %cst_46 [2] : vector<4x8x8xf32> to vector<4x8xf32>
    %140 = vector.shape_cast %139 : vector<4x8xf32> to vector<4x8x1xf32>
    %141 = tpu.reciprocal %140 {approx = true} : vector<4x8x1xf32> -> vector<4x8x1xf32>
    %142 = vector.broadcast %141 : vector<4x8x1xf32> to vector<4x8x8xf32>
    %143 = arith.mulf %138, %142 : vector<4x8x8xf32>
    %144 = arith.truncf %143 : vector<4x8x8xf32> to vector<4x8x8xbf16>
    "tpu.trace_start"() <{level = 10 : i32, message = "hqk,hkd->hqd"}> : () -> ()
    %cst_47 = arith.constant dense<0.000000e+00> : vector<4x8x8xf32>
    %145 = tpu.matmul %144, %129, %cst_47 {dimension_numbers = #tpu.dot_dimension_numbers<[2], [1], [1], [2], [0, 0, 0, 1, 1, 2], [0], [0]>} : vector<4x8x8xbf16>, vector<4x8x8xbf16>, vector<4x8x8xf32> -> vector<4x8x8xf32>
    "tpu.trace_stop"() : () -> ()
    %146 = vector.extract_strided_slice %145 {offsets = [0, 0, 0], sizes = [1, 8, 8], strides = [1, 1, 1]} : vector<4x8x8xf32> to vector<1x8x8xf32>
    %147 = vector.shape_cast %146 : vector<1x8x8xf32> to vector<8x8xf32>
    %148 = vector.extract_strided_slice %145 {offsets = [1, 0, 0], sizes = [1, 8, 8], strides = [1, 1, 1]} : vector<4x8x8xf32> to vector<1x8x8xf32>
    %149 = vector.shape_cast %148 : vector<1x8x8xf32> to vector<8x8xf32>
    %150 = vector.extract_strided_slice %145 {offsets = [2, 0, 0], sizes = [1, 8, 8], strides = [1, 1, 1]} : vector<4x8x8xf32> to vector<1x8x8xf32>
    %151 = vector.shape_cast %150 : vector<1x8x8xf32> to vector<8x8xf32>
    %152 = vector.extract_strided_slice %145 {offsets = [3, 0, 0], sizes = [1, 8, 8], strides = [1, 1, 1]} : vector<4x8x8xf32> to vector<1x8x8xf32>
    %153 = vector.shape_cast %152 : vector<1x8x8xf32> to vector<8x8xf32>
    %154 = tpu.concatenate %147, %149, %151, %153 in 1 : vector<8x8xf32>, vector<8x8xf32>, vector<8x8xf32>, vector<8x8xf32> -> vector<8x32xf32>
    %155 = arith.truncf %154 : vector<8x32xf32> to vector<8x32xbf16>
    %c0_48 = arith.constant 0 : index
    %c0_49 = arith.constant 0 : index
    %156 = vector.load %arg17[%c0_48, %c0_49] : memref<32x32xbf16, #tpu.memory_space<vmem>>, vector<32x32xbf16>
    %cst_50 = arith.constant dense<0.000000e+00> : vector<8x32xf32>
    %157 = tpu.matmul %155, %156, %cst_50 {dimension_numbers = #tpu.dot_dimension_numbers<[1], [0], [0], [1], [0, 0, 1, 1], [], []>} : vector<8x32xbf16>, vector<32x32xbf16>, vector<8x32xf32> -> vector<8x32xf32>
    %c0_51 = arith.constant 0 : index
    %c0_52 = arith.constant 0 : index
    %158 = vector.load %arg18[%c0_51, %c0_52] : memref<1x32xf32, #tpu.memory_space<vmem>>, vector<1x32xf32>
    %159 = vector.broadcast %158 : vector<1x32xf32> to vector<8x32xf32>
    %160 = arith.addf %157, %159 : vector<8x32xf32>
    %c0_53 = arith.constant 0 : index
    %c0_54 = arith.constant 0 : index
    %c0_55 = arith.constant 0 : index
    %c0_56 = arith.constant 0 : index
    %161 = vector.load %arg27[%c0_53, %c0_54, %c0_55, %c0_56] : memref<1x4x8x8xf32, #tpu.memory_space<vmem>>, vector<1x4x8x8xf32>
    %162 = vector.shape_cast %161 : vector<1x4x8x8xf32> to vector<4x8x8xf32>
    %163 = vector.shape_cast %143 : vector<4x8x8xf32> to vector<1x4x8x8xf32>
    tpu.vector_store %arg27[%c0_53, %c0_54, %c0_55, %c0_56], %163 {strides = array<i32>} : memref<1x4x8x8xf32, #tpu.memory_space<vmem>>, vector<1x4x8x8xf32>,
    %164 = arith.truncf %160 : vector<8x32xf32> to vector<8x32xbf16>
    %c0_57 = arith.constant 0 : index
    %c0_58 = arith.constant 0 : index
    %165 = vector.load %arg19[%c0_57, %c0_58] : memref<32x64xbf16, #tpu.memory_space<vmem>>, vector<32x64xbf16>
    %cst_59 = arith.constant dense<0.000000e+00> : vector<8x64xf32>
    %166 = tpu.matmul %164, %165, %cst_59 {dimension_numbers = #tpu.dot_dimension_numbers<[1], [0], [0], [1], [0, 0, 1, 1], [], []>} : vector<8x32xbf16>, vector<32x64xbf16>, vector<8x64xf32> -> vector<8x64xf32>
    %c0_60 = arith.constant 0 : index
    %c0_61 = arith.constant 0 : index
    %167 = vector.load %arg20[%c0_60, %c0_61] : memref<1x64xf32, #tpu.memory_space<vmem>>, vector<1x64xf32>
    %168 = vector.broadcast %167 : vector<1x64xf32> to vector<8x64xf32>
    %169 = arith.addf %166, %168 : vector<8x64xf32>
    %cst_62 = arith.constant 0.000000e+00 : f32
    %170 = vector.broadcast %cst_62 : f32 to vector<8x64xf32>
    %171 = arith.maximumf %169, %170 : vector<8x64xf32>
    %172 = arith.truncf %171 : vector<8x64xf32> to vector<8x64xbf16>
    %c0_63 = arith.constant 0 : index
    %c0_64 = arith.constant 0 : index
    %173 = vector.load %arg21[%c0_63, %c0_64] : memref<64x32xbf16, #tpu.memory_space<vmem>>, vector<64x32xbf16>
    %cst_65 = arith.constant dense<0.000000e+00> : vector<8x32xf32>
    %174 = tpu.matmul %172, %173, %cst_65 {dimension_numbers = #tpu.dot_dimension_numbers<[1], [0], [0], [1], [0, 0, 1, 1], [], []>} : vector<8x64xbf16>, vector<64x32xbf16>, vector<8x32xf32> -> vector<8x32xf32>
    %c0_66 = arith.constant 0 : index
    %c0_67 = arith.constant 0 : index
    %175 = vector.load %arg22[%c0_66, %c0_67] : memref<1x32xf32, #tpu.memory_space<vmem>>, vector<1x32xf32>
    %176 = vector.broadcast %175 : vector<1x32xf32> to vector<8x32xf32>
    %177 = arith.addf %174, %176 : vector<8x32xf32>
    %178 = arith.addf %177, %160 : vector<8x32xf32>
    %cst_68 = arith.constant dense<0.000000e+00> : vector<8xf32>
    %179 = vector.multi_reduction <add>, %178, %cst_68 [1] : vector<8x32xf32> to vector<8xf32>
    %180 = vector.shape_cast %179 : vector<8xf32> to vector<8x1xf32>
    %cst_69 = arith.constant 3.200000e+01 : f32
    %181 = vector.broadcast %cst_69 : f32 to vector<8x1xf32>
    %182 = arith.divf %180, %181 : vector<8x1xf32>
    %183 = vector.broadcast %182 : vector<8x1xf32> to vector<8x32xf32>
    %184 = arith.subf %178, %183 : vector<8x32xf32>
    %185 = arith.mulf %184, %184 : vector<8x32xf32>
    %cst_70 = arith.constant dense<0.000000e+00> : vector<8xf32>
    %186 = vector.multi_reduction <add>, %185, %cst_70 [1] : vector<8x32xf32> to vector<8xf32>
    %187 = vector.shape_cast %186 : vector<8xf32> to vector<8x1xf32>
    %cst_71 = arith.constant 3.200000e+01 : f32
    %188 = vector.broadcast %cst_71 : f32 to vector<8x1xf32>
    %189 = arith.divf %187, %188 : vector<8x1xf32>
    %190 = vector.broadcast %182 : vector<8x1xf32> to vector<8x32xf32>
    %191 = arith.subf %178, %190 : vector<8x32xf32>
    %cst_72 = arith.constant 9.99999997E-7 : f32
    %192 = vector.broadcast %cst_72 : f32 to vector<8x1xf32>
    %193 = arith.addf %189, %192 : vector<8x1xf32>
    %194 = math.rsqrt %193 : vector<8x1xf32>
    %195 = vector.broadcast %194 : vector<8x1xf32> to vector<8x32xf32>
    %196 = arith.mulf %191, %195 : vector<8x32xf32>
    %c0_73 = arith.constant 0 : index
    %c0_74 = arith.constant 0 : index
    %197 = vector.load %arg23[%c0_73, %c0_74] : memref<1x32xf32, #tpu.memory_space<vmem>>, vector<1x32xf32>
    %198 = vector.broadcast %197 : vector<1x32xf32> to vector<8x32xf32>
    %199 = arith.mulf %196, %198 : vector<8x32xf32>
    %c0_75 = arith.constant 0 : index
    %c0_76 = arith.constant 0 : index
    %200 = vector.load %arg24[%c0_75, %c0_76] : memref<1x32xf32, #tpu.memory_space<vmem>>, vector<1x32xf32>
    %201 = vector.broadcast %200 : vector<1x32xf32> to vector<8x32xf32>
    %202 = arith.addf %199, %201 : vector<8x32xf32>
    %c0_77 = arith.constant 0 : index
    %c0_78 = arith.constant 0 : index
    %c0_79 = arith.constant 0 : index
    %203 = vector.load %arg25[%c0_77, %c0_78, %c0_79] : memref<1x8x32xf32, #tpu.memory_space<vmem>>, vector<1x8x32xf32>
    %204 = vector.shape_cast %203 : vector<1x8x32xf32> to vector<8x32xf32>
    %205 = vector.shape_cast %202 : vector<8x32xf32> to vector<1x8x32xf32>
    tpu.vector_store %arg25[%c0_77, %c0_78, %c0_79], %205 {strides = array<i32>} : memref<1x8x32xf32, #tpu.memory_space<vmem>>, vector<1x8x32xf32>,
    return
  }
  func.func @transform_0(%arg0: i32, %arg1: i32) -> (i32, i32, i32) {
    %c0_i32 = arith.constant 0 : i32
    %c0_i32_0 = arith.constant 0 : i32
    return %arg0, %arg1, %c0_i32 : i32, i32, i32
  }
  func.func @transform_1(%arg0: i32, %arg1: i32) -> (i32, i32, i32) {
    %c0_i32 = arith.constant 0 : i32
    %c0_i32_0 = arith.constant 0 : i32
    %c0_i32_1 = arith.constant 0 : i32
    return %arg0, %c0_i32, %c0_i32_0 : i32, i32, i32
  }
  func.func @transform_2(%arg0: i32, %arg1: i32) -> (i32, i32, i32) {
    %c0_i32 = arith.constant 0 : i32
    %c0_i32_0 = arith.constant 0 : i32
    %c0_i32_1 = arith.constant 0 : i32
    return %arg0, %c0_i32, %c0_i32_0 : i32, i32, i32
  }
  func.func @transform_3(%arg0: i32, %arg1: i32) -> (i32, i32) {
    %c0_i32 = arith.constant 0 : i32
    %c0_i32_0 = arith.constant 0 : i32
    return %arg1, %c0_i32 : i32, i32
  }
  func.func @transform_4(%arg0: i32, %arg1: i32) -> (i32, i32) {
    %c0_i32 = arith.constant 0 : i32
    %c0_i32_0 = arith.constant 0 : i32
    return %arg1, %c0_i32 : i32, i32
  }
  func.func @transform_5(%arg0: i32, %arg1: i32) -> (i32, i32) {
    %c0_i32 = arith.constant 0 : i32
    %c0_i32_0 = arith.constant 0 : i32
    %c0_i32_1 = arith.constant 0 : i32
    return %c0_i32, %c0_i32_0 : i32, i32
  }
  func.func @transform_6(%arg0: i32, %arg1: i32) -> (i32, i32) {
    %c0_i32 = arith.constant 0 : i32
    %c0_i32_0 = arith.constant 0 : i32
    %c0_i32_1 = arith.constant 0 : i32
    return %c0_i32, %c0_i32_0 : i32, i32
  }
  func.func @transform_7(%arg0: i32, %arg1: i32) -> (i32, i32) {
    %c0_i32 = arith.constant 0 : i32
    %c0_i32_0 = arith.constant 0 : i32
    %c0_i32_1 = arith.constant 0 : i32
    return %c0_i32, %c0_i32_0 : i32, i32
  }
  func.func @transform_8(%arg0: i32, %arg1: i32) -> (i32, i32) {
    %c0_i32 = arith.constant 0 : i32
    %c0_i32_0 = arith.constant 0 : i32
    %c0_i32_1 = arith.constant 0 : i32
    return %c0_i32, %c0_i32_0 : i32, i32
  }
  func.func @transform_9(%arg0: i32, %arg1: i32) -> (i32, i32) {
    %c0_i32 = arith.constant 0 : i32
    %c0_i32_0 = arith.constant 0 : i32
    %c0_i32_1 = arith.constant 0 : i32
    return %c0_i32, %c0_i32_0 : i32, i32
  }
  func.func @transform_10(%arg0: i32, %arg1: i32) -> (i32, i32) {
    %c0_i32 = arith.constant 0 : i32
    %c0_i32_0 = arith.constant 0 : i32
    %c0_i32_1 = arith.constant 0 : i32
    return %c0_i32, %c0_i32_0 : i32, i32
  }
  func.func @transform_11(%arg0: i32, %arg1: i32) -> (i32, i32) {
    %c0_i32 = arith.constant 0 : i32
    %c0_i32_0 = arith.constant 0 : i32
    %c0_i32_1 = arith.constant 0 : i32
    return %c0_i32, %c0_i32_0 : i32, i32
  }
  func.func @transform_12(%arg0: i32, %arg1: i32) -> (i32, i32) {
    %c0_i32 = arith.constant 0 : i32
    %c0_i32_0 = arith.constant 0 : i32
    %c0_i32_1 = arith.constant 0 : i32
    return %c0_i32, %c0_i32_0 : i32, i32
  }
  func.func @transform_13(%arg0: i32, %arg1: i32) -> (i32, i32) {
    %c0_i32 = arith.constant 0 : i32
    %c0_i32_0 = arith.constant 0 : i32
    %c0_i32_1 = arith.constant 0 : i32
    return %c0_i32, %c0_i32_0 : i32, i32
  }
  func.func @transform_14(%arg0: i32, %arg1: i32) -> (i32, i32) {
    %c0_i32 = arith.constant 0 : i32
    %c0_i32_0 = arith.constant 0 : i32
    %c0_i32_1 = arith.constant 0 : i32
    return %c0_i32, %c0_i32_0 : i32, i32
  }
  func.func @transform_15(%arg0: i32, %arg1: i32) -> (i32, i32) {
    %c0_i32 = arith.constant 0 : i32
    %c0_i32_0 = arith.constant 0 : i32
    %c0_i32_1 = arith.constant 0 : i32
    return %c0_i32, %c0_i32_0 : i32, i32
  }
  func.func @transform_16(%arg0: i32, %arg1: i32) -> (i32, i32) {
    %c0_i32 = arith.constant 0 : i32
    %c0_i32_0 = arith.constant 0 : i32
    %c0_i32_1 = arith.constant 0 : i32
    return %c0_i32, %c0_i32_0 : i32, i32
  }
  func.func @transform_17(%arg0: i32, %arg1: i32) -> (i32, i32) {
    %c0_i32 = arith.constant 0 : i32
    %c0_i32_0 = arith.constant 0 : i32
    %c0_i32_1 = arith.constant 0 : i32
    return %c0_i32, %c0_i32_0 : i32, i32
  }
  func.func @transform_18(%arg0: i32, %arg1: i32) -> (i32, i32) {
    %c0_i32 = arith.constant 0 : i32
    %c0_i32_0 = arith.constant 0 : i32
    %c0_i32_1 = arith.constant 0 : i32
    return %c0_i32, %c0_i32_0 : i32, i32
  }
  func.func @transform_19(%arg0: i32, %arg1: i32) -> (i32, i32) {
    %c0_i32 = arith.constant 0 : i32
    %c0_i32_0 = arith.constant 0 : i32
    %c0_i32_1 = arith.constant 0 : i32
    return %c0_i32, %c0_i32_0 : i32, i32
  }
  func.func @transform_20(%arg0: i32, %arg1: i32) -> (i32, i32) {
    %c0_i32 = arith.constant 0 : i32
    %c0_i32_0 = arith.constant 0 : i32
    %c0_i32_1 = arith.constant 0 : i32
    return %c0_i32, %c0_i32_0 : i32, i32
  }
  func.func @transform_21(%arg0: i32, %arg1: i32) -> (i32, i32) {
    %c0_i32 = arith.constant 0 : i32
    %c0_i32_0 = arith.constant 0 : i32
    %c0_i32_1 = arith.constant 0 : i32
    return %c0_i32, %c0_i32_0 : i32, i32
  }
  func.func @transform_22(%arg0: i32, %arg1: i32) -> (i32, i32) {
    %c0_i32 = arith.constant 0 : i32
    %c0_i32_0 = arith.constant 0 : i32
    %c0_i32_1 = arith.constant 0 : i32
    return %c0_i32, %c0_i32_0 : i32, i32
  }
  func.func @transform_23(%arg0: i32, %arg1: i32) -> (i32, i32, i32) {
    %c0_i32 = arith.constant 0 : i32
    %c0_i32_0 = arith.constant 0 : i32
    return %arg0, %arg1, %c0_i32 : i32, i32, i32
  }
  func.func @transform_24(%arg0: i32, %arg1: i32) -> (i32, i32, i32, i32) {
    %c0_i32 = arith.constant 0 : i32
    %c0_i32_0 = arith.constant 0 : i32
    %c0_i32_1 = arith.constant 0 : i32
    return %arg0, %c0_i32, %arg1, %c0_i32_0 : i32, i32, i32, i32
  }
  func.func @transform_25(%arg0: i32, %arg1: i32) -> (i32, i32, i32, i32) {
    %c0_i32 = arith.constant 0 : i32
    %c0_i32_0 = arith.constant 0 : i32
    %c0_i32_1 = arith.constant 0 : i32
    return %arg0, %c0_i32, %arg1, %c0_i32_0 : i32, i32, i32, i32
  }
}

</mosaic_0001>

<bundles_post_ra>
// kernel: tpu_custom_call.1
= control target key start
LH: loop header
LB: loop body
LE: loop exit
PB: predicated region body
PF: predicated region fallthrough
CT: control target
= control target key end

     0   :  { %s4913_s0 = inlined_call_operand.vmem [shape: f32[2,8,32], index: 0, kind: input, shape index: {}]   ;;  %s4914_s1 = inlined_call_operand.vmem [shape: f32[2,8,32], index: 1, kind: input, shape index: {}]   ;;  %s4915_s2 = inlined_call_operand.vmem [shape: f32[2,8,32], index: 2, kind: input, shape index: {}]   ;;  %s4916_s3 = inlined_call_operand.hbm [shape: f32[8,8], index: 3, kind: input, shape index: {}]   ;;  %s4917_s4 = inlined_call_operand.hbm [shape: f32[8,8], index: 4, kind: input, shape index: {}]   ;;  %s4918_s5 = inlined_call_operand.hbm [shape: bf16[32,32], index: 5, kind: input, shape index: {}]   ;;  %s4919_s6 = inlined_call_operand.hbm [shape: f32[1,32], index: 6, kind: input, shape index: {}]   ;;  %s4920_s7 = inlined_call_operand.hbm [shape: bf16[32,64], index: 7, kind: input, shape index: {}]   ;;  %s4921_s8 = inlined_call_operand.hbm [shape: f32[1,64], index: 8, kind: input, shape index: {}]   ;;  %s4922_s9 = inlined_call_operand.vmem [shape: bf16[32,32], index: 9, kind: input, shape index: {}]   ;;  %s4923_s10 = inlined_call_operand.hbm [shape: f32[1,32], index: 10, kind: input, shape index: {}]   ;;  %s4924_s11 = inlined_call_operand.hbm [shape: bf16[32,32], index: 11, kind: input, shape index: {}]   ;;  %s4925_s12 = inlined_call_operand.hbm [shape: f32[1,32], index: 12, kind: input, shape index: {}]   ;;  %s4926_s13 = inlined_call_operand.vmem [shape: bf16[32,64], index: 13, kind: input, shape index: {}]   ;;  %s4927_s14 = inlined_call_operand.hbm [shape: f32[1,64], index: 14, kind: input, shape index: {}]   ;;  %s4928_s15 = inlined_call_operand.hbm [shape: bf16[32,32], index: 15, kind: input, shape index: {}]   ;;  %s4929_s16 = inlined_call_operand.hbm [shape: f32[1,32], index: 16, kind: input, shape index: {}]   ;;  %s4930_s17 = inlined_call_operand.vmem [shape: bf16[32,64], index: 17, kind: input, shape index: {}]   ;;  %s4931_s18 = inlined_call_operand.vmem [shape: f32[1,64], index: 18, kind: input, shape index: {}]   ;;  %s4932_s19 = inlined_call_operand.vmem [shape: bf16[64,32], index: 19, kind: input, shape index: {}]   ;;  %s4933_s20 = inlined_call_operand.vmem [shape: f32[1,32], index: 20, kind: input, shape index: {}]   ;;  %s4934_s21 = inlined_call_operand.vmem [shape: f32[1,32], index: 21, kind: input, shape index: {}]   ;;  %s4935_s22 = inlined_call_operand.vmem [shape: f32[1,32], index: 22, kind: input, shape index: {}]   ;;  %s4936_s23 = inlined_call_operand.hbm [shape: f32[2,8,32], index: 23, kind: output, shape index: {0}]   ;;  %s4937_s24 = inlined_call_operand.hbm [shape: f32[2,4,8,8], index: 24, kind: output, shape index: {1}]   ;;  %s4938_s25 = inlined_call_operand.hbm [shape: f32[2,4,8,8], index: 25, kind: output, shape index: {2}]  }
   0x1   :  { %4973 = sst [smem:[#allocation43_spill]] %s4913_s0 }
   0x2   :  { %4974 = sst [smem:[#allocation44_spill]] %s4914_s1 }
   0x3   :  { %4975 = sst [smem:[#allocation45_spill]] %s4915_s2 }
   0x4   :  { %4976 = sst [smem:[#allocation46_spill]] %s4916_s3 }
   0x5   :  { %4977 = sst [smem:[#allocation47_spill]] %s4917_s4 }
   0x6   :  { %4978 = sst [smem:[#allocation48_spill]] %s4918_s5 }
   0x7   :  { %4979 = sst [smem:[#allocation49_spill]] %s4919_s6 }
   0x8   :  { %4980 = sst [smem:[#allocation50_spill]] %s4920_s7 }
   0x9   :  { %4981 = sst [smem:[#allocation51_spill]] %s4921_s8 }
   0xa   :  { %4982 = sst [smem:[#allocation52_spill]] %s4922_s9 }
   0xb   :  { %4983 = sst [smem:[#allocation53_spill]] %s4924_s11 }
   0xc   :  { %4984 = sst [smem:[#allocation54_spill]] %s4927_s14 }
   0xd   :  { %4985 = sst [smem:[#allocation55_spill]] %s4934_s21 }
   0xe   :  { %4986 = sst [smem:[#allocation56_spill]] %s4935_s22 }
   0xf   :  { %4987 = sst [smem:[#allocation57_spill]] %s4936_s23 }
  0x10   :  { %4988 = sst [smem:[#allocation58_spill]] %s4937_s24 }
  0x11   :  { %4989 = sst [smem:[#allocation59_spill]] %s4938_s25 }
  0x12   :  { %31 = vsyncpa [#allocation3], 0 }
  0x13   :  { %32 = vsyncpa [#allocation6], 0 }
  0x14   :  { %33 = vsyncpa [#allocation9], 0 }
  0x15   :  { %34 = vsyncpa [#allocation12], 0 }
  0x16   :  { %35 = vsyncpa [#allocation15], 0 }
  0x17   :  { %36 = vsyncpa [#allocation18], 0 }
  0x18   :  { %37 = vsyncpa [#allocation21], 0 }
  0x19   :  { %38 = vsyncpa [#allocation4], 0 }
  0x1a   :  { %40 = vsyncpa [#allocation4 + $0x1], 0 }
  0x1b   :  { %41 = vsyncpa [#allocation24], 0 }
  0x1c   :  { %43 = vsyncpa [#allocation24 + $0x1], 0  ;;  %s4133_s29 = smov 0   ;;  %s4135_s2 = smov 0  }
  0x1d   :  { %s4137_s6 = smov 0   ;;  %s4139_s30 = smov 0  }
  0x1e   :  { %s4141_s7 = smov 0   ;;  %s4143_s3 = smov 0  }
  0x1f LB: > { %4990 = sst [smem:[#allocation35_spill]] %s3954_s29  ;;  %s4164_s26 = sadd.s32 4294967295, %s3974_s3   ;;  %s3974_s3 = sphi %s4143_s3, %s49_s3   ;;  %s3970_s7 = sphi %s4141_s7, %s5052_s7   ;;  %s3966_s30 = sphi %s4139_s30, %s5051_s30   ;;  %s3962_s6 = sphi %s4137_s6, %s5050_s6   ;;  %s3958_s2 = sphi %s4135_s2, %s5054_s2   ;;  %s3954_s29 = sphi %s4133_s29, %s5053_s29  }
  0x20   : > { %4991 = sst [smem:[#allocation36_spill]] %s3962_s6  ;;  %s4947_s1 = sadd.s32 4294967294, %s3974_s3  }
  0x21   : > { %4992 = sst [smem:[#allocation37_spill]] %s3970_s7  ;;  %s61_s8 = sadd.s32 1, %s3970_s7 }
  0x22   : > { %4993 = sst [smem:[#allocation38_spill]] %s3974_s3  ;;  %s580_s27 = sadd.s32 1, %s3962_s6 }
  0x23   : > { %p63_p0 = scmp.ge.s32.totalorder %s61_s8, 2  ;;  %p590_p1 = scmp.ne.s32.totalorder %s3962_s6, %s3958_s2 }
  0x24   : > { %p591_p2 = scmp.eq.s32.totalorder %s4164_s26, 1  ;;  %p596_p3 = scmp.ne.s32.totalorder %s3958_s2, %s3954_s29 }
  0x25   : > { %s5056_s8 = smov (%p63_p0, %s61_s8), 0  ;;  %p597_p5 = scmp.eq.s32.totalorder %s4947_s1, 1 }
  0x26   : > { %4994 = sst [smem:[#allocation39_spill]] %s5056_s8  ;;  %p4176_p4 = por %p591_p2, %p590_p1 }
  0x27   : > { %s575_s28 = ssub.s32 %s3970_s7, %s5056_s8  ;;  %p2903_p6 = scmp.ge.s32.totalorder %s3974_s3, 1 }
  0x28   : > { %s4995_s4 = scalar_select %p4176_p4, 1, 0 }
  0x29   : > { %p578_p7 = scmp.eq.s32.totalorder %s575_s28, 0  ;;  %p4185_p8 = por %p597_p5, %p596_p3 }
  0x2a   : > { %4996 = sst [smem:[#allocation40_spill]] %s4995_s4  ;;  %p660_p9 = scmp.lt.s32.totalorder %s3974_s3, 3 }
  0x2b   : > { %s4997_s9 = scalar_select %p4185_p8, 1, 0 }
  0x2c   : > { %s4191_s5 = scalar_select %p578_p7, %s3962_s6, %s580_s27  }
  0x2d   : > { %4998 = sst [smem:[#allocation41_spill]] %s4997_s9  ;;  %p4193_p10 = pnand %p2903_p6, %p660_p9 }
  0x2e   : > { %4999 = sst [smem:[#allocation42_spill]] %s4191_s5  ;;  %p4956_p11 = scmp.eq.s32.totalorder %s4164_s26, 0 }
  0x2f   : > { %s5000_s0 = scalar_select %p4193_p10, 1, 0 }
  0x30   : > { %p3276_p12 = pneg %p4193_p10  ;;  %s3976_s29 = smov [#allocation5]  }
  0x31   : > { %s688_s1 = sshll.u32 %s3976_s29, 4  ;;  %s3977_s8 = smov [#allocation8]   ;;  %s689_s1 = int_to_ptr.vmem [resolvable:$true] %s688_s1 }
  0x32   : > { %s712_s28 = sshll.u32 %s3977_s8, 4  ;;  %p4202_p13 = pnand %p4956_p11, %p3276_p12  ;;  %s4206_s28 = int_to_ptr.vmem [resolvable:$true] %s712_s28 }
  0x33   : > { %s3978_s27 = smov [#allocation11]   ;;  %s5002_s3 = sld [smem:[#allocation47_spill]] }
  0x34   : > { %s4208_s5 = sshll.u32 %s3978_s27, 4  ;;  %p4218_p1 = pneg %p4202_p13  ;;  %s737_s5 = int_to_ptr.vmem [resolvable:$true] %s4208_s5 }
  0x39   : > { %s5003_s23 = smov %s5002_s3  ;;  %s3472_s22 = scalar_lea.hbm %s5002_s3, 128 }
  0x3a   : > { %p3473_p0 = scmp.ne.s32.totalorder %s5003_s23, %s3472_s22  ;;  %p3479_p5 = scmp.lt.u32.totalorder %s3472_s22, %s5003_s23 }
  0x3c   : > { %p3475_p2 = pnand %p4218_p1, %p3473_p0 }
  0x3e   : > { %p3476_p3 = pneg %p3475_p2 }
  0x40   : > { %p3481_p6 = pnand %p3479_p5, %p3476_p3 }
  0x42   : > { %3484 = shalt.err (!%p3481_p6)
}
  0x43   : > { %s3485_s6 = scalar_lea.vmem %s689_s1, 128  ;;  %p3493_p11 = scmp.lt.s32.totalorder %s689_s1, %s689_s1 }
  0x44   : > { %p3486_p7 = scmp.ne.s32.totalorder %s689_s1, %s3485_s6  ;;  %p3494_p8 = scmp.lt.s32.totalorder %s3485_s6, %s3485_s6 }
  0x46   : > { %p3488_p9 = pnand %p3486_p7, %p4218_p1  ;;  %p3495_p4 = por %p3494_p8, %p3493_p11 }
  0x48   : > { %p3489_p12 = pneg %p3488_p9 }
  0x4a   : > { %p3496_p10 = pnand %p3495_p4, %p3489_p12 }
  0x4c   : > { %3499 = shalt.err (!%p3496_p10)
}
  0x4d   : > { %3282 = dma.hbm_to_vmem [thread:$0]  (!%p4202_p13), %s5003_s23, 128, %s689_s1, [#allocation6]  }
  0x4e   : > { %s5005_s9 = sld [smem:[#allocation49_spill]] }
  0x54   : > { %s3500_s29 = scalar_lea.hbm %s5005_s9, 16 }
  0x55   : > { %p3501_p0 = scmp.ne.s32.totalorder %s5005_s9, %s3500_s29  ;;  %p3507_p4 = scmp.lt.u32.totalorder %s3500_s29, %s5005_s9 }
  0x57   : > { %p3503_p2 = pnand %p3501_p0, %p4218_p1 }
  0x59   : > { %p3504_p8 = pneg %p3503_p2 }
  0x5b   : > { %p3509_p10 = pnand %p3507_p4, %p3504_p8 }
  0x5d   : > { %3512 = shalt.err (!%p3509_p10)
}
  0x5e   : > { %s3513_s1 = scalar_lea.vmem %s4206_s28, 16  ;;  %s3520_s24 = scalar_lea.vmem %s4206_s28, 32 }
  0x5f   : > { %p3514_p11 = scmp.ne.s32.totalorder %s4206_s28, %s3513_s1  ;;  %p3521_p6 = scmp.lt.s32.totalorder %s4206_s28, %s4206_s28 }
  0x60   : > { %p3522_p7 = scmp.lt.s32.totalorder %s3520_s24, %s3513_s1 }
  0x61   : > { %p3516_p3 = pnand %p3514_p11, %p4218_p1 }
  0x62   : > { %p3523_p9 = por %p3522_p7, %p3521_p6 }
  0x63   : > { %p3517_p5 = pneg %p3516_p3 }
  0x65   : > { %p3524_p12 = pnand %p3523_p9, %p3517_p5 }
  0x67   : > { %3527 = shalt.err (!%p3524_p12)
}
  0x68   : > { %3288 = dma.hbm_to_vmem [thread:$0]  (!%p4202_p13), %s5005_s9, 16, %s4206_s28, [#allocation9]  }
  0x69   : > { %s5006_s25 = sld [smem:[#allocation51_spill]] }
  0x6f   : > { %s3528_s29 = scalar_lea.hbm %s5006_s25, 16 }
  0x70   : > { %p3529_p0 = scmp.ne.s32.totalorder %s5006_s25, %s3528_s29  ;;  %p3535_p4 = scmp.lt.u32.totalorder %s3528_s29, %s5006_s25 }
  0x72   : > { %p3531_p2 = pnand %p3529_p0, %p4218_p1 }
  0x74   : > { %p3532_p8 = pneg %p3531_p2 }
  0x76   : > { %p3537_p10 = pnand %p3535_p4, %p3532_p8 }
  0x78   : > { %3540 = shalt.err (!%p3537_p10)
}
  0x79   : > { %s3541_s4 = scalar_lea.vmem %s737_s5, 16  ;;  %s3548_s28 = scalar_lea.vmem %s737_s5, 32 }
  0x7a   : > { %p3542_p11 = scmp.ne.s32.totalorder %s737_s5, %s3541_s4  ;;  %p3549_p6 = scmp.lt.s32.totalorder %s737_s5, %s737_s5 }
  0x7b   : > { %p3550_p7 = scmp.lt.s32.totalorder %s3548_s28, %s3541_s4 }
  0x7c   : > { %p3544_p3 = pnand %p3542_p11, %p4218_p1 }
  0x7d   : > { %p3551_p9 = por %p3550_p7, %p3549_p6 }
  0x7e   : > { %p3545_p5 = pneg %p3544_p3 }
  0x80   : > { %p3552_p12 = pnand %p3551_p9, %p3545_p5 }
  0x82   : > { %3555 = shalt.err (!%p3552_p12)
}
  0x83   : > { %3294 = dma.hbm_to_vmem [thread:$0]  (!%p4202_p13), %s5006_s25, 16, %s737_s5, [#allocation12]  }
  0x84   : > { %s3979_s22 = smov [#allocation14]   ;;  %s3980_s27 = smov [#allocation17]  }
  0x85   : > { %s760_s29 = sshll.u32 %s3979_s22, 4  ;;  %s788_s6 = sshll.u32 %s3980_s27, 4  ;;  %s761_s29 = int_to_ptr.vmem [resolvable:$true] %s760_s29  ;;  %s4277_s6 = int_to_ptr.vmem [resolvable:$true] %s788_s6 }
  0x86   : > { %s5007_s11 = sld [smem:[#allocation53_spill]] }
  0x8c   : > { %s3556_s4 = scalar_lea.hbm %s5007_s11, 256 }
  0x8d   : > { %p3557_p0 = scmp.ne.s32.totalorder %s5007_s11, %s3556_s4  ;;  %p3563_p4 = scmp.lt.u32.totalorder %s3556_s4, %s5007_s11 }
  0x8f   : > { %p3559_p2 = pnand %p3557_p0, %p4218_p1 }
  0x91   : > { %p3560_p8 = pneg %p3559_p2 }
  0x93   : > { %p3565_p10 = pnand %p3563_p4, %p3560_p8 }
  0x95   : > { %3568 = shalt.err (!%p3565_p10)
}
  0x96   : > { %s3569_s3 = scalar_lea.vmem %s761_s29, 256  ;;  %p3577_p6 = scmp.lt.s32.totalorder %s761_s29, %s761_s29 }
  0x97   : > { %p3570_p11 = scmp.ne.s32.totalorder %s761_s29, %s3569_s3  ;;  %p3578_p7 = scmp.lt.s32.totalorder %s3569_s3, %s3569_s3 }
  0x99   : > { %p3572_p3 = pnand %p3570_p11, %p4218_p1  ;;  %p3579_p9 = por %p3578_p7, %p3577_p6 }
  0x9b   : > { %p3573_p5 = pneg %p3572_p3 }
  0x9d   : > { %p3580_p12 = pnand %p3579_p9, %p3573_p5 }
  0x9f   : > { %3583 = shalt.err (!%p3580_p12)
}
  0xa0   : > { %s4964_s9 = smov 64   ;;  %s4966_s22 = smov 4  }
  0xa1   : > { %3300 = dma.hbm_to_vmem [thread:$0]  (!%p4202_p13), %s5007_s11, 256, %s761_s29, [#allocation15], %s4964_s9, %s4964_s9, %s4966_s22  }
  0xa2   : > { %s5008_s14 = sld [smem:[#allocation54_spill]] }
  0xa8   : > { %s3584_s28 = scalar_lea.hbm %s5008_s14, 16 }
  0xa9   : > { %p3585_p0 = scmp.ne.s32.totalorder %s5008_s14, %s3584_s28  ;;  %p3591_p4 = scmp.lt.u32.totalorder %s3584_s28, %s5008_s14 }
  0xab   : > { %p3587_p2 = pnand %p3585_p0, %p4218_p1 }
  0xad   : > { %p3588_p8 = pneg %p3587_p2 }
  0xaf   : > { %p3593_p10 = pnand %p3591_p4, %p3588_p8 }
  0xb1   : > { %3596 = shalt.err (!%p3593_p10)
}
  0xb2   : > { %s3597_s29 = scalar_lea.vmem %s4277_s6, 16  ;;  %s3604_s27 = scalar_lea.vmem %s4277_s6, 32 }
  0xb3   : > { %p3598_p11 = scmp.ne.s32.totalorder %s4277_s6, %s3597_s29  ;;  %p3605_p6 = scmp.lt.s32.totalorder %s4277_s6, %s4277_s6 }
  0xb4   : > { %p3606_p7 = scmp.lt.s32.totalorder %s3604_s27, %s3597_s29 }
  0xb5   : > { %p3600_p3 = pnand %p3598_p11, %p4218_p1 }
  0xb6   : > { %p3607_p9 = por %p3606_p7, %p3605_p6 }
  0xb7   : > { %p3601_p5 = pneg %p3600_p3 }
  0xb9   : > { %p3608_p12 = pnand %p3607_p9, %p3601_p5 }
  0xbb   : > { %3611 = shalt.err (!%p3608_p12)
}
  0xbc   : > { %3306 = dma.hbm_to_vmem [thread:$0]  (!%p4202_p13), %s5008_s14, 16, %s4277_s6, [#allocation18]  }
  0xbd   : > { %s3983_s24 = smov [#allocation2]   ;;  %s5009_s5 = sld [smem:[#allocation46_spill]] }
  0xbe   : > { %s675_s4 = sshll.u32 %s3983_s24, 4  ;;  %s676_s4 = int_to_ptr.vmem [resolvable:$true] %s675_s4 }
  0xc3   : > { %s3612_s3 = scalar_lea.hbm %s5009_s5, 128 }
  0xc4   : > { %p3613_p0 = scmp.ne.s32.totalorder %s5009_s5, %s3612_s3  ;;  %p3619_p4 = scmp.lt.u32.totalorder %s3612_s3, %s5009_s5 }
  0xc6   : > { %p3615_p2 = pnand %p3613_p0, %p4218_p1 }
  0xc8   : > { %p3616_p8 = pneg %p3615_p2 }
  0xca   : > { %p3621_p10 = pnand %p3619_p4, %p3616_p8 }
  0xcc   : > { %3624 = shalt.err (!%p3621_p10)
}
  0xcd   : > { %s3625_s6 = scalar_lea.vmem %s676_s4, 128  ;;  %p3633_p6 = scmp.lt.s32.totalorder %s676_s4, %s676_s4 }
  0xce   : > { %p3626_p11 = scmp.ne.s32.totalorder %s676_s4, %s3625_s6  ;;  %p3634_p7 = scmp.lt.s32.totalorder %s3625_s6, %s3625_s6 }
  0xd0   : > { %p3628_p3 = pnand %p3626_p11, %p4218_p1  ;;  %p3635_p9 = por %p3634_p7, %p3633_p6 }
  0xd2   : > { %p3629_p5 = pneg %p3628_p3 }
  0xd4   : > { %p3636_p12 = pnand %p3635_p9, %p3629_p5 }
  0xd6   : > { %3639 = shalt.err (!%p3636_p12)
}
  0xd7   : > { %3279 = dma.hbm_to_vmem [thread:$0]  (!%p4202_p13), %s5009_s5, 128, %s676_s4, [#allocation3]  }
  0xd8   : > { %s3984_s22 = smov [#allocation7]   ;;  %s3985_s24 = smov [#allocation10]  }
  0xd9   : > { %s698_s1 = sshll.u32 %s3984_s22, 4  ;;  %s722_s28 = sshll.u32 %s3985_s24, 4  ;;  %s699_s1 = int_to_ptr.vmem [resolvable:$true] %s698_s1  ;;  %s723_s28 = int_to_ptr.vmem [resolvable:$true] %s722_s28 }
  0xda   : > { %s5010_s29 = sld [smem:[#allocation48_spill]] }
  0xe0   : > { %s5011_s27 = smov %s5010_s29  ;;  %s3640_s11 = scalar_lea.hbm %s5010_s29, 256 }
  0xe1   : > { %p3641_p0 = scmp.ne.s32.totalorder %s5011_s27, %s3640_s11  ;;  %p3647_p4 = scmp.lt.u32.totalorder %s3640_s11, %s5011_s27 }
  0xe3   : > { %p3643_p2 = pnand %p3641_p0, %p4218_p1 }
  0xe5   : > { %p3644_p8 = pneg %p3643_p2 }
  0xe7   : > { %p3649_p10 = pnand %p3647_p4, %p3644_p8 }
  0xe9   : > { %3652 = shalt.err (!%p3649_p10)
}
  0xea   : > { %s3653_s4 = scalar_lea.vmem %s699_s1, 256  ;;  %p3661_p6 = scmp.lt.s32.totalorder %s699_s1, %s699_s1 }
  0xeb   : > { %p3654_p11 = scmp.ne.s32.totalorder %s699_s1, %s3653_s4  ;;  %p3662_p7 = scmp.lt.s32.totalorder %s3653_s4, %s3653_s4 }
  0xed   : > { %p3656_p3 = pnand %p3654_p11, %p4218_p1  ;;  %p3663_p9 = por %p3662_p7, %p3661_p6 }
  0xef   : > { %p3657_p5 = pneg %p3656_p3 }
  0xf1   : > { %p3664_p12 = pnand %p3663_p9, %p3657_p5 }
  0xf3   : > { %3667 = shalt.err (!%p3664_p12)
}
  0xf4   : > { %s5012_s14 = smov 4   ;;  %s5013_s23 = smov 64  }
  0xf5   : > { %3285 = dma.hbm_to_vmem [thread:$0]  (!%p4202_p13), %s5011_s27, 256, %s699_s1, [#allocation6], %s5013_s23, %s5013_s23, %s5012_s14  }
  0xf6   : > { %s5014_s21 = sld [smem:[#allocation50_spill]] }
  0xfc   : > { %s3668_s3 = scalar_lea.hbm %s5014_s21, 256 }
  0xfd   : > { %p3669_p0 = scmp.ne.s32.totalorder %s5014_s21, %s3668_s3  ;;  %p3675_p4 = scmp.lt.u32.totalorder %s3668_s3, %s5014_s21 }
  0xff   : > { %p3671_p2 = pnand %p3669_p0, %p4218_p1 }
 0x101   : > { %p3672_p8 = pneg %p3671_p2 }
 0x103   : > { %p3677_p10 = pnand %p3675_p4, %p3672_p8 }
 0x105   : > { %3680 = shalt.err (!%p3677_p10)
}
 0x106   : > { %s3681_s25 = scalar_lea.vmem %s723_s28, 256  ;;  %p3689_p6 = scmp.lt.s32.totalorder %s723_s28, %s723_s28 }
 0x107   : > { %p3682_p11 = scmp.ne.s32.totalorder %s723_s28, %s3681_s25  ;;  %p3690_p7 = scmp.lt.s32.totalorder %s3681_s25, %s3681_s25 }
 0x109   : > { %p3684_p3 = pnand %p3682_p11, %p4218_p1  ;;  %p3691_p9 = por %p3690_p7, %p3689_p6 }
 0x10b   : > { %p3685_p5 = pneg %p3684_p3 }
 0x10d   : > { %p3692_p12 = pnand %p3691_p9, %p3685_p5 }
 0x10f   : > { %3695 = shalt.err (!%p3692_p12)
}
 0x110   : > { %3291 = dma.hbm_to_vmem [thread:$0]  (!%p4202_p13), %s5014_s21, 256, %s723_s28, [#allocation9], %s5013_s23, %s5013_s23, %s5012_s14  }
 0x111   : > { %s3986_s22 = smov [#allocation13]   ;;  %s3987_s3 = smov [#allocation16]  }
 0x112   : > { %s750_s24 = sshll.u32 %s3986_s22, 4  ;;  %s774_s29 = sshll.u32 %s3987_s3, 4  ;;  %s751_s24 = int_to_ptr.vmem [resolvable:$true] %s750_s24  ;;  %s775_s29 = int_to_ptr.vmem [resolvable:$true] %s774_s29 }
 0x113   : > { %s3696_s4 = scalar_lea.hbm %s4923_s10, 16 }
 0x114   : > { %p3697_p0 = scmp.ne.s32.totalorder %s4923_s10, %s3696_s4  ;;  %p3703_p4 = scmp.lt.u32.totalorder %s3696_s4, %s4923_s10 }
 0x116   : > { %p3699_p2 = pnand %p3697_p0, %p4218_p1 }
 0x118   : > { %p3700_p8 = pneg %p3699_p2 }
 0x11a   : > { %p3705_p10 = pnand %p3703_p4, %p3700_p8 }
 0x11c   : > { %3708 = shalt.err (!%p3705_p10)
}
 0x11d   : > { %s3709_s28 = scalar_lea.vmem %s751_s24, 16  ;;  %s3716_s11 = scalar_lea.vmem %s751_s24, 32 }
 0x11e   : > { %p3710_p11 = scmp.ne.s32.totalorder %s751_s24, %s3709_s28  ;;  %p3717_p6 = scmp.lt.s32.totalorder %s751_s24, %s751_s24 }
 0x11f   : > { %p3718_p7 = scmp.lt.s32.totalorder %s3716_s11, %s3709_s28 }
 0x120   : > { %p3712_p3 = pnand %p3710_p11, %p4218_p1 }
 0x121   : > { %p3719_p9 = por %p3718_p7, %p3717_p6 }
 0x122   : > { %p3713_p5 = pneg %p3712_p3 }
 0x124   : > { %p3720_p12 = pnand %p3719_p9, %p3713_p5 }
 0x126   : > { %3723 = shalt.err (!%p3720_p12)
}
 0x127   : > { %3297 = dma.hbm_to_vmem [thread:$0]  (!%p4202_p13), %s4923_s10, 16, %s751_s24, [#allocation12]  }
 0x128   : > { %s3724_s6 = scalar_lea.hbm %s4925_s12, 16 }
 0x129   : > { %p3725_p0 = scmp.ne.s32.totalorder %s4925_s12, %s3724_s6  ;;  %p3731_p4 = scmp.lt.u32.totalorder %s3724_s6, %s4925_s12 }
 0x12b   : > { %p3727_p2 = pnand %p3725_p0, %p4218_p1 }
 0x12d   : > { %p3728_p8 = pneg %p3727_p2 }
 0x12f   : > { %p3733_p10 = pnand %p3731_p4, %p3728_p8 }
 0x131   : > { %3736 = shalt.err (!%p3733_p10)
}
 0x132   : > { %s3737_s28 = scalar_lea.vmem %s775_s29, 16  ;;  %s3744_s24 = scalar_lea.vmem %s775_s29, 32 }
 0x133   : > { %p3738_p11 = scmp.ne.s32.totalorder %s775_s29, %s3737_s28  ;;  %p3745_p6 = scmp.lt.s32.totalorder %s775_s29, %s775_s29 }
 0x134   : > { %p3746_p7 = scmp.lt.s32.totalorder %s3744_s24, %s3737_s28 }
 0x135   : > { %p3740_p3 = pnand %p3738_p11, %p4218_p1 }
 0x136   : > { %p3747_p9 = por %p3746_p7, %p3745_p6 }
 0x137   : > { %p3741_p5 = pneg %p3740_p3 }
 0x139   : > { %p3748_p12 = pnand %p3747_p9, %p3741_p5 }
 0x13b   : > { %3751 = shalt.err (!%p3748_p12)
}
 0x13c   : > { %3303 = dma.hbm_to_vmem [thread:$0]  (!%p4202_p13), %s4925_s12, 16, %s775_s29, [#allocation15]  }
 0x13d   : > { %s3988_s22 = smov [#allocation19]   ;;  %s3989_s3 = smov [#allocation20]  }
 0x13e   : > { %s798_s27 = sshll.u32 %s3988_s22, 4  ;;  %s812_s6 = sshll.u32 %s3989_s3, 4  ;;  %s799_s27 = int_to_ptr.vmem [resolvable:$true] %s798_s27  ;;  %s813_s6 = int_to_ptr.vmem [resolvable:$true] %s812_s6 }
 0x13f   : > { %s3752_s25 = scalar_lea.hbm %s4928_s15, 256 }
 0x140   : > { %p3753_p0 = scmp.ne.s32.totalorder %s4928_s15, %s3752_s25  ;;  %p3759_p4 = scmp.lt.u32.totalorder %s3752_s25, %s4928_s15 }
 0x142   : > { %p3755_p2 = pnand %p3753_p0, %p4218_p1 }
 0x144   : > { %p3756_p8 = pneg %p3755_p2 }
 0x146   : > { %p3761_p10 = pnand %p3759_p4, %p3756_p8 }
 0x148   : > { %3764 = shalt.err (!%p3761_p10)
}
 0x149   : > { %s3765_s29 = scalar_lea.vmem %s799_s27, 256  ;;  %p3773_p6 = scmp.lt.s32.totalorder %s799_s27, %s799_s27 }
 0x14a   : > { %p3766_p11 = scmp.ne.s32.totalorder %s799_s27, %s3765_s29  ;;  %p3774_p7 = scmp.lt.s32.totalorder %s3765_s29, %s3765_s29 }
 0x14c   : > { %p3768_p3 = pnand %p3766_p11, %p4218_p1  ;;  %p3775_p9 = por %p3774_p7, %p3773_p6 }
 0x14e   : > { %p3769_p5 = pneg %p3768_p3 }
 0x150   : > { %p3776_p12 = pnand %p3775_p9, %p3769_p5 }
 0x152   : > { %3779 = shalt.err (!%p3776_p12)
}
 0x153   : > { %3309 = dma.hbm_to_vmem [thread:$0]  (!%p4202_p13), %s4928_s15, 256, %s799_s27, [#allocation18], %s5013_s23, %s5013_s23, %s5012_s14  }
 0x154   : > { %s3780_s4 = scalar_lea.hbm %s4929_s16, 16 }
 0x155   : > { %p3781_p0 = scmp.ne.s32.totalorder %s4929_s16, %s3780_s4  ;;  %p3787_p4 = scmp.lt.u32.totalorder %s3780_s4, %s4929_s16 }
 0x157   : > { %p3783_p2 = pnand %p3781_p0, %p4218_p1 }
 0x159   : > { %p3784_p8 = pneg %p3783_p2 }
 0x15b   : > { %p3789_p10 = pnand %p3787_p4, %p3784_p8 }
 0x15d   : > { %3792 = shalt.err (!%p3789_p10)
}
 0x15e   : > { %s3793_s11 = scalar_lea.vmem %s813_s6, 16  ;;  %s3800_s14 = scalar_lea.vmem %s813_s6, 32 }
 0x15f   : > { %p3794_p11 = scmp.ne.s32.totalorder %s813_s6, %s3793_s11  ;;  %p3801_p6 = scmp.lt.s32.totalorder %s813_s6, %s813_s6 }
 0x160   : > { %p3802_p7 = scmp.lt.s32.totalorder %s3800_s14, %s3793_s11 }
 0x161   : > { %p3796_p3 = pnand %p3794_p11, %p4218_p1 }
 0x162   : > { %p3803_p9 = por %p3802_p7, %p3801_p6 }
 0x163   : > { %p3797_p5 = pneg %p3796_p3 }
 0x165   : > { %p3804_p12 = pnand %p3803_p9, %p3797_p5 }
 0x167   : > { %3807 = shalt.err (!%p3804_p12)
}
 0x168   : > { %3312 = dma.hbm_to_vmem [thread:$0]  (!%p4202_p13), %s4929_s16, 16, %s813_s6, [#allocation21]  }
 0x169   : > { %p5015_p0 = scmp.ne.s32.totalorder %s5000_s0, 0 }
 0x16a   : > { %p5016_p2 = scmp.eq.s32.totalorder (!%p5015_p0), %s4164_s26, 0 }
 0x16b   : > { %867 = sbr.rel (%p5015_p0) target bundleno = 4002 (0xfa2), region = 112 }
 0x172   : > { %3917 = dma.done.wait (%p5016_p2), [#allocation3], 128   ;;  %p5017_p1 = pmov %p5016_p2 }
 0x174   : > { %3919 = vsyncadd (%p5017_p1), [#allocation3], 4294967168  ;;  %p5018_p8 = pmov %p5017_p1 }
 0x175   : > { %p5019_p4 = pmov %p5017_p1 }
 0x176   : > { %3921 = dma.done.wait (%p5018_p8), [#allocation6], 384  }
 0x177   : > { %3923 = vsyncadd (%p5019_p4), [#allocation6], 4294966912  ;;  %p5020_p10 = pmov %p5017_p1 }
 0x178   : > { %p5021_p13 = pmov %p5017_p1 }
 0x179   : > { %3925 = dma.done.wait (%p5020_p10), [#allocation9], 272  }
 0x17a   : > { %3927 = vsyncadd (%p5021_p13), [#allocation9], 4294967024  ;;  %p5022_p11 = pmov %p5017_p1 }
 0x17b   : > { %p5023_p3 = pmov %p5017_p1 }
 0x17c   : > { %3929 = dma.done.wait (%p5022_p11), [#allocation12], 32  }
 0x17d   : > { %3931 = vsyncadd (%p5023_p3), [#allocation12], 4294967264  ;;  %p5024_p5 = pmov %p5017_p1 }
 0x17e   : > { %p5025_p6 = pmov %p5017_p1 }
 0x17f   : > { %3933 = dma.done.wait (%p5024_p5), [#allocation15], 272  }
 0x180   : > { %3935 = vsyncadd (%p5025_p6), [#allocation15], 4294967024  ;;  %p5026_p7 = pmov %p5017_p1 }
 0x181   : > { %p5027_p9 = pmov %p5017_p1 }
 0x182   : > { %3937 = dma.done.wait (%p5026_p7), [#allocation18], 272  }
 0x183   : > { %3939 = vsyncadd (%p5027_p9), [#allocation18], 4294967024  ;;  %p5028_p12 = pmov %p5017_p1 }
 0x184   : > { %p5029_p0 = pmov %p5017_p1 }
 0x185   : > { %3941 = dma.done.wait (%p5028_p12), [#allocation21], 16  }
 0x186   : > { %3943 = vsyncadd (%p5029_p0), [#allocation21], 4294967280  ;;  %p999_p2 = scmp.lt.s32.totalorder %s3966_s30, 1  ;;  %v3990_v0 = vmov 0.0   ;;  %vm3991_vm0 = vmmov 0   ;;  %v3420_v1 = vld [vmem:[#allocation7] sm:$0xff]  }
 0x187   : > { %3058 = vmatprep.subr.bf16.mxu0 %v3990_v0  ;;  %3066 = vmatprep.subr.bf16.mxu1 %v3990_v0  ;;  %v3421_v2 = vld [vmem:[#allocation10] sm:$0xff]   ;;  %s5030_s29 = sld [smem:[#allocation43_spill]]  ;;  %s5031_s9 = sld [smem:[#allocation44_spill]]  ;;  %v3422_v3 = vld [vmem:[#allocation7 + $0x8] sm:$0xff]   ;;  %v3423_v4 = vld [vmem:[#allocation10 + $0x8] sm:$0xff]   ;;  %vm1043_vm1 = vcmask 261120  }
 0x188   : > { %3062 = vmatprep.mubr.msk.bf16.mxu0 %vm3991_vm0, %v3990_v0  ;;  %3070 = vmatprep.mubr.msk.bf16.mxu1 %vm3991_vm0, %v3990_v0  ;;  %s1000_s7 = scalar_select %p999_p2, %s3966_s30, 1  ;;  %v2936_v9 = vld [vmem:[#allocation8] ss:$0 sm:$0xff]  ;;  %v2940_v10 = vld [vmem:[#allocation11] ss:$0 sm:$0xff]  ;;  %vm1182_vm2 = vcmask 64512  }
 0x189   : > { %3059 = vmatpush3.bf16.msra.mxu0 %v3420_v1  ;;  %3067 = vmatpush3.bf16.msra.mxu1 %v3421_v2  ;;  %s3992_s25 = smov 120   ;;  %s3993_s1 = smov 104   ;;  %v1018_v39 = vld [vmem:[#allocation2] sm:$0xff]  ;;  %vm1421_vm3 = vcmask 1043456   ;;  %vm1625_vm4 = vcmask 130048   ;;  %vm1627_vm5 = vcmask 195584  }
 0x18a   : > { %s4497_s0 = sshll.u32 %s1000_s7, 3  ;;  %3060 = vmatprep.subr.bf16.mxu0 %v3990_v0  ;;  %3068 = vmatprep.subr.bf16.mxu1 %v3990_v0  ;;  %s3994_s28 = smov 112   ;;  %vm2485_vm6 = vcmask 523264  }
 0x18b   : > { %s3995_s24 = smov 96   ;;  %s4574_s11 = sand.u32 1, %s3958_s2  }
 0x18c   : > { %s2931_s14 = sshll.u32 %s4574_s11, 5  ;;  %s5032_s8 = sld [smem:[#allocation52_spill]] }
 0x18d   : > { %s1005_s5 = scalar_lea.vmem %s5030_s29, %s4497_s0  ;;  %s1009_s4 = scalar_lea.vmem %s5031_s9, %s4497_s0  ;;  %3061 = vmatpush3.bf16.msra.mxu0 %v3422_v3  ;;  %3069 = vmatpush3.bf16.msra.mxu1 %v3423_v4 }
 0x18e   : > { %v1015_v5 = vld [vmem:[%s1005_s5] sm:$0xff]  ;;  %3074 = vmatprep.subr.bf16.mxu0 %v3990_v0  ;;  %3080 = vmatprep.subr.bf16.mxu1 %v3990_v0  ;;  %s4579_s23 = scalar_lea.vmem [#allocation23], %s2931_s14  ;;  %s3996_s5 = smov 8  }
 0x18f   : > { %v1016_v6 = vld [vmem:[%s1009_s4] sm:$0xff]  ;;  %v1019_v7 = vpack.c.bf16 %v1015_v5, %v1015_v5  ;;  %s4972_s22 = smov 16   ;;  %s4971_s3 = smov 24  }
 0x190   : > { %v1087_v8 = vpack.c.bf16 %v1016_v6, %v1016_v6  ;;  %s5033_s6 = sld [smem:[#allocation45_spill]]  ;;  %s2998_s9 = sshll.u32 %s3966_s30, 9 }
 0x191   : > { %3063 = vmatmul.mubr.msk.bf16.vlgmr.msra.gmra.mrb[0].mxu0 %vm1043_vm1, %v1019_v7  ;;  %s5037_s7 = sld [smem:[#allocation58_spill]] }
 0x192   : > { %3071 = vmatmul.mubr.msk.bf16.vlgmr.msra.gmra.mrb[0].mxu1 %vm1043_vm1, %v1087_v8  ;;  %3076 = vmatprep.mubr.msk.bf16.mxu0 %vm3991_vm0, %v3990_v0 }
 0x193   : > { %3082 = vmatprep.mubr.msk.bf16.mxu1 %vm3991_vm0, %v3990_v0 }
 0x196   : > { %s1013_s29 = scalar_lea.vmem %s5033_s6, %s4497_s0  ;;  %s4704_s0 = scalar_lea.vmem [#allocation25], %s2931_s14 }
 0x197   : > { %s4783_s6 = scalar_lea.hbm %s5037_s7, %s2998_s9 }
 0x264   : > { %v1081_v11 = vpop.f32.mrb[0].mxu0 }
 0x265   : > { %v1082_v12 = vadd.f32 %v2936_v9, %v1081_v11  ;;  %v1148_v13 = vpop.f32.mrb[0].mxu1  ;;  %v3064_v14 = vpop.f32.mrb[1].mxu0 }
 0x266   : > { %v1149_v15 = vadd.f32 %v2940_v10, %v1148_v13  ;;  %v3072_v16 = vpop.f32.mrb[1].mxu1  ;;  %v1084_v17 = vpop.f32.mrb[2].mxu0 }
 0x267   : > { %v1151_v18 = vpop.f32.mrb[2].mxu1  ;;  %1155 = vrot.lane.b32.xlu1 %v1082_v12, %s3992_s25  ;;  %v3065_v19 = vpop.f32.mrb[3].mxu0  ;;  %v1164_v23 = vpack.c.bf16 %v1082_v12, %v1082_v12 }
 0x268   : > { %1169 = vrot.lane.b32.xlu0 %v1149_v15, %s3992_s25  ;;  %v3073_v20 = vpop.f32.mrb[3].mxu1  ;;  %v4519_v21 = vpack.c.bf16 %v1149_v15, %v1149_v15 }
 0x26a   : > { %v1187_v22 = vsel %vm1182_vm2, %v4519_v21, 0 }
 0x26b   : > { %3075 = vmatpush3.bf16.xpose.msra.mxu0 %v1187_v22  ;;  %1175 = vrot.lane.b32.xlu1 %v1149_v15, %s3993_s1 }
 0x26c   : > { %1172 = vrot.lane.b32.xlu0 %v1149_v15, %s3994_s28  ;;  %3086 = vmatprep.subr.bf16.mxu0 %v3990_v0 }
 0x26f   : > { %1161 = vrot.lane.b32.xlu1 %v1082_v12, %s3993_s1 }
 0x270   : > { %1158 = vrot.lane.b32.xlu0 %v1082_v12, %s3994_s28 }
 0x272   : > { %3077 = vmatmul.mubr.msk.bf16.vlgmr.msra.gmra.mrb[4].mxu0 %vm1182_vm2, %v1164_v23 }
 0x273   : > { %3088 = vmatprep.mubr.msk.bf16.mxu0 %vm3991_vm0, %v3990_v0 }
 0x2d9   : > { %v1156_v24 = vpop.permute.xlu1 %1155 }
 0x2da   : > { %v1170_v25 = vpop.permute.xlu0 %1169  ;;  %v1165_v33 = vpack.c.bf16 %v1156_v24, %v1156_v24 }
 0x2db   : > { %v4531_v26 = vpack.c.bf16 %v1170_v25, %v1170_v25 }
 0x2dd   : > { %v1233_v27 = vsel %vm1182_vm2, %v4531_v26, 0  ;;  %v1176_v29 = vpop.permute.xlu1 %1175 }
 0x2de   : > { %3081 = vmatpush3.bf16.xpose.msra.mxu1 %v1233_v27  ;;  %v1173_v28 = vpop.permute.xlu0 %1172  ;;  %v4540_v32 = vpack.c.bf16 %v1176_v29, %v1176_v29 }
 0x2df   : > { %v4535_v30 = vpack.c.bf16 %v1173_v28, %v1173_v28  ;;  %3092 = vmatprep.subr.bf16.mxu1 %v3990_v0 }
 0x2e0   : > { %v1325_v35 = vsel %vm1182_vm2, %v4540_v32, 0 }
 0x2e1   : > { %v1279_v31 = vsel %vm1182_vm2, %v4535_v30, 0  ;;  %v1162_v37 = vpop.permute.xlu1 %1161 }
 0x2e2   : > { %3087 = vmatpush3.bf16.xpose.msra.mxu0 %v1279_v31  ;;  %v1159_v34 = vpop.permute.xlu0 %1158  ;;  %v1167_v38 = vpack.c.bf16 %v1162_v37, %v1162_v37 }
 0x2e3   : > { %3098 = vmatprep.subr.bf16.mxu0 %v3990_v0  ;;  %v1166_v36 = vpack.c.bf16 %v1159_v34, %v1159_v34 }
 0x2e5   : > { %3083 = vmatmul.mubr.msk.bf16.vlgmr.msra.gmra.mrb[4].mxu1 %vm1182_vm2, %v1165_v33 }
 0x2e6   : > { %3093 = vmatpush3.bf16.xpose.msra.mxu1 %v1325_v35  ;;  %3094 = vmatprep.mubr.msk.bf16.mxu1 %vm3991_vm0, %v3990_v0 }
 0x2e7   : > { %3104 = vmatprep.subr.bf16.mxu1 %v3990_v0 }
 0x2e9   : > { %3089 = vmatmul.mubr.msk.bf16.vlgmr.msra.gmra.mrb[8].mxu0 %vm1182_vm2, %v1166_v36 }
 0x2ea   : > { %3100 = vmatprep.mubr.msk.bf16.mxu0 %vm3991_vm0, %v3990_v0 }
 0x2ed   : > { %3095 = vmatmul.mubr.msk.bf16.vlgmr.msra.gmra.mrb[8].mxu1 %vm1182_vm2, %v1167_v38 }
 0x2ee   : > { %3106 = vmatprep.mubr.msk.bf16.mxu1 %vm3991_vm0, %v3990_v0 }
 0x345   : > { %v1223_v40 = vpop.f32.mrb[4].mxu0 }
 0x346   : > { %v1224_v41 = vadd.f32 %v1223_v40, %v1018_v39  ;;  %v3078_v42 = vpop.f32.mrb[5].mxu0 }
 0x347   : > { %v1226_v43 = vpop.f32.mrb[6].mxu0 }
 0x348   : > { %v3079_v44 = vpop.f32.mrb[7].mxu0  ;;  %v1367_v45 = vsel %vm1182_vm2, %v1224_v41, -inf }
 0x349   : > { %1368 = vmax.xlane.f32.xlu0 %v1367_v45 }
 0x3b8   : > { %v1269_v46 = vpop.f32.mrb[4].mxu1 }
 0x3b9   : > { %v1270_v47 = vadd.f32 %v1269_v46, %v1018_v39  ;;  %v3084_v48 = vpop.f32.mrb[5].mxu1 }
 0x3ba   : > { %v1272_v49 = vpop.f32.mrb[6].mxu1 }
 0x3bb   : > { %v3085_v50 = vpop.f32.mrb[7].mxu1  ;;  %v1370_v51 = vsel %vm1182_vm2, %v1270_v47, -inf  ;;  %v3424_v49 = vld [vmem:[%s5032_s8] sm:$0xff]  }
 0x3bc   : > { %1371 = vmax.xlane.f32.xlu1 %v1370_v51  ;;  %v1315_v52 = vpop.f32.mrb[8].mxu0  ;;  %v3425_v50 = vld [vmem:[%s5032_s8 + $0x8] sm:$0xff]  }
 0x3bd   : > { %v1316_v53 = vadd.f32 %v1315_v52, %v1018_v39  ;;  %v3090_v54 = vpop.f32.mrb[9].mxu0 }
 0x3be   : > { %v1318_v55 = vpop.f32.mrb[10].mxu0 }
 0x3bf   : > { %v3091_v56 = vpop.f32.mrb[11].mxu0  ;;  %v1373_v57 = vsel %vm1182_vm2, %v1316_v53, -inf }
 0x3c0   : > { %v1361_v58 = vpop.f32.mrb[8].mxu1  ;;  %1374 = vmax.xlane.f32.xlu0 %v1373_v57 }
 0x3c1   : > { %v1362_v59 = vadd.f32 %v1361_v58, %v1018_v39  ;;  %v3096_v60 = vpop.f32.mrb[9].mxu1 }
 0x3c2   : > { %v1364_v61 = vpop.f32.mrb[10].mxu1 }
 0x3c3   : > { %v3097_v62 = vpop.f32.mrb[11].mxu1  ;;  %v1376_v63 = vsel %vm1182_vm2, %v1362_v59, -inf }
 0x3c4   : > { %1377 = vmax.xlane.f32.xlu0 %v1376_v63 }
 0x3cd   : > { %1416 = vrot.lane.b32.xlu1 %v4519_v21, %s3995_s24 }
 0x3d6   : > { %v1369_v1 = vpop.xlane.xlu0 %1368 }
 0x3d7   : > { %v1379_v2 = vsub.f32 %v1224_v41, %v1369_v1 }
 0x3d9   : > { %v1383_v3 = vmul.f32 1.442695, %v1379_v2 }
 0x3db   : > { %3438 = vpow2.f32 %v1383_v3 }
 0x3e5   : > { %v3439_v4 = vpop.eup %3438 }
 0x3e6   : > { %v1391_v5 = vsel %vm1182_vm2, %v3439_v4, 0.0 }
 0x3f1   : > { %1392 = vadd.xlane.f32.xlu1 %v1391_v5 }
 0x449   : > { %v1372_v6 = vpop.xlane.xlu1 %1371 }
 0x44a   : > { %v1380_v7 = vsub.f32 %v1270_v47, %v1372_v6 }
 0x44c   : > { %v1385_v8 = vmul.f32 1.442695, %v1380_v7  ;;  %v3426_v7 = vld [vmem:[%s4926_s13] sm:$0xff]  }
 0x44d   : > { %v1417_v9 = vpop.permute.xlu1 %1416  ;;  %v1375_v10 = vpop.xlane.xlu0 %1374 }
 0x44e   : > { %3440 = vpow2.f32 %v1385_v8  ;;  %v1423_v11 = vsel %vm1421_vm3, %v1417_v9, 0  ;;  %v1381_v12 = vsub.f32 %v1316_v53, %v1375_v10  ;;  %v3427_v9 = vld [vmem:[%s4926_s13 + $0x8] sm:$0xff]   ;;  %v1017_v10 = vld [vmem:[%s1013_s29] sm:$0xff]  ;;  %s2600_s29 = sshll.u32 %s4579_s23, 4  ;;  %s4786_s29 = int_to_ptr.vmem [resolvable:$true] %s2600_s29 }
 0x44f   : > { %3099 = vmatpush3.bf16.msra.mxu0 %v1423_v11  ;;  %v1768_v11 = vpack.c.bf16 %v1017_v10, %v1017_v10 }
 0x450   : > { %v1387_v13 = vmul.f32 1.442695, %v1381_v12  ;;  %3110 = vmatprep.subr.bf16.mxu0 %v3990_v0  ;;  %v3429_v12 = vld [vmem:[#allocation14 + $0x8] sm:$0xff]  }
 0x451   : > { %v1378_v14 = vpop.xlane.xlu0 %1377 }
 0x452   : > { %3442 = vpow2.f32 %v1387_v13  ;;  %v1382_v15 = vsub.f32 %v1362_v59, %v1378_v14  ;;  %v3428_v59 = vld [vmem:[#allocation14] sm:$0xff]   ;;  %v2952_v13 = vld [vmem:[#allocation13] ss:$0 sm:$0xff] }
 0x454   : > { %v1389_v16 = vmul.f32 1.442695, %v1382_v15 }
 0x456   : > { %3444 = vpow2.f32 %v1389_v16 }
 0x458   : > { %v3441_v17 = vpop.eup %3440 }
 0x459   : > { %v1394_v18 = vsel %vm1182_vm2, %v3441_v17, 0.0 }
 0x45a   : > { %1395 = vadd.xlane.f32.xlu0 %v1394_v18 }
 0x45c   : > { %v3443_v19 = vpop.eup %3442 }
 0x45d   : > { %v1397_v20 = vsel %vm1182_vm2, %v3443_v19, 0.0 }
 0x45e   : > { %1398 = vadd.xlane.f32.xlu1 %v1397_v20  ;;  %v2960_v20 = vld [vmem:[#allocation17] ss:$0 sm:$0xff] }
 0x460   : > { %v3445_v21 = vpop.eup %3444 }
 0x461   : > { %v1400_v22 = vsel %vm1182_vm2, %v3445_v21, 0.0 }
 0x462   : > { %1401 = vadd.xlane.f32.xlu0 %v1400_v22 }
 0x46f   : > { %1515 = vrot.lane.b32.xlu1 %v4535_v30, %s3995_s24 }
 0x473   : > { %1564 = vrot.lane.b32.xlu1 %v4540_v32, %s3995_s24 }
 0x478   : > { %1466 = vrot.lane.b32.xlu0 %v4531_v26, %s3995_s24 }
 0x47e   : > { %v1393_v23 = vpop.xlane.xlu1 %1392 }
 0x47f   : > { %3446 = vrcp.f32 %v1393_v23 }
 0x489   : > { %v3447_v24 = vpop.eup %3446 }
 0x48a   : > { %v1407_v25 = vmul.f32 %v3447_v24, %v3439_v4 }
 0x48c   : > { %1696 = vst.msk [vmem:[%s4579_s23] sm:$0xff] %vm1182_vm2, %v1407_v25  ;;  %v1411_v27 = vpack.c.bf16 %v1407_v25, %v1407_v25 }
 0x48e   : > { %3101 = vmatmul.mubr.msk.bf16.vlgmr.msra.gmra.mrb[12].mxu0 %vm1182_vm2, %v1411_v27 }
 0x48f   : > { %3112 = vmatprep.mubr.msk.bf16.mxu0 %vm3991_vm0, %v3990_v0 }
 0x4e7   : > { %v1396_v26 = vpop.xlane.xlu0 %1395 }
 0x4e8   : > { %3448 = vrcp.f32 %v1396_v26 }
 0x4eb   : > { %v1399_v28 = vpop.xlane.xlu1 %1398 }
 0x4ec   : > { %3450 = vrcp.f32 %v1399_v28 }
 0x4ef   : > { %v1516_v29 = vpop.permute.xlu1 %1515  ;;  %v1402_v30 = vpop.xlane.xlu0 %1401 }
 0x4f0   : > { %v1521_v31 = vsel %vm1421_vm3, %v1516_v29, 0  ;;  %3452 = vrcp.f32 %v1402_v30 }
 0x4f1   : > { %3111 = vmatpush3.bf16.msra.mxu0 %v1521_v31  ;;  %v2956_v31 = vld [vmem:[#allocation16] ss:$0 sm:$0xff] }
 0x4f2   : > { %v3449_v32 = vpop.eup %3448  ;;  %3122 = vmatprep.subr.bf16.mxu0 %v3990_v0 }
 0x4f3   : > { %v1408_v33 = vmul.f32 %v3449_v32, %v3441_v17  ;;  %v1467_v34 = vpop.permute.xlu0 %1466  ;;  %v1565_v36 = vpop.permute.xlu1 %1564 }
 0x4f4   : > { %v1472_v35 = vsel %vm1421_vm3, %v1467_v34, 0  ;;  %v1570_v40 = vsel %vm1421_vm3, %v1565_v36, 0 }
 0x4f5   : > { %1697 = vst.msk [vmem:[%s4579_s23 + $0x8] sm:$0xff] %vm1182_vm2, %v1408_v33  ;;  %3105 = vmatpush3.bf16.msra.mxu1 %v1472_v35  ;;  %v1412_v37 = vpack.c.bf16 %v1408_v33, %v1408_v33 }
 0x4f6   : > { %v3451_v38 = vpop.eup %3450  ;;  %3116 = vmatprep.subr.bf16.mxu1 %v3990_v0 }
 0x4f7   : > { %v1409_v39 = vmul.f32 %v3451_v38, %v3443_v19 }
 0x4f8   : > { %3107 = vmatmul.mubr.msk.bf16.vlgmr.msra.gmra.mrb[12].mxu1 %vm1182_vm2, %v1412_v37 }
 0x4f9   : > { %1698 = vst.msk [vmem:[%s4579_s23 + $0x10] sm:$0xff] %vm1182_vm2, %v1409_v39  ;;  %3117 = vmatpush3.bf16.msra.mxu1 %v1570_v40  ;;  %v1413_v41 = vpack.c.bf16 %v1409_v39, %v1409_v39  ;;  %3118 = vmatprep.mubr.msk.bf16.mxu1 %vm3991_vm0, %v3990_v0 }
 0x4fa   : > { %v3453_v42 = vpop.eup %3452  ;;  %3130 = vmatprep.subr.bf16.mxu1 %v3990_v0 }
 0x4fb   : > { %v1410_v43 = vmul.f32 %v3453_v42, %v3445_v21  ;;  %3113 = vmatmul.mubr.msk.bf16.vlgmr.msra.gmra.mrb[16].mxu0 %vm1182_vm2, %v1413_v41 }
 0x4fc   : > { %3126 = vmatprep.mubr.msk.bf16.mxu0 %vm3991_vm0, %v3990_v0  ;;  %3123 = vmatpush3.bf16.msra.mxu0 %v3424_v49 }
 0x4fd   : > { %1699 = vst.msk [vmem:[%s4579_s23 + $0x18] sm:$0xff] %vm1182_vm2, %v1410_v43  ;;  %v1414_v44 = vpack.c.bf16 %v1410_v43, %v1410_v43  ;;  %3124 = vmatprep.subr.bf16.mxu0 %v3990_v0 }
 0x500   : > { %3119 = vmatmul.mubr.msk.bf16.vlgmr.msra.gmra.mrb[16].mxu1 %vm1182_vm2, %v1414_v44  ;;  %3125 = vmatpush3.bf16.msra.mxu0 %v3425_v50  ;;  %v1700_v50 = vld [vmem:[#allocation5] sm:$0xff] }
 0x501   : > { %3134 = vmatprep.mubr.msk.bf16.mxu1 %vm3991_vm0, %v3990_v0  ;;  %3138 = vmatprep.subr.bf16.mxu0 %v3990_v0 }
 0x502   : > { %3131 = vmatpush3.bf16.msra.mxu1 %v3428_v59 }
 0x503   : > { %3132 = vmatprep.subr.bf16.mxu1 %v3990_v0 }
 0x506   : > { %3133 = vmatpush3.bf16.msra.mxu1 %v3429_v12 }
 0x507   : > { %3146 = vmatprep.subr.bf16.mxu1 %v3990_v0 }
 0x561   : > { %v1459_v45 = vpop.f32.mrb[12].mxu0 }
 0x562   : > { %v3102_v46 = vpop.f32.mrb[13].mxu0 }
 0x563   : > { %v1462_v47 = vpop.f32.mrb[14].mxu0 }
 0x564   : > { %v3103_v48 = vpop.f32.mrb[15].mxu0 }
 0x5cb   : > { %v1508_v51 = vpop.f32.mrb[12].mxu1 }
 0x5cc   : > { %1613 = vrot.lane.b32.xlu0 %v1508_v51, %s3996_s5  ;;  %v3108_v52 = vpop.f32.mrb[13].mxu1 }
 0x5cd   : > { %v1511_v53 = vpop.f32.mrb[14].mxu1 }
 0x5ce   : > { %v3109_v54 = vpop.f32.mrb[15].mxu1  ;;  %v1557_v55 = vpop.f32.mrb[16].mxu0 }
 0x5cf   : > { %1617 = vrot.lane.b32.xlu1 %v1557_v55, %s4972_s22  ;;  %v3114_v56 = vpop.f32.mrb[17].mxu0  ;;  %s5036_s22 = sld [smem:[#allocation40_spill]] }
 0x5d0   : > { %v1560_v57 = vpop.f32.mrb[18].mxu0 }
 0x5d1   : > { %v3115_v58 = vpop.f32.mrb[19].mxu0 }
 0x5d3   : > { %v1606_v60 = vpop.f32.mrb[16].mxu1 }
 0x5d4   : > { %1621 = vrot.lane.b32.xlu0 %v1606_v60, %s4971_s3  ;;  %v3120_v61 = vpop.f32.mrb[17].mxu1  ;;  %s2566_s3 = sand.u32 1, %s4164_s26   ;;  %s3999_s26 = smov [#allocation23]  }
 0x5d5   : > { %v1609_v62 = vpop.f32.mrb[18].mxu1  ;;  %p5039_p8 = scmp.ne.s32.totalorder %s5036_s22, 0 }
 0x5d6   : > { %v3121_v63 = vpop.f32.mrb[19].mxu1 }
 0x63e   : > { %v1614_v1 = vpop.permute.xlu0 %1613 }
 0x63f   : > { %v1624_v3 = vsel %vm1182_vm2, %v1459_v45, %v1614_v1 }
 0x641   : > { %v1618_v2 = vpop.permute.xlu1 %1617 }
 0x642   : > { %v1626_v4 = vsel %vm1625_vm4, %v1624_v3, %v1618_v2 }
 0x646   : > { %v1622_v5 = vpop.permute.xlu0 %1621 }
 0x647   : > { %v1628_v6 = vsel %vm1627_vm5, %v1626_v4, %v1622_v5 }
 0x648   : > { %v1629_v8 = vpack.c.bf16 %v1628_v6, %v1628_v6 }
 0x64a   : > { %3127 = vmatmul.mubr.msk.bf16.vlgmr.msra.gmra.mrb[20].mxu0 %vm1043_vm1, %v1629_v8 }
 0x64b   : > { %3139 = vmatpush3.bf16.msra.mxu0 %v3426_v7  ;;  %3142 = vmatprep.mubr.msk.bf16.mxu0 %vm3991_vm0, %v3990_v0 }
 0x64c   : > { %3140 = vmatprep.subr.bf16.mxu0 %v3990_v0 }
 0x64f   : > { %3141 = vmatpush3.bf16.msra.mxu0 %v3427_v9 }
 0x650   : > { %3152 = vmatprep.subr.bf16.mxu0 %v3990_v0 }
 0x652   : > { %3143 = vmatmul.mubr.msk.bf16.vlgmr.msra.gmra.mrb[24].mxu0 %vm1043_vm1, %v1768_v11 }
 0x653   : > { %3154 = vmatprep.mubr.msk.bf16.mxu0 %vm3991_vm0, %v3990_v0 }
 0x71d   : > { %v1690_v14 = vpop.f32.mrb[20].mxu0 }
 0x71e   : > { %v1691_v15 = vadd.f32 %v2952_v13, %v1690_v14  ;;  %v3128_v16 = vpop.f32.mrb[21].mxu0 }
 0x71f   : > { %v1693_v17 = vpop.f32.mrb[22].mxu0 }
 0x720   : > { %v1701_v18 = vpack.c.bf16 %v1691_v15, %v1691_v15  ;;  %v3129_v19 = vpop.f32.mrb[23].mxu0 }
 0x722   : > { %3135 = vmatmul.mubr.msk.bf16.vlgmr.msra.gmra.mrb[20].mxu1 %vm1043_vm1, %v1701_v18 }
 0x723   : > { %3148 = vmatprep.mubr.msk.bf16.mxu1 %vm3991_vm0, %v3990_v0 }
 0x725   : > { %v1829_v21 = vpop.f32.mrb[24].mxu0 }
 0x726   : > { %v1830_v22 = vadd.f32 %v2960_v20, %v1829_v21  ;;  %v3144_v23 = vpop.f32.mrb[25].mxu0 }
 0x727   : > { %v1832_v24 = vpop.f32.mrb[26].mxu0 }
 0x728   : > { %1850 = vrot.lane.b32.xlu1 %v1830_v22, %s3992_s25  ;;  %1853 = vrot.lane.b32.xlu0 %v1830_v22, %s3994_s28  ;;  %v3145_v25 = vpop.f32.mrb[27].mxu0  ;;  %v4646_v27 = vpack.c.bf16 %v1830_v22, %v1830_v22 }
 0x72a   : > { %v1867_v26 = vsel %vm1182_vm2, %v4646_v27, 0 }
 0x72b   : > { %3147 = vmatpush3.bf16.xpose.msra.mxu1 %v1867_v26 }
 0x72c   : > { %1856 = vrot.lane.b32.xlu0 %v1830_v22, %s3993_s1  ;;  %3158 = vmatprep.subr.bf16.mxu1 %v3990_v0 }
 0x79a   : > { %v1851_v28 = vpop.permute.xlu1 %1850  ;;  %v1854_v32 = vpop.permute.xlu0 %1853 }
 0x79b   : > { %v4652_v29 = vpack.c.bf16 %v1851_v28, %v1851_v28  ;;  %v4657_v33 = vpack.c.bf16 %v1854_v32, %v1854_v32 }
 0x79d   : > { %v1913_v30 = vsel %vm1182_vm2, %v4652_v29, 0  ;;  %v1959_v40 = vsel %vm1182_vm2, %v4657_v33, 0 }
 0x79e   : > { %3153 = vmatpush3.bf16.xpose.msra.mxu0 %v1913_v30  ;;  %v1857_v41 = vpop.permute.xlu0 %1856 }
 0x79f   : > { %3164 = vmatprep.subr.bf16.mxu0 %v3990_v0  ;;  %v4668_v42 = vpack.c.bf16 %v1857_v41, %v1857_v41 }
 0x7a1   : > { %v2005_v45 = vsel %vm1182_vm2, %v4668_v42, 0 }
 0x7f5   : > { %v1762_v34 = vpop.f32.mrb[20].mxu1 }
 0x7f6   : > { %v1763_v35 = vadd.f32 %v2956_v31, %v1762_v34  ;;  %v3136_v36 = vpop.f32.mrb[21].mxu1 }
 0x7f7   : > { %v1765_v37 = vpop.f32.mrb[22].mxu1 }
 0x7f8   : > { %v1845_v38 = vpack.c.bf16 %v1763_v35, %v1763_v35  ;;  %v3137_v39 = vpop.f32.mrb[23].mxu1  ;;  %1842 = vrot.lane.b32.xlu0 %v1763_v35, %s3993_s1  ;;  %1836 = vrot.lane.b32.xlu1 %v1763_v35, %s3992_s25  ;;  %s5038_s25 = smov %s5037_s7  ;;  %s4788_s1 = scalar_lea.sflag [#allocation24], %s2566_s3 }
 0x7fa   : > { %3149 = vmatmul.mubr.msk.bf16.vlgmr.msra.gmra.mrb[24].mxu1 %vm1182_vm2, %v1845_v38 }
 0x7fb   : > { %3159 = vmatpush3.bf16.xpose.msra.mxu1 %v1959_v40  ;;  %3160 = vmatprep.mubr.msk.bf16.mxu1 %vm3991_vm0, %v3990_v0 }
 0x7fc   : > { %1839 = vrot.lane.b32.xlu1 %v1763_v35, %s3994_s28  ;;  %3170 = vmatprep.subr.bf16.mxu1 %v3990_v0  ;;  %s5034_s28 = smov 16  }
 0x86a   : > { %v1837_v43 = vpop.permute.xlu1 %1836  ;;  %v1843_v48 = vpop.permute.xlu0 %1842 }
 0x86b   : > { %v1846_v44 = vpack.c.bf16 %v1837_v43, %v1837_v43  ;;  %v1848_v49 = vpack.c.bf16 %v1843_v48, %v1843_v48 }
 0x86d   : > { %3155 = vmatmul.mubr.msk.bf16.vlgmr.msra.gmra.mrb[28].mxu0 %vm1182_vm2, %v1846_v44 }
 0x86e   : > { %3165 = vmatpush3.bf16.xpose.msra.mxu0 %v2005_v45  ;;  %v1840_v46 = vpop.permute.xlu1 %1839  ;;  %3166 = vmatprep.mubr.msk.bf16.mxu0 %vm3991_vm0, %v3990_v0 }
 0x86f   : > { %v1847_v47 = vpack.c.bf16 %v1840_v46, %v1840_v46  ;;  %3176 = vmatprep.subr.bf16.mxu0 %v3990_v0 }
 0x871   : > { %3161 = vmatmul.mubr.msk.bf16.vlgmr.msra.gmra.mrb[28].mxu1 %vm1182_vm2, %v1847_v47 }
 0x872   : > { %3172 = vmatprep.mubr.msk.bf16.mxu1 %vm3991_vm0, %v3990_v0 }
 0x875   : > { %3167 = vmatmul.mubr.msk.bf16.vlgmr.msra.gmra.mrb[32].mxu0 %vm1182_vm2, %v1848_v49 }
 0x876   : > { %3178 = vmatprep.mubr.msk.bf16.mxu0 %vm3991_vm0, %v3990_v0 }
 0x8cd   : > { %v1903_v51 = vpop.f32.mrb[24].mxu1 }
 0x8ce   : > { %v1904_v52 = vadd.f32 %v1903_v51, %v1700_v50  ;;  %v3150_v53 = vpop.f32.mrb[25].mxu1 }
 0x8cf   : > { %v1906_v54 = vpop.f32.mrb[26].mxu1 }
 0x8d0   : > { %v3151_v55 = vpop.f32.mrb[27].mxu1  ;;  %v2047_v56 = vsel %vm1182_vm2, %v1904_v52, -inf }
 0x8d1   : > { %2048 = vmax.xlane.f32.xlu1 %v2047_v56 }
 0x940   : > { %v1949_v57 = vpop.f32.mrb[28].mxu0 }
 0x941   : > { %v1950_v58 = vadd.f32 %v1949_v57, %v1700_v50  ;;  %v3156_v59 = vpop.f32.mrb[29].mxu0 }
 0x942   : > { %v1952_v60 = vpop.f32.mrb[30].mxu0 }
 0x943   : > { %v3157_v61 = vpop.f32.mrb[31].mxu0  ;;  %v2050_v62 = vsel %vm1182_vm2, %v1950_v58, -inf  ;;  %v3430_v60 = vld [vmem:[#allocation19] sm:$0xff]  }
 0x944   : > { %v1995_v63 = vpop.f32.mrb[28].mxu1  ;;  %2051 = vmax.xlane.f32.xlu0 %v2050_v62  ;;  %v3431_v61 = vld [vmem:[#allocation19 + $0x8] sm:$0xff]   ;;  %v3432_v62 = vld [vmem:[%s4930_s17] sm:$0xff]  }
 0x945   : > { %v1996_v1 = vadd.f32 %v1995_v63, %v1700_v50  ;;  %v3162_v2 = vpop.f32.mrb[29].mxu1 }
 0x946   : > { %v1998_v3 = vpop.f32.mrb[30].mxu1 }
 0x947   : > { %v3163_v4 = vpop.f32.mrb[31].mxu1  ;;  %v2053_v5 = vsel %vm1182_vm2, %v1996_v1, -inf }
 0x948   : > { %2054 = vmax.xlane.f32.xlu0 %v2053_v5  ;;  %v2041_v6 = vpop.f32.mrb[32].mxu0 }
 0x949   : > { %v2042_v7 = vadd.f32 %v2041_v6, %v1700_v50  ;;  %v3168_v8 = vpop.f32.mrb[33].mxu0 }
 0x94a   : > { %v2044_v9 = vpop.f32.mrb[34].mxu0 }
 0x94b   : > { %v3169_v10 = vpop.f32.mrb[35].mxu0  ;;  %v2056_v11 = vsel %vm1182_vm2, %v2042_v7, -inf }
 0x94c   : > { %2057 = vmax.xlane.f32.xlu1 %v2056_v11 }
 0x95d   : > { %2145 = vrot.lane.b32.xlu1 %v4652_v29, %s3995_s24 }
 0x95e   : > { %2096 = vrot.lane.b32.xlu0 %v4646_v27, %s3995_s24  ;;  %v2049_v12 = vpop.xlane.xlu1 %2048 }
 0x95f   : > { %v2059_v13 = vsub.f32 %v1904_v52, %v2049_v12 }
 0x961   : > { %v2063_v14 = vmul.f32 1.442695, %v2059_v13 }
 0x963   : > { %3454 = vpow2.f32 %v2063_v14 }
 0x96d   : > { %v3455_v15 = vpop.eup %3454 }
 0x96e   : > { %v2071_v16 = vsel %vm1182_vm2, %v3455_v15, 0.0 }
 0x97d   : > { %2072 = vadd.xlane.f32.xlu0 %v2071_v16 }
 0x9d1   : > { %v2052_v17 = vpop.xlane.xlu0 %2051 }
 0x9d2   : > { %v2060_v18 = vsub.f32 %v1950_v58, %v2052_v17 }
 0x9d4   : > { %v2065_v19 = vmul.f32 1.442695, %v2060_v18 }
 0x9d5   : > { %v2055_v20 = vpop.xlane.xlu0 %2054 }
 0x9d6   : > { %3456 = vpow2.f32 %v2065_v19  ;;  %v2061_v21 = vsub.f32 %v1996_v1, %v2055_v20  ;;  %v3433_v19 = vld [vmem:[%s4930_s17 + $0x8] sm:$0xff]   ;;  %v3434_v20 = vld [vmem:[%s4932_s19] sm:$0xff]  }
 0x9d8   : > { %v2067_v22 = vmul.f32 1.442695, %v2061_v21  ;;  %v3435_v21 = vld [vmem:[%s4932_s19 + $0x8] sm:$0xff]  }
 0x9d9   : > { %v2097_v23 = vpop.permute.xlu0 %2096  ;;  %v2058_v24 = vpop.xlane.xlu1 %2057 }
 0x9da   : > { %3458 = vpow2.f32 %v2067_v22  ;;  %v2102_v25 = vsel %vm1421_vm3, %v2097_v23, 0  ;;  %v2062_v27 = vsub.f32 %v2042_v7, %v2058_v24  ;;  %v2972_v22 = vld [vmem:[#allocation20] ss:$0 sm:$0xff] }
 0x9db   : > { %3171 = vmatpush3.bf16.msra.mxu1 %v2102_v25 }
 0x9dc   : > { %v2069_v26 = vmul.f32 1.442695, %v2062_v27  ;;  %3182 = vmatprep.subr.bf16.mxu1 %v3990_v0 }
 0x9dd   : > { %v2146_v28 = vpop.permute.xlu1 %2145 }
 0x9de   : > { %3460 = vpow2.f32 %v2069_v26  ;;  %v2151_v29 = vsel %vm1421_vm3, %v2146_v28, 0 }
 0x9df   : > { %3177 = vmatpush3.bf16.msra.mxu0 %v2151_v29  ;;  %v3436_v29 = vld [vmem:[%s4932_s19 + $0x10] sm:$0xff]  }
 0x9e0   : > { %v3457_v30 = vpop.eup %3456  ;;  %3188 = vmatprep.subr.bf16.mxu0 %v3990_v0 }
 0x9e1   : > { %v2074_v31 = vsel %vm1182_vm2, %v3457_v30, 0.0 }
 0x9e2   : > { %2075 = vadd.xlane.f32.xlu1 %v2074_v31  ;;  %v2976_v31 = vld [vmem:[%s4931_s18] ss:$0 sm:$0xff] }
 0x9e4   : > { %v3459_v32 = vpop.eup %3458 }
 0x9e5   : > { %v2077_v34 = vsel %vm1182_vm2, %v3459_v32, 0.0 }
 0x9e6   : > { %2078 = vadd.xlane.f32.xlu0 %v2077_v34 }
 0x9e8   : > { %v3461_v35 = vpop.eup %3460 }
 0x9e9   : > { %v2080_v36 = vsel %vm1182_vm2, %v3461_v35, 0.0 }
 0x9ea   : > { %2081 = vadd.xlane.f32.xlu1 %v2080_v36 }
 0x9fb   : > { %2194 = vrot.lane.b32.xlu1 %v4657_v33, %s3995_s24 }
 0x9fc   : > { %2243 = vrot.lane.b32.xlu0 %v4668_v42, %s3995_s24  ;;  %s5035_s24 = smov 24  }
 0xa0a   : > { %v2073_v37 = vpop.xlane.xlu0 %2072 }
 0xa0b   : > { %3462 = vrcp.f32 %v2073_v37 }
 0xa15   : > { %v3463_v38 = vpop.eup %3462 }
 0xa16   : > { %v2087_v39 = vmul.f32 %v3463_v38, %v3455_v15 }
 0xa18   : > { %2373 = vst.msk [vmem:[%s4704_s0] sm:$0xff] %vm1182_vm2, %v2087_v39  ;;  %v2091_v40 = vpack.c.bf16 %v2087_v39, %v2087_v39 }
 0xa1a   : > { %3173 = vmatmul.mubr.msk.bf16.vlgmr.msra.gmra.mrb[32].mxu1 %vm1182_vm2, %v2091_v40 }
 0xa1b   : > { %3184 = vmatprep.mubr.msk.bf16.mxu1 %vm3991_vm0, %v3990_v0 }
 0xa6f   : > { %v2076_v33 = vpop.xlane.xlu1 %2075 }
 0xa70   : > { %3464 = vrcp.f32 %v2076_v33 }
 0xa73   : > { %v2079_v41 = vpop.xlane.xlu0 %2078 }
 0xa74   : > { %3466 = vrcp.f32 %v2079_v41 }
 0xa77   : > { %v2082_v42 = vpop.xlane.xlu1 %2081  ;;  %v2244_v46 = vpop.permute.xlu0 %2243 }
 0xa78   : > { %3468 = vrcp.f32 %v2082_v42  ;;  %v2249_v51 = vsel %vm1421_vm3, %v2244_v46, 0 }
 0xa7a   : > { %v3465_v43 = vpop.eup %3464 }
 0xa7b   : > { %v2088_v44 = vmul.f32 %v3465_v43, %v3457_v30  ;;  %v2195_v45 = vpop.permute.xlu1 %2194  ;;  %v3437_v30 = vld [vmem:[%s4932_s19 + $0x18] sm:$0xff]  }
 0xa7c   : > { %v2200_v47 = vsel %vm1421_vm3, %v2195_v45, 0 }
 0xa7d   : > { %2374 = vst.msk [vmem:[%s4704_s0 + $0x8] sm:$0xff] %vm1182_vm2, %v2088_v44  ;;  %3183 = vmatpush3.bf16.msra.mxu1 %v2200_v47  ;;  %v2092_v48 = vpack.c.bf16 %v2088_v44, %v2088_v44 }
 0xa7e   : > { %v3467_v49 = vpop.eup %3466  ;;  %3194 = vmatprep.subr.bf16.mxu1 %v3990_v0 }
 0xa7f   : > { %v2089_v50 = vmul.f32 %v3467_v49, %v3459_v32  ;;  %3179 = vmatmul.mubr.msk.bf16.vlgmr.msra.gmra.mrb[36].mxu0 %vm1182_vm2, %v2092_v48 }
 0xa80   : > { %3189 = vmatpush3.bf16.msra.mxu0 %v2249_v51  ;;  %3190 = vmatprep.mubr.msk.bf16.mxu0 %vm3991_vm0, %v3990_v0 }
 0xa81   : > { %2375 = vst.msk [vmem:[%s4704_s0 + $0x10] sm:$0xff] %vm1182_vm2, %v2089_v50  ;;  %v2093_v52 = vpack.c.bf16 %v2089_v50, %v2089_v50  ;;  %3202 = vmatprep.subr.bf16.mxu0 %v3990_v0 }
 0xa82   : > { %v3469_v53 = vpop.eup %3468 }
 0xa83   : > { %v2090_v54 = vmul.f32 %v3469_v53, %v3461_v35  ;;  %3185 = vmatmul.mubr.msk.bf16.vlgmr.msra.gmra.mrb[36].mxu1 %vm1182_vm2, %v2093_v52 }
 0xa84   : > { %3198 = vmatprep.mubr.msk.bf16.mxu1 %vm3991_vm0, %v3990_v0  ;;  %3195 = vmatpush3.bf16.msra.mxu1 %v3430_v60 }
 0xa85   : > { %2376 = vst.msk [vmem:[%s4704_s0 + $0x18] sm:$0xff] %vm1182_vm2, %v2090_v54  ;;  %v2094_v55 = vpack.c.bf16 %v2090_v54, %v2090_v54  ;;  %3196 = vmatprep.subr.bf16.mxu1 %v3990_v0 }
 0xa87   : > { %3191 = vmatmul.mubr.msk.bf16.vlgmr.msra.gmra.mrb[40].mxu0 %vm1182_vm2, %v2094_v55 }
 0xa88   : > { %3206 = vmatprep.mubr.msk.bf16.mxu0 %vm3991_vm0, %v3990_v0  ;;  %3197 = vmatpush3.bf16.msra.mxu1 %v3431_v61 }
 0xa89   : > { %3210 = vmatprep.subr.bf16.mxu1 %v3990_v0  ;;  %3203 = vmatpush3.bf16.msra.mxu0 %v3432_v62 }
 0xa8a   : > { %3204 = vmatprep.subr.bf16.mxu0 %v3990_v0 }
 0xa8d   : > { %3205 = vmatpush3.bf16.msra.mxu0 %v3433_v19 }
 0xaed   : > { %v2138_v56 = vpop.f32.mrb[32].mxu1 }
 0xaee   : > { %v3174_v57 = vpop.f32.mrb[33].mxu1 }
 0xaef   : > { %v2141_v58 = vpop.f32.mrb[34].mxu1 }
 0xaf0   : > { %v3175_v59 = vpop.f32.mrb[35].mxu1 }
 0xb52   : > { %v2187_v63 = vpop.f32.mrb[36].mxu0 }
 0xb53   : > { %2292 = vrot.lane.b32.xlu1 %v2187_v63, %s3996_s5  ;;  %v3180_v1 = vpop.f32.mrb[37].mxu0 }
 0xb54   : > { %v2190_v2 = vpop.f32.mrb[38].mxu0 }
 0xb55   : > { %v3181_v3 = vpop.f32.mrb[39].mxu0 }
 0xb56   : > { %v2236_v4 = vpop.f32.mrb[36].mxu1 }
 0xb57   : > { %2296 = vrot.lane.b32.xlu0 %v2236_v4, %s5034_s28  ;;  %v3186_v5 = vpop.f32.mrb[37].mxu1  ;;  %s3808_s28 = scalar_lea.vmem %s4786_s29, 512 }
 0xb58   : > { %v2239_v6 = vpop.f32.mrb[38].mxu1  ;;  %p3809_p1 = scmp.ne.s32.totalorder %s4786_s29, %s3808_s28 }
 0xb59   : > { %v3187_v7 = vpop.f32.mrb[39].mxu1 }
 0xb5a   : > { %v2285_v8 = vpop.f32.mrb[40].mxu0  ;;  %p3810_p4 = pnand %p3809_p1, %p5039_p8 }
 0xb5b   : > { %2300 = vrot.lane.b32.xlu1 %v2285_v8, %s5035_s24  ;;  %v3192_v9 = vpop.f32.mrb[41].mxu0  ;;  %s3812_s24 = sshll.u32 %s3999_s26, 4  ;;  %s3813_s24 = int_to_ptr.vmem [resolvable:$false] %s3812_s24 }
 0xb5c   : > { %v2288_v10 = vpop.f32.mrb[42].mxu0  ;;  %p3811_p10 = pneg %p3810_p4  ;;  %s3814_s14 = scalar_lea.vmem %s3813_s24, 1024 }
 0xb5d   : > { %v3193_v11 = vpop.f32.mrb[43].mxu0  ;;  %p3815_p13 = scmp.lt.s32.totalorder %s4786_s29, %s3813_s24  ;;  %p3816_p11 = scmp.lt.s32.totalorder %s3814_s14, %s3808_s28 }
 0xb5f   : > { %p3817_p3 = por %p3816_p11, %p3815_p13 }
 0xb61   : > { %p3818_p5 = pnand %p3817_p3, %p3811_p10 }
 0xbc5   : > { %v2293_v12 = vpop.permute.xlu1 %2292 }
 0xbc6   : > { %v2303_v14 = vsel %vm1182_vm2, %v2138_v56, %v2293_v12 }
 0xbc9   : > { %v2297_v13 = vpop.permute.xlu0 %2296 }
 0xbca   : > { %v2304_v15 = vsel %vm1625_vm4, %v2303_v14, %v2297_v13 }
 0xbcd   : > { %v2301_v16 = vpop.permute.xlu1 %2300 }
 0xbce   : > { %v2305_v17 = vsel %vm1627_vm5, %v2304_v15, %v2301_v16 }
 0xbcf   : > { %v2306_v18 = vpack.c.bf16 %v2305_v17, %v2305_v17 }
 0xbd1   : > { %3199 = vmatmul.mubr.msk.bf16.vlgmr.msra.gmra.mrb[40].mxu1 %vm1043_vm1, %v2306_v18 }
 0xbd2   : > { %3218 = vmatprep.mubr.msk.bf16.mxu1 %vm3991_vm0, %v3990_v0  ;;  %3211 = vmatpush3.bf16.msra.mxu1 %v3434_v20 }
 0xbd3   : > { %3212 = vmatprep.subr.bf16.mxu1 %v3990_v0 }
 0xbd6   : > { %3213 = vmatpush3.bf16.msra.mxu1 %v3435_v21 }
 0xbd7   : > { %3214 = vmatprep.subr.bf16.mxu1 %v3990_v0 }
 0xbda   : > { %3215 = vmatpush3.bf16.msra.mxu1 %v3436_v29 }
 0xbdb   : > { %3216 = vmatprep.subr.bf16.mxu1 %v3990_v0  ;;  %v2980_v0 = vld [vmem:[%s4933_s20] ss:$0 sm:$0xff] }
 0xbde   : > { %3217 = vmatpush3.bf16.msra.mxu1 %v3437_v30 }
 0xca4   : > { %v2367_v23 = vpop.f32.mrb[40].mxu1 }
 0xca5   : > { %v2368_v24 = vadd.f32 %v2972_v22, %v2367_v23  ;;  %v3200_v25 = vpop.f32.mrb[41].mxu1 }
 0xca6   : > { %v2370_v27 = vpop.f32.mrb[42].mxu1 }
 0xca7   : > { %v2377_v26 = vpack.c.bf16 %v2368_v24, %v2368_v24  ;;  %v3201_v28 = vpop.f32.mrb[43].mxu1 }
 0xca9   : > { %3207 = vmatmul.mubr.msk.bf16.vlgmr.msra.gmra.mrb[44].mxu0 %vm1043_vm1, %v2377_v26 }
 0xd7c   : > { %v2438_v32 = vpop.f32.mrb[44].mxu0 }
 0xd7d   : > { %v2439_v34 = vadd.f32 %v2976_v31, %v2438_v32  ;;  %v3208_v35 = vpop.f32.mrb[45].mxu0 }
 0xd7e   : > { %v2441_v36 = vpop.f32.mrb[46].mxu0 }
 0xd7f   : > { %v2444_v37 = vmax.f32 %v2439_v34, 0.0  ;;  %v3209_v38 = vpop.f32.mrb[47].mxu0 }
 0xd81   : > { %v2445_v39 = vpack.c.bf16 %v2444_v37, %v2444_v37 }
 0xd83   : > { %3219 = vmatmul.mubr.msk.bf16.vlgmr.msra.gmra.mrb[44].mxu1 %vm2485_vm6, %v2445_v39 }
 0xe56   : > { %v2523_v40 = vpop.f32.mrb[44].mxu1 }
 0xe57   : > { %v2524_v33 = vadd.f32 %v2980_v0, %v2523_v40  ;;  %v3220_v41 = vpop.f32.mrb[45].mxu1 }
 0xe58   : > { %v2526_v42 = vpop.f32.mrb[46].mxu1 }
 0xe59   : > { %v3221_v43 = vpop.f32.mrb[47].mxu1  ;;  %v2529_v44 = vadd.f32 %v2524_v33, %v2368_v24 }
 0xe5b   : > { %v2530_v45 = vsel %vm1043_vm1, %v2529_v44, 0.0 }
 0xe5c   : > { %2531 = vadd.xlane.f32.xlu0 %v2530_v45 }
 0xee9   : > { %v2532_v46 = vpop.xlane.xlu0 %2531 }
 0xeea   : > { %v2534_v47 = vmul.f32 0.03125, %v2532_v46 }
 0xeec   : > { %v4771_v48 = vsub.f32 %v2529_v44, %v2534_v47 }
 0xeee   : > { %v2536_v49 = vmul.f32 %v4771_v48, %v4771_v48 }
 0xef0   : > { %v2537_v50 = vsel %vm1043_vm1, %v2536_v49, 0.0 }
 0xef1   : > { %2538 = vadd.xlane.f32.xlu1 %v2537_v50 }
 0xef2   : > { %3821 = shalt.err (!%p3818_p5)
}
 0xef3   : > { %s3822_s23 = scalar_lea.hbm %s4783_s6, 512  ;;  %s3826_s27 = scalar_lea.hbm %s5038_s25, 1024 }
 0xef4   : > { %p3823_p6 = scmp.ne.s32.totalorder %s4783_s6, %s3822_s23  ;;  %p3827_p12 = scmp.lt.u32.totalorder %s4783_s6, %s5038_s25 }
 0xef5   : > { %p3828_p0 = scmp.lt.u32.totalorder %s3826_s27, %s3822_s23  ;;  %p3830_p1 = scmp.lt.u32.totalorder %s3822_s23, %s4783_s6 }
 0xef6   : > { %p3824_p7 = pnand %p3823_p6, %p5039_p8 }
 0xef7   : > { %p3829_p2 = por %p3828_p0, %p3827_p12 }
 0xef8   : > { %p3825_p9 = pneg %p3824_p7 }
 0xef9   : > { %p3831_p4 = por %p3830_p1, %p3829_p2 }
 0xefb   : > { %p3832_p10 = pnand %p3831_p4, %p3825_p9 }
 0xefd   : > { %3835 = shalt.err (!%p3832_p10)
}
 0xefe   : > { %s4000_s28 = smov 128   ;;  %s5040_s23 = sld [smem:[#allocation59_spill]] }
 0xeff   : > { %3271 = dma.vmem_to_hbm [thread:$0]  (%p5039_p8), %s4786_s29, 512, %s4783_s6, %s4788_s1, %s4000_s28, %s4000_s28, %s3996_s5  }
 0xf00   : > { %s2617_s4 = sshll.u32 %s4704_s0, 4  ;;  %s4001_s7 = smov [#allocation25]   ;;  %s4823_s4 = int_to_ptr.vmem [resolvable:$true] %s2617_s4 }
 0xf01   : > { %s3836_s27 = scalar_lea.vmem %s4823_s4, 512  ;;  %s3840_s26 = sshll.u32 %s4001_s7, 4  ;;  %s3841_s26 = int_to_ptr.vmem [resolvable:$false] %s3840_s26 }
 0xf02   : > { %p3837_p13 = scmp.ne.s32.totalorder %s4823_s4, %s3836_s27  ;;  %s3842_s6 = scalar_lea.vmem %s3841_s26, 1024 }
 0xf03   : > { %p3843_p5 = scmp.lt.s32.totalorder %s4823_s4, %s3841_s26  ;;  %p3844_p6 = scmp.lt.s32.totalorder %s3842_s6, %s3836_s27 }
 0xf04   : > { %s4820_s3 = scalar_lea.hbm %s5040_s23, %s2998_s9  ;;  %p3838_p11 = pnand %p3837_p13, %p5039_p8 }
 0xf05   : > { %p3845_p7 = por %p3844_p6, %p3843_p5 }
 0xf06   : > { %p3839_p3 = pneg %p3838_p11 }
 0xf08   : > { %p3846_p9 = pnand %p3845_p7, %p3839_p3 }
 0xf0a   : > { %3849 = shalt.err (!%p3846_p9)
}
 0xf0b   : > { %s3850_s0 = scalar_lea.hbm %s4820_s3, 512  ;;  %s3854_s24 = scalar_lea.hbm %s5040_s23, 1024 }
 0xf0c   : > { %p3851_p12 = scmp.ne.s32.totalorder %s4820_s3, %s3850_s0  ;;  %p3855_p1 = scmp.lt.u32.totalorder %s4820_s3, %s5040_s23 }
 0xf0d   : > { %p3856_p4 = scmp.lt.u32.totalorder %s3854_s24, %s3850_s0  ;;  %p3858_p13 = scmp.lt.u32.totalorder %s3850_s0, %s4820_s3 }
 0xf0e   : > { %p3852_p0 = pnand %p3851_p12, %p5039_p8 }
 0xf0f   : > { %p3857_p10 = por %p3856_p4, %p3855_p1 }
 0xf10   : > { %p3853_p2 = pneg %p3852_p0 }
 0xf11   : > { %p3859_p11 = por %p3858_p13, %p3857_p10 }
 0xf13   : > { %p3860_p3 = pnand %p3859_p11, %p3853_p2 }
 0xf15   : > { %3863 = shalt.err (!%p3860_p3)
}
 0xf16   : > { %3272 = dma.vmem_to_hbm [thread:$0]  (%p5039_p8), %s4823_s4, 512, %s4820_s3, %s4788_s1, %s4000_s28, %s4000_s28, %s3996_s5  }
 0xf17   : > { %s2930_s27 = sshll.u32 %s4574_s11, 3  ;;  %s5041_s0 = sld [smem:[#allocation55_spill]] }
 0xf18   : > { %s5042_s24 = sld [smem:[#allocation56_spill]]  ;;  %s2991_s14 = sshll.u32 %s3966_s30, 7 }
 0xf19   : > { %s984_s5 = scalar_lea.vmem [#allocation22], %s2930_s27  ;;  %s5043_s4 = sld [smem:[#allocation57_spill]] }
 0xf1a   : > { %s2586_s1 = sshll.u32 %s984_s5, 4  ;;  %s2562_s26 = scalar_lea.sflag [#allocation4], %s4574_s11  ;;  %s4864_s1 = int_to_ptr.vmem [resolvable:$true] %s2586_s1 }
 0xf1b   : > { %s3864_s6 = scalar_lea.vmem %s4864_s1, 128  ;;  %s4002_s30 = smov [#allocation22]  }
 0xf1c   : > { %p3865_p5 = scmp.ne.s32.totalorder %s4864_s1, %s3864_s6  ;;  %s3868_s27 = sshll.u32 %s4002_s30, 4  ;;  %s3869_s27 = int_to_ptr.vmem [resolvable:$false] %s3868_s27 }
 0xf1d   : > { %v2986_v55 = vld [vmem:[%s5041_s0] ss:$0 sm:$0xff]  ;;  %s3870_s0 = scalar_lea.vmem %s3869_s27, 256  ;;  %p3871_p9 = scmp.lt.s32.totalorder %s4864_s1, %s3869_s27 }
 0xf1e   : > { %v2987_v57 = vld [vmem:[%s5042_s24] ss:$0 sm:$0xff]  ;;  %p3866_p6 = pnand %p3865_p5, %p5039_p8  ;;  %p3872_p12 = scmp.lt.s32.totalorder %s3870_s0, %s3864_s6 }
 0xf1f   : > { %s4862_s7 = scalar_lea.hbm %s5043_s4, %s2991_s14 }
 0xf20   : > { %p3867_p7 = pneg %p3866_p6  ;;  %p3873_p0 = por %p3872_p12, %p3871_p9 }
 0xf22   : > { %p3874_p2 = pnand %p3873_p0, %p3867_p7 }
 0xf7e   : > { %v2539_v51 = vpop.xlane.xlu1 %2538 }
 0xf7f   : > { %v2540_v52 = vmul.f32 0.03125, %v2539_v51 }
 0xf81   : > { %v2541_v53 = vadd.f32 1e-06, %v2540_v52 }
 0xf83   : > { %3470 = vrsqrt.f32 %v2541_v53 }
 0xf8d   : > { %v3471_v54 = vpop.eup %3470 }
 0xf8e   : > { %v2543_v56 = vmul.f32 %v3471_v54, %v4771_v48 }
 0xf90   : > { %v2551_v58 = vmul.f32 %v2986_v55, %v2543_v56 }
 0xf92   : > { %v2559_v59 = vadd.f32 %v2987_v57, %v2551_v58 }
 0xf94   : > { %2560 = vst.msk [vmem:[%s984_s5] sm:$0xff] %vm1043_vm1, %v2559_v59 }
 0xf95   : > { %3877 = shalt.err (!%p3874_p2)
}
 0xf96   : > { %s3878_s11 = scalar_lea.hbm %s4862_s7, 128  ;;  %s3882_s24 = scalar_lea.hbm %s5043_s4, 256 }
 0xf97   : > { %p3879_p1 = scmp.ne.s32.totalorder %s4862_s7, %s3878_s11  ;;  %p3883_p13 = scmp.lt.u32.totalorder %s4862_s7, %s5043_s4 }
 0xf98   : > { %p3884_p11 = scmp.lt.u32.totalorder %s3882_s24, %s3878_s11  ;;  %p3886_p5 = scmp.lt.u32.totalorder %s3878_s11, %s4862_s7 }
 0xf99   : > { %p3880_p4 = pnand %p3879_p1, %p5039_p8 }
 0xf9a   : > { %p3885_p3 = por %p3884_p11, %p3883_p13 }
 0xf9b   : > { %p3881_p10 = pneg %p3880_p4 }
 0xf9c   : > { %p3887_p6 = por %p3886_p5, %p3885_p3 }
 0xf9e   : > { %p3888_p7 = pnand %p3887_p6, %p3881_p10 }
 0xfa0   : > { %3891 = shalt.err (!%p3888_p7)
}
 0xfa1   : > { %3270 = dma.vmem_to_hbm [thread:$0]  (%p5039_p8), %s4864_s1, 128, %s4862_s7, %s2562_s26  }
 0xfa2 PF: > { %s5044_s28 = sld [smem:[#allocation38_spill]]  ;;  %s5045_s3 = sld [smem:[#allocation35_spill]] }
 0xfa3   : > { %s5046_s6 = sld [smem:[#allocation41_spill]] }
 0xfa8   : > { %p3347_p9 = scmp.ge.s32.totalorder %s5044_s28, 2  ;;  %s2632_s30 = sand.u32 1, %s5045_s3  }
 0xfa9   : > { %p5047_p12 = scmp.ne.s32.totalorder %s5046_s6, 0  ;;  %s2633_s27 = scalar_lea.sflag [#allocation4], %s2632_s30 }
 0xfab   : > { %p3314_p0 = pnand %p3347_p9, %p5047_p12 }
 0xfad   : > { %3945 = dma.done.wait (!%p3314_p0), %s2633_s27, 128  }
 0xfae   : > { %3947 = vsyncadd (!%p3314_p0), %s2633_s27, 4294967168  ;;  %s5048_s0 = sadd.s32 4294967294, %s5044_s28  }
 0xfaf   : > { %s2641_s11 = sand.u32 1, %s5048_s0  }
 0xfb0   : > { %s2642_s9 = scalar_lea.sflag [#allocation24], %s2641_s11 }
 0xfb1   : > { %3949 = dma.done.wait (!%p3314_p0), %s2642_s9, 1024  }
 0xfb2   : > { %3951 = vsyncadd (!%p3314_p0), %s2642_s9, 4294966272  ;;  %s49_s3 = sadd.s32 1, %s5044_s28   ;;  %s5049_s22 = sld [smem:[#allocation36_spill]] }
 0xfb3   : > { %p46_p8 = scmp.ge.s32.totalorder %s49_s3, 4   ;;  %s5050_s6 = sld [smem:[#allocation42_spill]] }
 0xfb4   : > { %s5051_s30 = sld [smem:[#allocation37_spill]]  ;;  %s5052_s7 = sld [smem:[#allocation39_spill]] }
 0xfb5   : > { %s5053_s29 = smov %s3958_s2  ;;  %48 = sbr.rel (!%p46_p8) target bundleno = 31 (0x1f), region = 236 }
 0xfb8   : > { %s5054_s2 = smov %s5049_s22 }
 0xfbc   :  { %2656 = vsyncpa [#allocation3], 1 }
 0xfbd   :  { %2658 = vsyncpa [#allocation3 + $0x1], 1 }
 0xfbe   :  { %2659 = vsyncpa [#allocation6], 1 }
 0xfbf   :  { %2660 = vsyncpa [#allocation9], 1 }
 0xfc0   :  { %2661 = vsyncpa [#allocation12], 1 }
 0xfc1   :  { %2662 = vsyncpa [#allocation15], 1 }
 0xfc2   :  { %2663 = vsyncpa [#allocation18], 1 }
 0xfc3   :  { %2664 = vsyncpa [#allocation21], 1 }
 0xfc4   :  { %2665 = vsyncpa [#allocation4], 1 }
 0xfc5   :  { %2667 = vsyncpa [#allocation4 + $0x1], 1 }
 0xfc6   :  { %2668 = vsyncpa [#allocation24], 1 }
 0xfc7   :  { %2670 = vsyncpa [#allocation24 + $0x1], 1 }

// kernel: tpu_custom_call.1
= control target key start
LH: loop header
LB: loop body
LE: loop exit
PB: predicated region body
PF: predicated region fallthrough
CT: control target
= control target key end

     0   :  { %s4913_s0 = inlined_call_operand.vmem [shape: f32[2,8,32], index: 0, kind: input, shape index: {}]   ;;  %s4914_s1 = inlined_call_operand.vmem [shape: f32[2,8,32], index: 1, kind: input, shape index: {}]   ;;  %s4915_s2 = inlined_call_operand.vmem [shape: f32[2,8,32], index: 2, kind: input, shape index: {}]   ;;  %s4916_s3 = inlined_call_operand.hbm [shape: f32[8,8], index: 3, kind: input, shape index: {}]   ;;  %s4917_s4 = inlined_call_operand.hbm [shape: f32[8,8], index: 4, kind: input, shape index: {}]   ;;  %s4918_s5 = inlined_call_operand.hbm [shape: bf16[32,32], index: 5, kind: input, shape index: {}]   ;;  %s4919_s6 = inlined_call_operand.hbm [shape: f32[1,32], index: 6, kind: input, shape index: {}]   ;;  %s4920_s7 = inlined_call_operand.hbm [shape: bf16[32,64], index: 7, kind: input, shape index: {}]   ;;  %s4921_s8 = inlined_call_operand.hbm [shape: f32[1,64], index: 8, kind: input, shape index: {}]   ;;  %s4922_s9 = inlined_call_operand.vmem [shape: bf16[32,32], index: 9, kind: input, shape index: {}]   ;;  %s4923_s10 = inlined_call_operand.hbm [shape: f32[1,32], index: 10, kind: input, shape index: {}]   ;;  %s4924_s11 = inlined_call_operand.hbm [shape: bf16[32,32], index: 11, kind: input, shape index: {}]   ;;  %s4925_s12 = inlined_call_operand.hbm [shape: f32[1,32], index: 12, kind: input, shape index: {}]   ;;  %s4926_s13 = inlined_call_operand.vmem [shape: bf16[32,64], index: 13, kind: input, shape index: {}]   ;;  %s4927_s14 = inlined_call_operand.hbm [shape: f32[1,64], index: 14, kind: input, shape index: {}]   ;;  %s4928_s15 = inlined_call_operand.hbm [shape: bf16[32,32], index: 15, kind: input, shape index: {}]   ;;  %s4929_s16 = inlined_call_operand.hbm [shape: f32[1,32], index: 16, kind: input, shape index: {}]   ;;  %s4930_s17 = inlined_call_operand.vmem [shape: bf16[32,64], index: 17, kind: input, shape index: {}]   ;;  %s4931_s18 = inlined_call_operand.vmem [shape: f32[1,64], index: 18, kind: input, shape index: {}]   ;;  %s4932_s19 = inlined_call_operand.vmem [shape: bf16[64,32], index: 19, kind: input, shape index: {}]   ;;  %s4933_s20 = inlined_call_operand.vmem [shape: f32[1,32], index: 20, kind: input, shape index: {}]   ;;  %s4934_s21 = inlined_call_operand.vmem [shape: f32[1,32], index: 21, kind: input, shape index: {}]   ;;  %s4935_s22 = inlined_call_operand.vmem [shape: f32[1,32], index: 22, kind: input, shape index: {}]   ;;  %s4936_s23 = inlined_call_operand.hbm [shape: f32[2,8,32], index: 23, kind: output, shape index: {0}]   ;;  %s4937_s24 = inlined_call_operand.hbm [shape: f32[2,4,8,8], index: 24, kind: output, shape index: {1}]   ;;  %s4938_s25 = inlined_call_operand.hbm [shape: f32[2,4,8,8], index: 25, kind: output, shape index: {2}]  }
   0x1   :  { %4973 = sst [smem:[#allocation43_spill]] %s4913_s0 }
   0x2   :  { %4974 = sst [smem:[#allocation44_spill]] %s4914_s1 }
   0x3   :  { %4975 = sst [smem:[#allocation45_spill]] %s4915_s2 }
   0x4   :  { %4976 = sst [smem:[#allocation46_spill]] %s4916_s3 }
   0x5   :  { %4977 = sst [smem:[#allocation47_spill]] %s4917_s4 }
   0x6   :  { %4978 = sst [smem:[#allocation48_spill]] %s4918_s5 }
   0x7   :  { %4979 = sst [smem:[#allocation49_spill]] %s4919_s6 }
   0x8   :  { %4980 = sst [smem:[#allocation50_spill]] %s4920_s7 }
   0x9   :  { %4981 = sst [smem:[#allocation51_spill]] %s4921_s8 }
   0xa   :  { %4982 = sst [smem:[#allocation52_spill]] %s4922_s9 }
   0xb   :  { %4983 = sst [smem:[#allocation53_spill]] %s4924_s11 }
   0xc   :  { %4984 = sst [smem:[#allocation54_spill]] %s4927_s14 }
   0xd   :  { %4985 = sst [smem:[#allocation55_spill]] %s4934_s21 }
   0xe   :  { %4986 = sst [smem:[#allocation56_spill]] %s4935_s22 }
   0xf   :  { %4987 = sst [smem:[#allocation57_spill]] %s4936_s23 }
  0x10   :  { %4988 = sst [smem:[#allocation58_spill]] %s4937_s24 }
  0x11   :  { %4989 = sst [smem:[#allocation59_spill]] %s4938_s25 }
  0x12   :  { %31 = vsyncpa [#allocation3], 0 }
  0x13   :  { %32 = vsyncpa [#allocation6], 0 }
  0x14   :  { %33 = vsyncpa [#allocation9], 0 }
  0x15   :  { %34 = vsyncpa [#allocation12], 0 }
  0x16   :  { %35 = vsyncpa [#allocation15], 0 }
  0x17   :  { %36 = vsyncpa [#allocation18], 0 }
  0x18   :  { %37 = vsyncpa [#allocation21], 0 }
  0x19   :  { %38 = vsyncpa [#allocation4], 0 }
  0x1a   :  { %40 = vsyncpa [#allocation4 + $0x1], 0 }
  0x1b   :  { %41 = vsyncpa [#allocation24], 0 }
  0x1c   :  { %43 = vsyncpa [#allocation24 + $0x1], 0  ;;  %s4133_s29 = smov 0   ;;  %s4135_s2 = smov 0  }
  0x1d   :  { %s4137_s6 = smov 0   ;;  %s4139_s30 = smov 0  }
  0x1e   :  { %s4141_s7 = smov 0   ;;  %s4143_s3 = smov 0  }
  0x1f LB: > { %4990 = sst [smem:[#allocation35_spill]] %s3954_s29  ;;  %s4164_s26 = sadd.s32 4294967295, %s3974_s3   ;;  %s3974_s3 = sphi %s4143_s3, %s49_s3   ;;  %s3970_s7 = sphi %s4141_s7, %s5052_s7   ;;  %s3966_s30 = sphi %s4139_s30, %s5051_s30   ;;  %s3962_s6 = sphi %s4137_s6, %s5050_s6   ;;  %s3958_s2 = sphi %s4135_s2, %s5054_s2   ;;  %s3954_s29 = sphi %s4133_s29, %s5053_s29  }
  0x20   : > { %4991 = sst [smem:[#allocation36_spill]] %s3962_s6  ;;  %s4947_s1 = sadd.s32 4294967294, %s3974_s3  }
  0x21   : > { %4992 = sst [smem:[#allocation37_spill]] %s3970_s7  ;;  %s61_s8 = sadd.s32 1, %s3970_s7 }
  0x22   : > { %4993 = sst [smem:[#allocation38_spill]] %s3974_s3  ;;  %s580_s27 = sadd.s32 1, %s3962_s6 }
  0x23   : > { %p63_p0 = scmp.ge.s32.totalorder %s61_s8, 2  ;;  %p590_p1 = scmp.ne.s32.totalorder %s3962_s6, %s3958_s2 }
  0x24   : > { %p591_p2 = scmp.eq.s32.totalorder %s4164_s26, 1  ;;  %p596_p3 = scmp.ne.s32.totalorder %s3958_s2, %s3954_s29 }
  0x25   : > { %s5056_s8 = smov (%p63_p0, %s61_s8), 0  ;;  %p597_p5 = scmp.eq.s32.totalorder %s4947_s1, 1 }
  0x26   : > { %4994 = sst [smem:[#allocation39_spill]] %s5056_s8  ;;  %p4176_p4 = por %p591_p2, %p590_p1 }
  0x27   : > { %s575_s28 = ssub.s32 %s3970_s7, %s5056_s8  ;;  %p2903_p6 = scmp.ge.s32.totalorder %s3974_s3, 1 }
  0x28   : > { %s4995_s4 = scalar_select %p4176_p4, 1, 0 }
  0x29   : > { %p578_p7 = scmp.eq.s32.totalorder %s575_s28, 0  ;;  %p4185_p8 = por %p597_p5, %p596_p3 }
  0x2a   : > { %4996 = sst [smem:[#allocation40_spill]] %s4995_s4  ;;  %p660_p9 = scmp.lt.s32.totalorder %s3974_s3, 3 }
  0x2b   : > { %s4997_s9 = scalar_select %p4185_p8, 1, 0 }
  0x2c   : > { %s4191_s5 = scalar_select %p578_p7, %s3962_s6, %s580_s27  }
  0x2d   : > { %4998 = sst [smem:[#allocation41_spill]] %s4997_s9  ;;  %p4193_p10 = pnand %p2903_p6, %p660_p9 }
  0x2e   : > { %4999 = sst [smem:[#allocation42_spill]] %s4191_s5  ;;  %p4956_p11 = scmp.eq.s32.totalorder %s4164_s26, 0 }
  0x2f   : > { %s5000_s0 = scalar_select %p4193_p10, 1, 0 }
  0x30   : > { %p3276_p12 = pneg %p4193_p10  ;;  %s3976_s29 = smov [#allocation5]  }
  0x31   : > { %s688_s1 = sshll.u32 %s3976_s29, 4  ;;  %s3977_s8 = smov [#allocation8]   ;;  %s689_s1 = int_to_ptr.vmem [resolvable:$true] %s688_s1 }
  0x32   : > { %s712_s28 = sshll.u32 %s3977_s8, 4  ;;  %p4202_p13 = pnand %p4956_p11, %p3276_p12  ;;  %s4206_s28 = int_to_ptr.vmem [resolvable:$true] %s712_s28 }
  0x33   : > { %s3978_s27 = smov [#allocation11]   ;;  %s5002_s3 = sld [smem:[#allocation47_spill]] }
  0x34   : > { %s4208_s5 = sshll.u32 %s3978_s27, 4  ;;  %p4218_p1 = pneg %p4202_p13  ;;  %s737_s5 = int_to_ptr.vmem [resolvable:$true] %s4208_s5 }
  0x39   : > { %s5003_s23 = smov %s5002_s3  ;;  %s3472_s22 = scalar_lea.hbm %s5002_s3, 128 }
  0x3a   : > { %p3473_p0 = scmp.ne.s32.totalorder %s5003_s23, %s3472_s22  ;;  %p3479_p5 = scmp.lt.u32.totalorder %s3472_s22, %s5003_s23 }
  0x3c   : > { %p3475_p2 = pnand %p4218_p1, %p3473_p0 }
  0x3e   : > { %p3476_p3 = pneg %p3475_p2 }
  0x40   : > { %p3481_p6 = pnand %p3479_p5, %p3476_p3 }
  0x42   : > { %3484 = shalt.err (!%p3481_p6)
}
  0x43   : > { %s3485_s6 = scalar_lea.vmem %s689_s1, 128  ;;  %p3493_p11 = scmp.lt.s32.totalorder %s689_s1, %s689_s1 }
  0x44   : > { %p3486_p7 = scmp.ne.s32.totalorder %s689_s1, %s3485_s6  ;;  %p3494_p8 = scmp.lt.s32.totalorder %s3485_s6, %s3485_s6 }
  0x46   : > { %p3488_p9 = pnand %p3486_p7, %p4218_p1  ;;  %p3495_p4 = por %p3494_p8, %p3493_p11 }
  0x48   : > { %p3489_p12 = pneg %p3488_p9 }
  0x4a   : > { %p3496_p10 = pnand %p3495_p4, %p3489_p12 }
  0x4c   : > { %3499 = shalt.err (!%p3496_p10)
}
  0x4d   : > { %3282 = dma.hbm_to_vmem [thread:$0]  (!%p4202_p13), %s5003_s23, 128, %s689_s1, [#allocation6]  }
  0x4e   : > { %s5005_s9 = sld [smem:[#allocation49_spill]] }
  0x54   : > { %s3500_s29 = scalar_lea.hbm %s5005_s9, 16 }
  0x55   : > { %p3501_p0 = scmp.ne.s32.totalorder %s5005_s9, %s3500_s29  ;;  %p3507_p4 = scmp.lt.u32.totalorder %s3500_s29, %s5005_s9 }
  0x57   : > { %p3503_p2 = pnand %p3501_p0, %p4218_p1 }
  0x59   : > { %p3504_p8 = pneg %p3503_p2 }
  0x5b   : > { %p3509_p10 = pnand %p3507_p4, %p3504_p8 }
  0x5d   : > { %3512 = shalt.err (!%p3509_p10)
}
  0x5e   : > { %s3513_s1 = scalar_lea.vmem %s4206_s28, 16  ;;  %s3520_s24 = scalar_lea.vmem %s4206_s28, 32 }
  0x5f   : > { %p3514_p11 = scmp.ne.s32.totalorder %s4206_s28, %s3513_s1  ;;  %p3521_p6 = scmp.lt.s32.totalorder %s4206_s28, %s4206_s28 }
  0x60   : > { %p3522_p7 = scmp.lt.s32.totalorder %s3520_s24, %s3513_s1 }
  0x61   : > { %p3516_p3 = pnand %p3514_p11, %p4218_p1 }
  0x62   : > { %p3523_p9 = por %p3522_p7, %p3521_p6 }
  0x63   : > { %p3517_p5 = pneg %p3516_p3 }
  0x65   : > { %p3524_p12 = pnand %p3523_p9, %p3517_p5 }
  0x67   : > { %3527 = shalt.err (!%p3524_p12)
}
  0x68   : > { %3288 = dma.hbm_to_vmem [thread:$0]  (!%p4202_p13), %s5005_s9, 16, %s4206_s28, [#allocation9]  }
  0x69   : > { %s5006_s25 = sld [smem:[#allocation51_spill]] }
  0x6f   : > { %s3528_s29 = scalar_lea.hbm %s5006_s25, 16 }
  0x70   : > { %p3529_p0 = scmp.ne.s32.totalorder %s5006_s25, %s3528_s29  ;;  %p3535_p4 = scmp.lt.u32.totalorder %s3528_s29, %s5006_s25 }
  0x72   : > { %p3531_p2 = pnand %p3529_p0, %p4218_p1 }
  0x74   : > { %p3532_p8 = pneg %p3531_p2 }
  0x76   : > { %p3537_p10 = pnand %p3535_p4, %p3532_p8 }
  0x78   : > { %3540 = shalt.err (!%p3537_p10)
}
  0x79   : > { %s3541_s4 = scalar_lea.vmem %s737_s5, 16  ;;  %s3548_s28 = scalar_lea.vmem %s737_s5, 32 }
  0x7a   : > { %p3542_p11 = scmp.ne.s32.totalorder %s737_s5, %s3541_s4  ;;  %p3549_p6 = scmp.lt.s32.totalorder %s737_s5, %s737_s5 }
  0x7b   : > { %p3550_p7 = scmp.lt.s32.totalorder %s3548_s28, %s3541_s4 }
  0x7c   : > { %p3544_p3 = pnand %p3542_p11, %p4218_p1 }
  0x7d   : > { %p3551_p9 = por %p3550_p7, %p3549_p6 }
  0x7e   : > { %p3545_p5 = pneg %p3544_p3 }
  0x80   : > { %p3552_p12 = pnand %p3551_p9, %p3545_p5 }
  0x82   : > { %3555 = shalt.err (!%p3552_p12)
}
  0x83   : > { %3294 = dma.hbm_to_vmem [thread:$0]  (!%p4202_p13), %s5006_s25, 16, %s737_s5, [#allocation12]  }
  0x84   : > { %s3979_s22 = smov [#allocation14]   ;;  %s3980_s27 = smov [#allocation17]  }
  0x85   : > { %s760_s29 = sshll.u32 %s3979_s22, 4  ;;  %s788_s6 = sshll.u32 %s3980_s27, 4  ;;  %s761_s29 = int_to_ptr.vmem [resolvable:$true] %s760_s29  ;;  %s4277_s6 = int_to_ptr.vmem [resolvable:$true] %s788_s6 }
  0x86   : > { %s5007_s11 = sld [smem:[#allocation53_spill]] }
  0x8c   : > { %s3556_s4 = scalar_lea.hbm %s5007_s11, 256 }
  0x8d   : > { %p3557_p0 = scmp.ne.s32.totalorder %s5007_s11, %s3556_s4  ;;  %p3563_p4 = scmp.lt.u32.totalorder %s3556_s4, %s5007_s11 }
  0x8f   : > { %p3559_p2 = pnand %p3557_p0, %p4218_p1 }
  0x91   : > { %p3560_p8 = pneg %p3559_p2 }
  0x93   : > { %p3565_p10 = pnand %p3563_p4, %p3560_p8 }
  0x95   : > { %3568 = shalt.err (!%p3565_p10)
}
  0x96   : > { %s3569_s3 = scalar_lea.vmem %s761_s29, 256  ;;  %p3577_p6 = scmp.lt.s32.totalorder %s761_s29, %s761_s29 }
  0x97   : > { %p3570_p11 = scmp.ne.s32.totalorder %s761_s29, %s3569_s3  ;;  %p3578_p7 = scmp.lt.s32.totalorder %s3569_s3, %s3569_s3 }
  0x99   : > { %p3572_p3 = pnand %p3570_p11, %p4218_p1  ;;  %p3579_p9 = por %p3578_p7, %p3577_p6 }
  0x9b   : > { %p3573_p5 = pneg %p3572_p3 }
  0x9d   : > { %p3580_p12 = pnand %p3579_p9, %p3573_p5 }
  0x9f   : > { %3583 = shalt.err (!%p3580_p12)
}
  0xa0   : > { %s4964_s9 = smov 64   ;;  %s4966_s22 = smov 4  }
  0xa1   : > { %3300 = dma.hbm_to_vmem [thread:$0]  (!%p4202_p13), %s5007_s11, 256, %s761_s29, [#allocation15], %s4964_s9, %s4964_s9, %s4966_s22  }
  0xa2   : > { %s5008_s14 = sld [smem:[#allocation54_spill]] }
  0xa8   : > { %s3584_s28 = scalar_lea.hbm %s5008_s14, 16 }
  0xa9   : > { %p3585_p0 = scmp.ne.s32.totalorder %s5008_s14, %s3584_s28  ;;  %p3591_p4 = scmp.lt.u32.totalorder %s3584_s28, %s5008_s14 }
  0xab   : > { %p3587_p2 = pnand %p3585_p0, %p4218_p1 }
  0xad   : > { %p3588_p8 = pneg %p3587_p2 }
  0xaf   : > { %p3593_p10 = pnand %p3591_p4, %p3588_p8 }
  0xb1   : > { %3596 = shalt.err (!%p3593_p10)
}
  0xb2   : > { %s3597_s29 = scalar_lea.vmem %s4277_s6, 16  ;;  %s3604_s27 = scalar_lea.vmem %s4277_s6, 32 }
  0xb3   : > { %p3598_p11 = scmp.ne.s32.totalorder %s4277_s6, %s3597_s29  ;;  %p3605_p6 = scmp.lt.s32.totalorder %s4277_s6, %s4277_s6 }
  0xb4   : > { %p3606_p7 = scmp.lt.s32.totalorder %s3604_s27, %s3597_s29 }
  0xb5   : > { %p3600_p3 = pnand %p3598_p11, %p4218_p1 }
  0xb6   : > { %p3607_p9 = por %p3606_p7, %p3605_p6 }
  0xb7   : > { %p3601_p5 = pneg %p3600_p3 }
  0xb9   : > { %p3608_p12 = pnand %p3607_p9, %p3601_p5 }
  0xbb   : > { %3611 = shalt.err (!%p3608_p12)
}
  0xbc   : > { %3306 = dma.hbm_to_vmem [thread:$0]  (!%p4202_p13), %s5008_s14, 16, %s4277_s6, [#allocation18]  }
  0xbd   : > { %s3983_s24 = smov [#allocation2]   ;;  %s5009_s5 = sld [smem:[#allocation46_spill]] }
  0xbe   : > { %s675_s4 = sshll.u32 %s3983_s24, 4  ;;  %s676_s4 = int_to_ptr.vmem [resolvable:$true] %s675_s4 }
  0xc3   : > { %s3612_s3 = scalar_lea.hbm %s5009_s5, 128 }
  0xc4   : > { %p3613_p0 = scmp.ne.s32.totalorder %s5009_s5, %s3612_s3  ;;  %p3619_p4 = scmp.lt.u32.totalorder %s3612_s3, %s5009_s5 }
  0xc6   : > { %p3615_p2 = pnand %p3613_p0, %p4218_p1 }
  0xc8   : > { %p3616_p8 = pneg %p3615_p2 }
  0xca   : > { %p3621_p10 = pnand %p3619_p4, %p3616_p8 }
  0xcc   : > { %3624 = shalt.err (!%p3621_p10)
}
  0xcd   : > { %s3625_s6 = scalar_lea.vmem %s676_s4, 128  ;;  %p3633_p6 = scmp.lt.s32.totalorder %s676_s4, %s676_s4 }
  0xce   : > { %p3626_p11 = scmp.ne.s32.totalorder %s676_s4, %s3625_s6  ;;  %p3634_p7 = scmp.lt.s32.totalorder %s3625_s6, %s3625_s6 }
  0xd0   : > { %p3628_p3 = pnand %p3626_p11, %p4218_p1  ;;  %p3635_p9 = por %p3634_p7, %p3633_p6 }
  0xd2   : > { %p3629_p5 = pneg %p3628_p3 }
  0xd4   : > { %p3636_p12 = pnand %p3635_p9, %p3629_p5 }
  0xd6   : > { %3639 = shalt.err (!%p3636_p12)
}
  0xd7   : > { %3279 = dma.hbm_to_vmem [thread:$0]  (!%p4202_p13), %s5009_s5, 128, %s676_s4, [#allocation3]  }
  0xd8   : > { %s3984_s22 = smov [#allocation7]   ;;  %s3985_s24 = smov [#allocation10]  }
  0xd9   : > { %s698_s1 = sshll.u32 %s3984_s22, 4  ;;  %s722_s28 = sshll.u32 %s3985_s24, 4  ;;  %s699_s1 = int_to_ptr.vmem [resolvable:$true] %s698_s1  ;;  %s723_s28 = int_to_ptr.vmem [resolvable:$true] %s722_s28 }
  0xda   : > { %s5010_s29 = sld [smem:[#allocation48_spill]] }
  0xe0   : > { %s5011_s27 = smov %s5010_s29  ;;  %s3640_s11 = scalar_lea.hbm %s5010_s29, 256 }
  0xe1   : > { %p3641_p0 = scmp.ne.s32.totalorder %s5011_s27, %s3640_s11  ;;  %p3647_p4 = scmp.lt.u32.totalorder %s3640_s11, %s5011_s27 }
  0xe3   : > { %p3643_p2 = pnand %p3641_p0, %p4218_p1 }
  0xe5   : > { %p3644_p8 = pneg %p3643_p2 }
  0xe7   : > { %p3649_p10 = pnand %p3647_p4, %p3644_p8 }
  0xe9   : > { %3652 = shalt.err (!%p3649_p10)
}
  0xea   : > { %s3653_s4 = scalar_lea.vmem %s699_s1, 256  ;;  %p3661_p6 = scmp.lt.s32.totalorder %s699_s1, %s699_s1 }
  0xeb   : > { %p3654_p11 = scmp.ne.s32.totalorder %s699_s1, %s3653_s4  ;;  %p3662_p7 = scmp.lt.s32.totalorder %s3653_s4, %s3653_s4 }
  0xed   : > { %p3656_p3 = pnand %p3654_p11, %p4218_p1  ;;  %p3663_p9 = por %p3662_p7, %p3661_p6 }
  0xef   : > { %p3657_p5 = pneg %p3656_p3 }
  0xf1   : > { %p3664_p12 = pnand %p3663_p9, %p3657_p5 }
  0xf3   : > { %3667 = shalt.err (!%p3664_p12)
}
  0xf4   : > { %s5012_s14 = smov 4   ;;  %s5013_s23 = smov 64  }
  0xf5   : > { %3285 = dma.hbm_to_vmem [thread:$0]  (!%p4202_p13), %s5011_s27, 256, %s699_s1, [#allocation6], %s5013_s23, %s5013_s23, %s5012_s14  }
  0xf6   : > { %s5014_s21 = sld [smem:[#allocation50_spill]] }
  0xfc   : > { %s3668_s3 = scalar_lea.hbm %s5014_s21, 256 }
  0xfd   : > { %p3669_p0 = scmp.ne.s32.totalorder %s5014_s21, %s3668_s3  ;;  %p3675_p4 = scmp.lt.u32.totalorder %s3668_s3, %s5014_s21 }
  0xff   : > { %p3671_p2 = pnand %p3669_p0, %p4218_p1 }
 0x101   : > { %p3672_p8 = pneg %p3671_p2 }
 0x103   : > { %p3677_p10 = pnand %p3675_p4, %p3672_p8 }
 0x105   : > { %3680 = shalt.err (!%p3677_p10)
}
 0x106   : > { %s3681_s25 = scalar_lea.vmem %s723_s28, 256  ;;  %p3689_p6 = scmp.lt.s32.totalorder %s723_s28, %s723_s28 }
 0x107   : > { %p3682_p11 = scmp.ne.s32.totalorder %s723_s28, %s3681_s25  ;;  %p3690_p7 = scmp.lt.s32.totalorder %s3681_s25, %s3681_s25 }
 0x109   : > { %p3684_p3 = pnand %p3682_p11, %p4218_p1  ;;  %p3691_p9 = por %p3690_p7, %p3689_p6 }
 0x10b   : > { %p3685_p5 = pneg %p3684_p3 }
 0x10d   : > { %p3692_p12 = pnand %p3691_p9, %p3685_p5 }
 0x10f   : > { %3695 = shalt.err (!%p3692_p12)
}
 0x110   : > { %3291 = dma.hbm_to_vmem [thread:$0]  (!%p4202_p13), %s5014_s21, 256, %s723_s28, [#allocation9], %s5013_s23, %s5013_s23, %s5012_s14  }
 0x111   : > { %s3986_s22 = smov [#allocation13]   ;;  %s3987_s3 = smov [#allocation16]  }
 0x112   : > { %s750_s24 = sshll.u32 %s3986_s22, 4  ;;  %s774_s29 = sshll.u32 %s3987_s3, 4  ;;  %s751_s24 = int_to_ptr.vmem [resolvable:$true] %s750_s24  ;;  %s775_s29 = int_to_ptr.vmem [resolvable:$true] %s774_s29 }
 0x113   : > { %s3696_s4 = scalar_lea.hbm %s4923_s10, 16 }
 0x114   : > { %p3697_p0 = scmp.ne.s32.totalorder %s4923_s10, %s3696_s4  ;;  %p3703_p4 = scmp.lt.u32.totalorder %s3696_s4, %s4923_s10 }
 0x116   : > { %p3699_p2 = pnand %p3697_p0, %p4218_p1 }
 0x118   : > { %p3700_p8 = pneg %p3699_p2 }
 0x11a   : > { %p3705_p10 = pnand %p3703_p4, %p3700_p8 }
 0x11c   : > { %3708 = shalt.err (!%p3705_p10)
}
 0x11d   : > { %s3709_s28 = scalar_lea.vmem %s751_s24, 16  ;;  %s3716_s11 = scalar_lea.vmem %s751_s24, 32 }
 0x11e   : > { %p3710_p11 = scmp.ne.s32.totalorder %s751_s24, %s3709_s28  ;;  %p3717_p6 = scmp.lt.s32.totalorder %s751_s24, %s751_s24 }
 0x11f   : > { %p3718_p7 = scmp.lt.s32.totalorder %s3716_s11, %s3709_s28 }
 0x120   : > { %p3712_p3 = pnand %p3710_p11, %p4218_p1 }
 0x121   : > { %p3719_p9 = por %p3718_p7, %p3717_p6 }
 0x122   : > { %p3713_p5 = pneg %p3712_p3 }
 0x124   : > { %p3720_p12 = pnand %p3719_p9, %p3713_p5 }
 0x126   : > { %3723 = shalt.err (!%p3720_p12)
}
 0x127   : > { %3297 = dma.hbm_to_vmem [thread:$0]  (!%p4202_p13), %s4923_s10, 16, %s751_s24, [#allocation12]  }
 0x128   : > { %s3724_s6 = scalar_lea.hbm %s4925_s12, 16 }
 0x129   : > { %p3725_p0 = scmp.ne.s32.totalorder %s4925_s12, %s3724_s6  ;;  %p3731_p4 = scmp.lt.u32.totalorder %s3724_s6, %s4925_s12 }
 0x12b   : > { %p3727_p2 = pnand %p3725_p0, %p4218_p1 }
 0x12d   : > { %p3728_p8 = pneg %p3727_p2 }
 0x12f   : > { %p3733_p10 = pnand %p3731_p4, %p3728_p8 }
 0x131   : > { %3736 = shalt.err (!%p3733_p10)
}
 0x132   : > { %s3737_s28 = scalar_lea.vmem %s775_s29, 16  ;;  %s3744_s24 = scalar_lea.vmem %s775_s29, 32 }
 0x133   : > { %p3738_p11 = scmp.ne.s32.totalorder %s775_s29, %s3737_s28  ;;  %p3745_p6 = scmp.lt.s32.totalorder %s775_s29, %s775_s29 }
 0x134   : > { %p3746_p7 = scmp.lt.s32.totalorder %s3744_s24, %s3737_s28 }
 0x135   : > { %p3740_p3 = pnand %p3738_p11, %p4218_p1 }
 0x136   : > { %p3747_p9 = por %p3746_p7, %p3745_p6 }
 0x137   : > { %p3741_p5 = pneg %p3740_p3 }
 0x139   : > { %p3748_p12 = pnand %p3747_p9, %p3741_p5 }
 0x13b   : > { %3751 = shalt.err (!%p3748_p12)
}
 0x13c   : > { %3303 = dma.hbm_to_vmem [thread:$0]  (!%p4202_p13), %s4925_s12, 16, %s775_s29, [#allocation15]  }
 0x13d   : > { %s3988_s22 = smov [#allocation19]   ;;  %s3989_s3 = smov [#allocation20]  }
 0x13e   : > { %s798_s27 = sshll.u32 %s3988_s22, 4  ;;  %s812_s6 = sshll.u32 %s3989_s3, 4  ;;  %s799_s27 = int_to_ptr.vmem [resolvable:$true] %s798_s27  ;;  %s813_s6 = int_to_ptr.vmem [resolvable:$true] %s812_s6 }
 0x13f   : > { %s3752_s25 = scalar_lea.hbm %s4928_s15, 256 }
 0x140   : > { %p3753_p0 = scmp.ne.s32.totalorder %s4928_s15, %s3752_s25  ;;  %p3759_p4 = scmp.lt.u32.totalorder %s3752_s25, %s4928_s15 }
 0x142   : > { %p3755_p2 = pnand %p3753_p0, %p4218_p1 }
 0x144   : > { %p3756_p8 = pneg %p3755_p2 }
 0x146   : > { %p3761_p10 = pnand %p3759_p4, %p3756_p8 }
 0x148   : > { %3764 = shalt.err (!%p3761_p10)
}
 0x149   : > { %s3765_s29 = scalar_lea.vmem %s799_s27, 256  ;;  %p3773_p6 = scmp.lt.s32.totalorder %s799_s27, %s799_s27 }
 0x14a   : > { %p3766_p11 = scmp.ne.s32.totalorder %s799_s27, %s3765_s29  ;;  %p3774_p7 = scmp.lt.s32.totalorder %s3765_s29, %s3765_s29 }
 0x14c   : > { %p3768_p3 = pnand %p3766_p11, %p4218_p1  ;;  %p3775_p9 = por %p3774_p7, %p3773_p6 }
 0x14e   : > { %p3769_p5 = pneg %p3768_p3 }
 0x150   : > { %p3776_p12 = pnand %p3775_p9, %p3769_p5 }
 0x152   : > { %3779 = shalt.err (!%p3776_p12)
}
 0x153   : > { %3309 = dma.hbm_to_vmem [thread:$0]  (!%p4202_p13), %s4928_s15, 256, %s799_s27, [#allocation18], %s5013_s23, %s5013_s23, %s5012_s14  }
 0x154   : > { %s3780_s4 = scalar_lea.hbm %s4929_s16, 16 }
 0x155   : > { %p3781_p0 = scmp.ne.s32.totalorder %s4929_s16, %s3780_s4  ;;  %p3787_p4 = scmp.lt.u32.totalorder %s3780_s4, %s4929_s16 }
 0x157   : > { %p3783_p2 = pnand %p3781_p0, %p4218_p1 }
 0x159   : > { %p3784_p8 = pneg %p3783_p2 }
 0x15b   : > { %p3789_p10 = pnand %p3787_p4, %p3784_p8 }
 0x15d   : > { %3792 = shalt.err (!%p3789_p10)
}
 0x15e   : > { %s3793_s11 = scalar_lea.vmem %s813_s6, 16  ;;  %s3800_s14 = scalar_lea.vmem %s813_s6, 32 }
 0x15f   : > { %p3794_p11 = scmp.ne.s32.totalorder %s813_s6, %s3793_s11  ;;  %p3801_p6 = scmp.lt.s32.totalorder %s813_s6, %s813_s6 }
 0x160   : > { %p3802_p7 = scmp.lt.s32.totalorder %s3800_s14, %s3793_s11 }
 0x161   : > { %p3796_p3 = pnand %p3794_p11, %p4218_p1 }
 0x162   : > { %p3803_p9 = por %p3802_p7, %p3801_p6 }
 0x163   : > { %p3797_p5 = pneg %p3796_p3 }
 0x165   : > { %p3804_p12 = pnand %p3803_p9, %p3797_p5 }
 0x167   : > { %3807 = shalt.err (!%p3804_p12)
}
 0x168   : > { %3312 = dma.hbm_to_vmem [thread:$0]  (!%p4202_p13), %s4929_s16, 16, %s813_s6, [#allocation21]  }
 0x169   : > { %p5015_p0 = scmp.ne.s32.totalorder %s5000_s0, 0 }
 0x16a   : > { %p5016_p2 = scmp.eq.s32.totalorder (!%p5015_p0), %s4164_s26, 0 }
 0x16b   : > { %867 = sbr.rel (%p5015_p0) target bundleno = 4002 (0xfa2), region = 112 }
 0x172   : > { %3917 = dma.done.wait (%p5016_p2), [#allocation3], 128   ;;  %p5017_p1 = pmov %p5016_p2 }
 0x174   : > { %3919 = vsyncadd (%p5017_p1), [#allocation3], 4294967168  ;;  %p5018_p8 = pmov %p5017_p1 }
 0x175   : > { %p5019_p4 = pmov %p5017_p1 }
 0x176   : > { %3921 = dma.done.wait (%p5018_p8), [#allocation6], 384  }
 0x177   : > { %3923 = vsyncadd (%p5019_p4), [#allocation6], 4294966912  ;;  %p5020_p10 = pmov %p5017_p1 }
 0x178   : > { %p5021_p13 = pmov %p5017_p1 }
 0x179   : > { %3925 = dma.done.wait (%p5020_p10), [#allocation9], 272  }
 0x17a   : > { %3927 = vsyncadd (%p5021_p13), [#allocation9], 4294967024  ;;  %p5022_p11 = pmov %p5017_p1 }
 0x17b   : > { %p5023_p3 = pmov %p5017_p1 }
 0x17c   : > { %3929 = dma.done.wait (%p5022_p11), [#allocation12], 32  }
 0x17d   : > { %3931 = vsyncadd (%p5023_p3), [#allocation12], 4294967264  ;;  %p5024_p5 = pmov %p5017_p1 }
 0x17e   : > { %p5025_p6 = pmov %p5017_p1 }
 0x17f   : > { %3933 = dma.done.wait (%p5024_p5), [#allocation15], 272  }
 0x180   : > { %3935 = vsyncadd (%p5025_p6), [#allocation15], 4294967024  ;;  %p5026_p7 = pmov %p5017_p1 }
 0x181   : > { %p5027_p9 = pmov %p5017_p1 }
 0x182   : > { %3937 = dma.done.wait (%p5026_p7), [#allocation18], 272  }
 0x183   : > { %3939 = vsyncadd (%p5027_p9), [#allocation18], 4294967024  ;;  %p5028_p12 = pmov %p5017_p1 }
 0x184   : > { %p5029_p0 = pmov %p5017_p1 }
 0x185   : > { %3941 = dma.done.wait (%p5028_p12), [#allocation21], 16  }
 0x186   : > { %3943 = vsyncadd (%p5029_p0), [#allocation21], 4294967280  ;;  %p999_p2 = scmp.lt.s32.totalorder %s3966_s30, 1  ;;  %v3990_v0 = vmov 0.0   ;;  %vm3991_vm0 = vmmov 0   ;;  %v3420_v1 = vld [vmem:[#allocation7] sm:$0xff]  }
 0x187   : > { %3058 = vmatprep.subr.bf16.mxu0 %v3990_v0  ;;  %3066 = vmatprep.subr.bf16.mxu1 %v3990_v0  ;;  %v3421_v2 = vld [vmem:[#allocation10] sm:$0xff]   ;;  %s5030_s29 = sld [smem:[#allocation43_spill]]  ;;  %s5031_s9 = sld [smem:[#allocation44_spill]]  ;;  %v3422_v3 = vld [vmem:[#allocation7 + $0x8] sm:$0xff]   ;;  %v3423_v4 = vld [vmem:[#allocation10 + $0x8] sm:$0xff]   ;;  %vm1043_vm1 = vcmask 261120  }
 0x188   : > { %3062 = vmatprep.mubr.msk.bf16.mxu0 %vm3991_vm0, %v3990_v0  ;;  %3070 = vmatprep.mubr.msk.bf16.mxu1 %vm3991_vm0, %v3990_v0  ;;  %s1000_s7 = scalar_select %p999_p2, %s3966_s30, 1  ;;  %v2936_v9 = vld [vmem:[#allocation8] ss:$0 sm:$0xff]  ;;  %v2940_v10 = vld [vmem:[#allocation11] ss:$0 sm:$0xff]  ;;  %vm1182_vm2 = vcmask 64512  }
 0x189   : > { %3059 = vmatpush3.bf16.msra.mxu0 %v3420_v1  ;;  %3067 = vmatpush3.bf16.msra.mxu1 %v3421_v2  ;;  %s3992_s25 = smov 120   ;;  %s3993_s1 = smov 104   ;;  %v1018_v39 = vld [vmem:[#allocation2] sm:$0xff]  ;;  %vm1421_vm3 = vcmask 1043456   ;;  %vm1625_vm4 = vcmask 130048   ;;  %vm1627_vm5 = vcmask 195584  }
 0x18a   : > { %s4497_s0 = sshll.u32 %s1000_s7, 3  ;;  %3060 = vmatprep.subr.bf16.mxu0 %v3990_v0  ;;  %3068 = vmatprep.subr.bf16.mxu1 %v3990_v0  ;;  %s3994_s28 = smov 112   ;;  %vm2485_vm6 = vcmask 523264  }
 0x18b   : > { %s3995_s24 = smov 96   ;;  %s4574_s11 = sand.u32 1, %s3958_s2  }
 0x18c   : > { %s2931_s14 = sshll.u32 %s4574_s11, 5  ;;  %s5032_s8 = sld [smem:[#allocation52_spill]] }
 0x18d   : > { %s1005_s5 = scalar_lea.vmem %s5030_s29, %s4497_s0  ;;  %s1009_s4 = scalar_lea.vmem %s5031_s9, %s4497_s0  ;;  %3061 = vmatpush3.bf16.msra.mxu0 %v3422_v3  ;;  %3069 = vmatpush3.bf16.msra.mxu1 %v3423_v4 }
 0x18e   : > { %v1015_v5 = vld [vmem:[%s1005_s5] sm:$0xff]  ;;  %3074 = vmatprep.subr.bf16.mxu0 %v3990_v0  ;;  %3080 = vmatprep.subr.bf16.mxu1 %v3990_v0  ;;  %s4579_s23 = scalar_lea.vmem [#allocation23], %s2931_s14  ;;  %s3996_s5 = smov 8  }
 0x18f   : > { %v1016_v6 = vld [vmem:[%s1009_s4] sm:$0xff]  ;;  %v1019_v7 = vpack.c.bf16 %v1015_v5, %v1015_v5  ;;  %s4972_s22 = smov 16   ;;  %s4971_s3 = smov 24  }
 0x190   : > { %v1087_v8 = vpack.c.bf16 %v1016_v6, %v1016_v6  ;;  %s5033_s6 = sld [smem:[#allocation45_spill]]  ;;  %s2998_s9 = sshll.u32 %s3966_s30, 9 }
 0x191   : > { %3063 = vmatmul.mubr.msk.bf16.vlgmr.msra.gmra.mrb[0].mxu0 %vm1043_vm1, %v1019_v7  ;;  %s5037_s7 = sld [smem:[#allocation58_spill]] }
 0x192   : > { %3071 = vmatmul.mubr.msk.bf16.vlgmr.msra.gmra.mrb[0].mxu1 %vm1043_vm1, %v1087_v8  ;;  %3076 = vmatprep.mubr.msk.bf16.mxu0 %vm3991_vm0, %v3990_v0 }
 0x193   : > { %3082 = vmatprep.mubr.msk.bf16.mxu1 %vm3991_vm0, %v3990_v0 }
 0x196   : > { %s1013_s29 = scalar_lea.vmem %s5033_s6, %s4497_s0  ;;  %s4704_s0 = scalar_lea.vmem [#allocation25], %s2931_s14 }
 0x197   : > { %s4783_s6 = scalar_lea.hbm %s5037_s7, %s2998_s9 }
 0x264   : > { %v1081_v11 = vpop.f32.mrb[0].mxu0 }
 0x265   : > { %v1082_v12 = vadd.f32 %v2936_v9, %v1081_v11  ;;  %v1148_v13 = vpop.f32.mrb[0].mxu1  ;;  %v3064_v14 = vpop.f32.mrb[1].mxu0 }
 0x266   : > { %v1149_v15 = vadd.f32 %v2940_v10, %v1148_v13  ;;  %v3072_v16 = vpop.f32.mrb[1].mxu1  ;;  %v1084_v17 = vpop.f32.mrb[2].mxu0 }
 0x267   : > { %v1151_v18 = vpop.f32.mrb[2].mxu1  ;;  %1155 = vrot.lane.b32.xlu1 %v1082_v12, %s3992_s25  ;;  %v3065_v19 = vpop.f32.mrb[3].mxu0  ;;  %v1164_v23 = vpack.c.bf16 %v1082_v12, %v1082_v12 }
 0x268   : > { %1169 = vrot.lane.b32.xlu0 %v1149_v15, %s3992_s25  ;;  %v3073_v20 = vpop.f32.mrb[3].mxu1  ;;  %v4519_v21 = vpack.c.bf16 %v1149_v15, %v1149_v15 }
 0x26a   : > { %v1187_v22 = vsel %vm1182_vm2, %v4519_v21, 0 }
 0x26b   : > { %3075 = vmatpush3.bf16.xpose.msra.mxu0 %v1187_v22  ;;  %1175 = vrot.lane.b32.xlu1 %v1149_v15, %s3993_s1 }
 0x26c   : > { %1172 = vrot.lane.b32.xlu0 %v1149_v15, %s3994_s28  ;;  %3086 = vmatprep.subr.bf16.mxu0 %v3990_v0 }
 0x26f   : > { %1161 = vrot.lane.b32.xlu1 %v1082_v12, %s3993_s1 }
 0x270   : > { %1158 = vrot.lane.b32.xlu0 %v1082_v12, %s3994_s28 }
 0x272   : > { %3077 = vmatmul.mubr.msk.bf16.vlgmr.msra.gmra.mrb[4].mxu0 %vm1182_vm2, %v1164_v23 }
 0x273   : > { %3088 = vmatprep.mubr.msk.bf16.mxu0 %vm3991_vm0, %v3990_v0 }
 0x2d9   : > { %v1156_v24 = vpop.permute.xlu1 %1155 }
 0x2da   : > { %v1170_v25 = vpop.permute.xlu0 %1169  ;;  %v1165_v33 = vpack.c.bf16 %v1156_v24, %v1156_v24 }
 0x2db   : > { %v4531_v26 = vpack.c.bf16 %v1170_v25, %v1170_v25 }
 0x2dd   : > { %v1233_v27 = vsel %vm1182_vm2, %v4531_v26, 0  ;;  %v1176_v29 = vpop.permute.xlu1 %1175 }
 0x2de   : > { %3081 = vmatpush3.bf16.xpose.msra.mxu1 %v1233_v27  ;;  %v1173_v28 = vpop.permute.xlu0 %1172  ;;  %v4540_v32 = vpack.c.bf16 %v1176_v29, %v1176_v29 }
 0x2df   : > { %v4535_v30 = vpack.c.bf16 %v1173_v28, %v1173_v28  ;;  %3092 = vmatprep.subr.bf16.mxu1 %v3990_v0 }
 0x2e0   : > { %v1325_v35 = vsel %vm1182_vm2, %v4540_v32, 0 }
 0x2e1   : > { %v1279_v31 = vsel %vm1182_vm2, %v4535_v30, 0  ;;  %v1162_v37 = vpop.permute.xlu1 %1161 }
 0x2e2   : > { %3087 = vmatpush3.bf16.xpose.msra.mxu0 %v1279_v31  ;;  %v1159_v34 = vpop.permute.xlu0 %1158  ;;  %v1167_v38 = vpack.c.bf16 %v1162_v37, %v1162_v37 }
 0x2e3   : > { %3098 = vmatprep.subr.bf16.mxu0 %v3990_v0  ;;  %v1166_v36 = vpack.c.bf16 %v1159_v34, %v1159_v34 }
 0x2e5   : > { %3083 = vmatmul.mubr.msk.bf16.vlgmr.msra.gmra.mrb[4].mxu1 %vm1182_vm2, %v1165_v33 }
 0x2e6   : > { %3093 = vmatpush3.bf16.xpose.msra.mxu1 %v1325_v35  ;;  %3094 = vmatprep.mubr.msk.bf16.mxu1 %vm3991_vm0, %v3990_v0 }
 0x2e7   : > { %3104 = vmatprep.subr.bf16.mxu1 %v3990_v0 }
 0x2e9   : > { %3089 = vmatmul.mubr.msk.bf16.vlgmr.msra.gmra.mrb[8].mxu0 %vm1182_vm2, %v1166_v36 }
 0x2ea   : > { %3100 = vmatprep.mubr.msk.bf16.mxu0 %vm3991_vm0, %v3990_v0 }
 0x2ed   : > { %3095 = vmatmul.mubr.msk.bf16.vlgmr.msra.gmra.mrb[8].mxu1 %vm1182_vm2, %v1167_v38 }
 0x2ee   : > { %3106 = vmatprep.mubr.msk.bf16.mxu1 %vm3991_vm0, %v3990_v0 }
 0x345   : > { %v1223_v40 = vpop.f32.mrb[4].mxu0 }
 0x346   : > { %v1224_v41 = vadd.f32 %v1223_v40, %v1018_v39  ;;  %v3078_v42 = vpop.f32.mrb[5].mxu0 }
 0x347   : > { %v1226_v43 = vpop.f32.mrb[6].mxu0 }
 0x348   : > { %v3079_v44 = vpop.f32.mrb[7].mxu0  ;;  %v1367_v45 = vsel %vm1182_vm2, %v1224_v41, -inf }
 0x349   : > { %1368 = vmax.xlane.f32.xlu0 %v1367_v45 }
 0x3b8   : > { %v1269_v46 = vpop.f32.mrb[4].mxu1 }
 0x3b9   : > { %v1270_v47 = vadd.f32 %v1269_v46, %v1018_v39  ;;  %v3084_v48 = vpop.f32.mrb[5].mxu1 }
 0x3ba   : > { %v1272_v49 = vpop.f32.mrb[6].mxu1 }
 0x3bb   : > { %v3085_v50 = vpop.f32.mrb[7].mxu1  ;;  %v1370_v51 = vsel %vm1182_vm2, %v1270_v47, -inf  ;;  %v3424_v49 = vld [vmem:[%s5032_s8] sm:$0xff]  }
 0x3bc   : > { %1371 = vmax.xlane.f32.xlu1 %v1370_v51  ;;  %v1315_v52 = vpop.f32.mrb[8].mxu0  ;;  %v3425_v50 = vld [vmem:[%s5032_s8 + $0x8] sm:$0xff]  }
 0x3bd   : > { %v1316_v53 = vadd.f32 %v1315_v52, %v1018_v39  ;;  %v3090_v54 = vpop.f32.mrb[9].mxu0 }
 0x3be   : > { %v1318_v55 = vpop.f32.mrb[10].mxu0 }
 0x3bf   : > { %v3091_v56 = vpop.f32.mrb[11].mxu0  ;;  %v1373_v57 = vsel %vm1182_vm2, %v1316_v53, -inf }
 0x3c0   : > { %v1361_v58 = vpop.f32.mrb[8].mxu1  ;;  %1374 = vmax.xlane.f32.xlu0 %v1373_v57 }
 0x3c1   : > { %v1362_v59 = vadd.f32 %v1361_v58, %v1018_v39  ;;  %v3096_v60 = vpop.f32.mrb[9].mxu1 }
 0x3c2   : > { %v1364_v61 = vpop.f32.mrb[10].mxu1 }
 0x3c3   : > { %v3097_v62 = vpop.f32.mrb[11].mxu1  ;;  %v1376_v63 = vsel %vm1182_vm2, %v1362_v59, -inf }
 0x3c4   : > { %1377 = vmax.xlane.f32.xlu0 %v1376_v63 }
 0x3cd   : > { %1416 = vrot.lane.b32.xlu1 %v4519_v21, %s3995_s24 }
 0x3d6   : > { %v1369_v1 = vpop.xlane.xlu0 %1368 }
 0x3d7   : > { %v1379_v2 = vsub.f32 %v1224_v41, %v1369_v1 }
 0x3d9   : > { %v1383_v3 = vmul.f32 1.442695, %v1379_v2 }
 0x3db   : > { %3438 = vpow2.f32 %v1383_v3 }
 0x3e5   : > { %v3439_v4 = vpop.eup %3438 }
 0x3e6   : > { %v1391_v5 = vsel %vm1182_vm2, %v3439_v4, 0.0 }
 0x3f1   : > { %1392 = vadd.xlane.f32.xlu1 %v1391_v5 }
 0x449   : > { %v1372_v6 = vpop.xlane.xlu1 %1371 }
 0x44a   : > { %v1380_v7 = vsub.f32 %v1270_v47, %v1372_v6 }
 0x44c   : > { %v1385_v8 = vmul.f32 1.442695, %v1380_v7  ;;  %v3426_v7 = vld [vmem:[%s4926_s13] sm:$0xff]  }
 0x44d   : > { %v1417_v9 = vpop.permute.xlu1 %1416  ;;  %v1375_v10 = vpop.xlane.xlu0 %1374 }
 0x44e   : > { %3440 = vpow2.f32 %v1385_v8  ;;  %v1423_v11 = vsel %vm1421_vm3, %v1417_v9, 0  ;;  %v1381_v12 = vsub.f32 %v1316_v53, %v1375_v10  ;;  %v3427_v9 = vld [vmem:[%s4926_s13 + $0x8] sm:$0xff]   ;;  %v1017_v10 = vld [vmem:[%s1013_s29] sm:$0xff]  ;;  %s2600_s29 = sshll.u32 %s4579_s23, 4  ;;  %s4786_s29 = int_to_ptr.vmem [resolvable:$true] %s2600_s29 }
 0x44f   : > { %3099 = vmatpush3.bf16.msra.mxu0 %v1423_v11  ;;  %v1768_v11 = vpack.c.bf16 %v1017_v10, %v1017_v10 }
 0x450   : > { %v1387_v13 = vmul.f32 1.442695, %v1381_v12  ;;  %3110 = vmatprep.subr.bf16.mxu0 %v3990_v0  ;;  %v3429_v12 = vld [vmem:[#allocation14 + $0x8] sm:$0xff]  }
 0x451   : > { %v1378_v14 = vpop.xlane.xlu0 %1377 }
 0x452   : > { %3442 = vpow2.f32 %v1387_v13  ;;  %v1382_v15 = vsub.f32 %v1362_v59, %v1378_v14  ;;  %v3428_v59 = vld [vmem:[#allocation14] sm:$0xff]   ;;  %v2952_v13 = vld [vmem:[#allocation13] ss:$0 sm:$0xff] }
 0x454   : > { %v1389_v16 = vmul.f32 1.442695, %v1382_v15 }
 0x456   : > { %3444 = vpow2.f32 %v1389_v16 }
 0x458   : > { %v3441_v17 = vpop.eup %3440 }
 0x459   : > { %v1394_v18 = vsel %vm1182_vm2, %v3441_v17, 0.0 }
 0x45a   : > { %1395 = vadd.xlane.f32.xlu0 %v1394_v18 }
 0x45c   : > { %v3443_v19 = vpop.eup %3442 }
 0x45d   : > { %v1397_v20 = vsel %vm1182_vm2, %v3443_v19, 0.0 }
 0x45e   : > { %1398 = vadd.xlane.f32.xlu1 %v1397_v20  ;;  %v2960_v20 = vld [vmem:[#allocation17] ss:$0 sm:$0xff] }
 0x460   : > { %v3445_v21 = vpop.eup %3444 }
 0x461   : > { %v1400_v22 = vsel %vm1182_vm2, %v3445_v21, 0.0 }
 0x462   : > { %1401 = vadd.xlane.f32.xlu0 %v1400_v22 }
 0x46f   : > { %1515 = vrot.lane.b32.xlu1 %v4535_v30, %s3995_s24 }
 0x473   : > { %1564 = vrot.lane.b32.xlu1 %v4540_v32, %s3995_s24 }
 0x478   : > { %1466 = vrot.lane.b32.xlu0 %v4531_v26, %s3995_s24 }
 0x47e   : > { %v1393_v23 = vpop.xlane.xlu1 %1392 }
 0x47f   : > { %3446 = vrcp.f32 %v1393_v23 }
 0x489   : > { %v3447_v24 = vpop.eup %3446 }
 0x48a   : > { %v1407_v25 = vmul.f32 %v3447_v24, %v3439_v4 }
 0x48c   : > { %1696 = vst.msk [vmem:[%s4579_s23] sm:$0xff] %vm1182_vm2, %v1407_v25  ;;  %v1411_v27 = vpack.c.bf16 %v1407_v25, %v1407_v25 }
 0x48e   : > { %3101 = vmatmul.mubr.msk.bf16.vlgmr.msra.gmra.mrb[12].mxu0 %vm1182_vm2, %v1411_v27 }
 0x48f   : > { %3112 = vmatprep.mubr.msk.bf16.mxu0 %vm3991_vm0, %v3990_v0 }
 0x4e7   : > { %v1396_v26 = vpop.xlane.xlu0 %1395 }
 0x4e8   : > { %3448 = vrcp.f32 %v1396_v26 }
 0x4eb   : > { %v1399_v28 = vpop.xlane.xlu1 %1398 }
 0x4ec   : > { %3450 = vrcp.f32 %v1399_v28 }
 0x4ef   : > { %v1516_v29 = vpop.permute.xlu1 %1515  ;;  %v1402_v30 = vpop.xlane.xlu0 %1401 }
 0x4f0   : > { %v1521_v31 = vsel %vm1421_vm3, %v1516_v29, 0  ;;  %3452 = vrcp.f32 %v1402_v30 }
 0x4f1   : > { %3111 = vmatpush3.bf16.msra.mxu0 %v1521_v31  ;;  %v2956_v31 = vld [vmem:[#allocation16] ss:$0 sm:$0xff] }
 0x4f2   : > { %v3449_v32 = vpop.eup %3448  ;;  %3122 = vmatprep.subr.bf16.mxu0 %v3990_v0 }
 0x4f3   : > { %v1408_v33 = vmul.f32 %v3449_v32, %v3441_v17  ;;  %v1467_v34 = vpop.permute.xlu0 %1466  ;;  %v1565_v36 = vpop.permute.xlu1 %1564 }
 0x4f4   : > { %v1472_v35 = vsel %vm1421_vm3, %v1467_v34, 0  ;;  %v1570_v40 = vsel %vm1421_vm3, %v1565_v36, 0 }
 0x4f5   : > { %1697 = vst.msk [vmem:[%s4579_s23 + $0x8] sm:$0xff] %vm1182_vm2, %v1408_v33  ;;  %3105 = vmatpush3.bf16.msra.mxu1 %v1472_v35  ;;  %v1412_v37 = vpack.c.bf16 %v1408_v33, %v1408_v33 }
 0x4f6   : > { %v3451_v38 = vpop.eup %3450  ;;  %3116 = vmatprep.subr.bf16.mxu1 %v3990_v0 }
 0x4f7   : > { %v1409_v39 = vmul.f32 %v3451_v38, %v3443_v19 }
 0x4f8   : > { %3107 = vmatmul.mubr.msk.bf16.vlgmr.msra.gmra.mrb[12].mxu1 %vm1182_vm2, %v1412_v37 }
 0x4f9   : > { %1698 = vst.msk [vmem:[%s4579_s23 + $0x10] sm:$0xff] %vm1182_vm2, %v1409_v39  ;;  %3117 = vmatpush3.bf16.msra.mxu1 %v1570_v40  ;;  %v1413_v41 = vpack.c.bf16 %v1409_v39, %v1409_v39  ;;  %3118 = vmatprep.mubr.msk.bf16.mxu1 %vm3991_vm0, %v3990_v0 }
 0x4fa   : > { %v3453_v42 = vpop.eup %3452  ;;  %3130 = vmatprep.subr.bf16.mxu1 %v3990_v0 }
 0x4fb   : > { %v1410_v43 = vmul.f32 %v3453_v42, %v3445_v21  ;;  %3113 = vmatmul.mubr.msk.bf16.vlgmr.msra.gmra.mrb[16].mxu0 %vm1182_vm2, %v1413_v41 }
 0x4fc   : > { %3126 = vmatprep.mubr.msk.bf16.mxu0 %vm3991_vm0, %v3990_v0  ;;  %3123 = vmatpush3.bf16.msra.mxu0 %v3424_v49 }
 0x4fd   : > { %1699 = vst.msk [vmem:[%s4579_s23 + $0x18] sm:$0xff] %vm1182_vm2, %v1410_v43  ;;  %v1414_v44 = vpack.c.bf16 %v1410_v43, %v1410_v43  ;;  %3124 = vmatprep.subr.bf16.mxu0 %v3990_v0 }
 0x500   : > { %3119 = vmatmul.mubr.msk.bf16.vlgmr.msra.gmra.mrb[16].mxu1 %vm1182_vm2, %v1414_v44  ;;  %3125 = vmatpush3.bf16.msra.mxu0 %v3425_v50  ;;  %v1700_v50 = vld [vmem:[#allocation5] sm:$0xff] }
 0x501   : > { %3134 = vmatprep.mubr.msk.bf16.mxu1 %vm3991_vm0, %v3990_v0  ;;  %3138 = vmatprep.subr.bf16.mxu0 %v3990_v0 }
 0x502   : > { %3131 = vmatpush3.bf16.msra.mxu1 %v3428_v59 }
 0x503   : > { %3132 = vmatprep.subr.bf16.mxu1 %v3990_v0 }
 0x506   : > { %3133 = vmatpush3.bf16.msra.mxu1 %v3429_v12 }
 0x507   : > { %3146 = vmatprep.subr.bf16.mxu1 %v3990_v0 }
 0x561   : > { %v1459_v45 = vpop.f32.mrb[12].mxu0 }
 0x562   : > { %v3102_v46 = vpop.f32.mrb[13].mxu0 }
 0x563   : > { %v1462_v47 = vpop.f32.mrb[14].mxu0 }
 0x564   : > { %v3103_v48 = vpop.f32.mrb[15].mxu0 }
 0x5cb   : > { %v1508_v51 = vpop.f32.mrb[12].mxu1 }
 0x5cc   : > { %1613 = vrot.lane.b32.xlu0 %v1508_v51, %s3996_s5  ;;  %v3108_v52 = vpop.f32.mrb[13].mxu1 }
 0x5cd   : > { %v1511_v53 = vpop.f32.mrb[14].mxu1 }
 0x5ce   : > { %v3109_v54 = vpop.f32.mrb[15].mxu1  ;;  %v1557_v55 = vpop.f32.mrb[16].mxu0 }
 0x5cf   : > { %1617 = vrot.lane.b32.xlu1 %v1557_v55, %s4972_s22  ;;  %v3114_v56 = vpop.f32.mrb[17].mxu0  ;;  %s5036_s22 = sld [smem:[#allocation40_spill]] }
 0x5d0   : > { %v1560_v57 = vpop.f32.mrb[18].mxu0 }
 0x5d1   : > { %v3115_v58 = vpop.f32.mrb[19].mxu0 }
 0x5d3   : > { %v1606_v60 = vpop.f32.mrb[16].mxu1 }
 0x5d4   : > { %1621 = vrot.lane.b32.xlu0 %v1606_v60, %s4971_s3  ;;  %v3120_v61 = vpop.f32.mrb[17].mxu1  ;;  %s2566_s3 = sand.u32 1, %s4164_s26   ;;  %s3999_s26 = smov [#allocation23]  }
 0x5d5   : > { %v1609_v62 = vpop.f32.mrb[18].mxu1  ;;  %p5039_p8 = scmp.ne.s32.totalorder %s5036_s22, 0 }
 0x5d6   : > { %v3121_v63 = vpop.f32.mrb[19].mxu1 }
 0x63e   : > { %v1614_v1 = vpop.permute.xlu0 %1613 }
 0x63f   : > { %v1624_v3 = vsel %vm1182_vm2, %v1459_v45, %v1614_v1 }
 0x641   : > { %v1618_v2 = vpop.permute.xlu1 %1617 }
 0x642   : > { %v1626_v4 = vsel %vm1625_vm4, %v1624_v3, %v1618_v2 }
 0x646   : > { %v1622_v5 = vpop.permute.xlu0 %1621 }
 0x647   : > { %v1628_v6 = vsel %vm1627_vm5, %v1626_v4, %v1622_v5 }
 0x648   : > { %v1629_v8 = vpack.c.bf16 %v1628_v6, %v1628_v6 }
 0x64a   : > { %3127 = vmatmul.mubr.msk.bf16.vlgmr.msra.gmra.mrb[20].mxu0 %vm1043_vm1, %v1629_v8 }
 0x64b   : > { %3139 = vmatpush3.bf16.msra.mxu0 %v3426_v7  ;;  %3142 = vmatprep.mubr.msk.bf16.mxu0 %vm3991_vm0, %v3990_v0 }
 0x64c   : > { %3140 = vmatprep.subr.bf16.mxu0 %v3990_v0 }
 0x64f   : > { %3141 = vmatpush3.bf16.msra.mxu0 %v3427_v9 }
 0x650   : > { %3152 = vmatprep.subr.bf16.mxu0 %v3990_v0 }
 0x652   : > { %3143 = vmatmul.mubr.msk.bf16.vlgmr.msra.gmra.mrb[24].mxu0 %vm1043_vm1, %v1768_v11 }
 0x653   : > { %3154 = vmatprep.mubr.msk.bf16.mxu0 %vm3991_vm0, %v3990_v0 }
 0x71d   : > { %v1690_v14 = vpop.f32.mrb[20].mxu0 }
 0x71e   : > { %v1691_v15 = vadd.f32 %v2952_v13, %v1690_v14  ;;  %v3128_v16 = vpop.f32.mrb[21].mxu0 }
 0x71f   : > { %v1693_v17 = vpop.f32.mrb[22].mxu0 }
 0x720   : > { %v1701_v18 = vpack.c.bf16 %v1691_v15, %v1691_v15  ;;  %v3129_v19 = vpop.f32.mrb[23].mxu0 }
 0x722   : > { %3135 = vmatmul.mubr.msk.bf16.vlgmr.msra.gmra.mrb[20].mxu1 %vm1043_vm1, %v1701_v18 }
 0x723   : > { %3148 = vmatprep.mubr.msk.bf16.mxu1 %vm3991_vm0, %v3990_v0 }
 0x725   : > { %v1829_v21 = vpop.f32.mrb[24].mxu0 }
 0x726   : > { %v1830_v22 = vadd.f32 %v2960_v20, %v1829_v21  ;;  %v3144_v23 = vpop.f32.mrb[25].mxu0 }
 0x727   : > { %v1832_v24 = vpop.f32.mrb[26].mxu0 }
 0x728   : > { %1850 = vrot.lane.b32.xlu1 %v1830_v22, %s3992_s25  ;;  %1853 = vrot.lane.b32.xlu0 %v1830_v22, %s3994_s28  ;;  %v3145_v25 = vpop.f32.mrb[27].mxu0  ;;  %v4646_v27 = vpack.c.bf16 %v1830_v22, %v1830_v22 }
 0x72a   : > { %v1867_v26 = vsel %vm1182_vm2, %v4646_v27, 0 }
 0x72b   : > { %3147 = vmatpush3.bf16.xpose.msra.mxu1 %v1867_v26 }
 0x72c   : > { %1856 = vrot.lane.b32.xlu0 %v1830_v22, %s3993_s1  ;;  %3158 = vmatprep.subr.bf16.mxu1 %v3990_v0 }
 0x79a   : > { %v1851_v28 = vpop.permute.xlu1 %1850  ;;  %v1854_v32 = vpop.permute.xlu0 %1853 }
 0x79b   : > { %v4652_v29 = vpack.c.bf16 %v1851_v28, %v1851_v28  ;;  %v4657_v33 = vpack.c.bf16 %v1854_v32, %v1854_v32 }
 0x79d   : > { %v1913_v30 = vsel %vm1182_vm2, %v4652_v29, 0  ;;  %v1959_v40 = vsel %vm1182_vm2, %v4657_v33, 0 }
 0x79e   : > { %3153 = vmatpush3.bf16.xpose.msra.mxu0 %v1913_v30  ;;  %v1857_v41 = vpop.permute.xlu0 %1856 }
 0x79f   : > { %3164 = vmatprep.subr.bf16.mxu0 %v3990_v0  ;;  %v4668_v42 = vpack.c.bf16 %v1857_v41, %v1857_v41 }
 0x7a1   : > { %v2005_v45 = vsel %vm1182_vm2, %v4668_v42, 0 }
 0x7f5   : > { %v1762_v34 = vpop.f32.mrb[20].mxu1 }
 0x7f6   : > { %v1763_v35 = vadd.f32 %v2956_v31, %v1762_v34  ;;  %v3136_v36 = vpop.f32.mrb[21].mxu1 }
 0x7f7   : > { %v1765_v37 = vpop.f32.mrb[22].mxu1 }
 0x7f8   : > { %v1845_v38 = vpack.c.bf16 %v1763_v35, %v1763_v35  ;;  %v3137_v39 = vpop.f32.mrb[23].mxu1  ;;  %1842 = vrot.lane.b32.xlu0 %v1763_v35, %s3993_s1  ;;  %1836 = vrot.lane.b32.xlu1 %v1763_v35, %s3992_s25  ;;  %s5038_s25 = smov %s5037_s7  ;;  %s4788_s1 = scalar_lea.sflag [#allocation24], %s2566_s3 }
 0x7fa   : > { %3149 = vmatmul.mubr.msk.bf16.vlgmr.msra.gmra.mrb[24].mxu1 %vm1182_vm2, %v1845_v38 }
 0x7fb   : > { %3159 = vmatpush3.bf16.xpose.msra.mxu1 %v1959_v40  ;;  %3160 = vmatprep.mubr.msk.bf16.mxu1 %vm3991_vm0, %v3990_v0 }
 0x7fc   : > { %1839 = vrot.lane.b32.xlu1 %v1763_v35, %s3994_s28  ;;  %3170 = vmatprep.subr.bf16.mxu1 %v3990_v0  ;;  %s5034_s28 = smov 16  }
 0x86a   : > { %v1837_v43 = vpop.permute.xlu1 %1836  ;;  %v1843_v48 = vpop.permute.xlu0 %1842 }
 0x86b   : > { %v1846_v44 = vpack.c.bf16 %v1837_v43, %v1837_v43  ;;  %v1848_v49 = vpack.c.bf16 %v1843_v48, %v1843_v48 }
 0x86d   : > { %3155 = vmatmul.mubr.msk.bf16.vlgmr.msra.gmra.mrb[28].mxu0 %vm1182_vm2, %v1846_v44 }
 0x86e   : > { %3165 = vmatpush3.bf16.xpose.msra.mxu0 %v2005_v45  ;;  %v1840_v46 = vpop.permute.xlu1 %1839  ;;  %3166 = vmatprep.mubr.msk.bf16.mxu0 %vm3991_vm0, %v3990_v0 }
 0x86f   : > { %v1847_v47 = vpack.c.bf16 %v1840_v46, %v1840_v46  ;;  %3176 = vmatprep.subr.bf16.mxu0 %v3990_v0 }
 0x871   : > { %3161 = vmatmul.mubr.msk.bf16.vlgmr.msra.gmra.mrb[28].mxu1 %vm1182_vm2, %v1847_v47 }
 0x872   : > { %3172 = vmatprep.mubr.msk.bf16.mxu1 %vm3991_vm0, %v3990_v0 }
 0x875   : > { %3167 = vmatmul.mubr.msk.bf16.vlgmr.msra.gmra.mrb[32].mxu0 %vm1182_vm2, %v1848_v49 }
 0x876   : > { %3178 = vmatprep.mubr.msk.bf16.mxu0 %vm3991_vm0, %v3990_v0 }
 0x8cd   : > { %v1903_v51 = vpop.f32.mrb[24].mxu1 }
 0x8ce   : > { %v1904_v52 = vadd.f32 %v1903_v51, %v1700_v50  ;;  %v3150_v53 = vpop.f32.mrb[25].mxu1 }
 0x8cf   : > { %v1906_v54 = vpop.f32.mrb[26].mxu1 }
 0x8d0   : > { %v3151_v55 = vpop.f32.mrb[27].mxu1  ;;  %v2047_v56 = vsel %vm1182_vm2, %v1904_v52, -inf }
 0x8d1   : > { %2048 = vmax.xlane.f32.xlu1 %v2047_v56 }
 0x940   : > { %v1949_v57 = vpop.f32.mrb[28].mxu0 }
 0x941   : > { %v1950_v58 = vadd.f32 %v1949_v57, %v1700_v50  ;;  %v3156_v59 = vpop.f32.mrb[29].mxu0 }
 0x942   : > { %v1952_v60 = vpop.f32.mrb[30].mxu0 }
 0x943   : > { %v3157_v61 = vpop.f32.mrb[31].mxu0  ;;  %v2050_v62 = vsel %vm1182_vm2, %v1950_v58, -inf  ;;  %v3430_v60 = vld [vmem:[#allocation19] sm:$0xff]  }
 0x944   : > { %v1995_v63 = vpop.f32.mrb[28].mxu1  ;;  %2051 = vmax.xlane.f32.xlu0 %v2050_v62  ;;  %v3431_v61 = vld [vmem:[#allocation19 + $0x8] sm:$0xff]   ;;  %v3432_v62 = vld [vmem:[%s4930_s17] sm:$0xff]  }
 0x945   : > { %v1996_v1 = vadd.f32 %v1995_v63, %v1700_v50  ;;  %v3162_v2 = vpop.f32.mrb[29].mxu1 }
 0x946   : > { %v1998_v3 = vpop.f32.mrb[30].mxu1 }
 0x947   : > { %v3163_v4 = vpop.f32.mrb[31].mxu1  ;;  %v2053_v5 = vsel %vm1182_vm2, %v1996_v1, -inf }
 0x948   : > { %2054 = vmax.xlane.f32.xlu0 %v2053_v5  ;;  %v2041_v6 = vpop.f32.mrb[32].mxu0 }
 0x949   : > { %v2042_v7 = vadd.f32 %v2041_v6, %v1700_v50  ;;  %v3168_v8 = vpop.f32.mrb[33].mxu0 }
 0x94a   : > { %v2044_v9 = vpop.f32.mrb[34].mxu0 }
 0x94b   : > { %v3169_v10 = vpop.f32.mrb[35].mxu0  ;;  %v2056_v11 = vsel %vm1182_vm2, %v2042_v7, -inf }
 0x94c   : > { %2057 = vmax.xlane.f32.xlu1 %v2056_v11 }
 0x95d   : > { %2145 = vrot.lane.b32.xlu1 %v4652_v29, %s3995_s24 }
 0x95e   : > { %2096 = vrot.lane.b32.xlu0 %v4646_v27, %s3995_s24  ;;  %v2049_v12 = vpop.xlane.xlu1 %2048 }
 0x95f   : > { %v2059_v13 = vsub.f32 %v1904_v52, %v2049_v12 }
 0x961   : > { %v2063_v14 = vmul.f32 1.442695, %v2059_v13 }
 0x963   : > { %3454 = vpow2.f32 %v2063_v14 }
 0x96d   : > { %v3455_v15 = vpop.eup %3454 }
 0x96e   : > { %v2071_v16 = vsel %vm1182_vm2, %v3455_v15, 0.0 }
 0x97d   : > { %2072 = vadd.xlane.f32.xlu0 %v2071_v16 }
 0x9d1   : > { %v2052_v17 = vpop.xlane.xlu0 %2051 }
 0x9d2   : > { %v2060_v18 = vsub.f32 %v1950_v58, %v2052_v17 }
 0x9d4   : > { %v2065_v19 = vmul.f32 1.442695, %v2060_v18 }
 0x9d5   : > { %v2055_v20 = vpop.xlane.xlu0 %2054 }
 0x9d6   : > { %3456 = vpow2.f32 %v2065_v19  ;;  %v2061_v21 = vsub.f32 %v1996_v1, %v2055_v20  ;;  %v3433_v19 = vld [vmem:[%s4930_s17 + $0x8] sm:$0xff]   ;;  %v3434_v20 = vld [vmem:[%s4932_s19] sm:$0xff]  }
 0x9d8   : > { %v2067_v22 = vmul.f32 1.442695, %v2061_v21  ;;  %v3435_v21 = vld [vmem:[%s4932_s19 + $0x8] sm:$0xff]  }
 0x9d9   : > { %v2097_v23 = vpop.permute.xlu0 %2096  ;;  %v2058_v24 = vpop.xlane.xlu1 %2057 }
 0x9da   : > { %3458 = vpow2.f32 %v2067_v22  ;;  %v2102_v25 = vsel %vm1421_vm3, %v2097_v23, 0  ;;  %v2062_v27 = vsub.f32 %v2042_v7, %v2058_v24  ;;  %v2972_v22 = vld [vmem:[#allocation20] ss:$0 sm:$0xff] }
 0x9db   : > { %3171 = vmatpush3.bf16.msra.mxu1 %v2102_v25 }
 0x9dc   : > { %v2069_v26 = vmul.f32 1.442695, %v2062_v27  ;;  %3182 = vmatprep.subr.bf16.mxu1 %v3990_v0 }
 0x9dd   : > { %v2146_v28 = vpop.permute.xlu1 %2145 }
 0x9de   : > { %3460 = vpow2.f32 %v2069_v26  ;;  %v2151_v29 = vsel %vm1421_vm3, %v2146_v28, 0 }
 0x9df   : > { %3177 = vmatpush3.bf16.msra.mxu0 %v2151_v29  ;;  %v3436_v29 = vld [vmem:[%s4932_s19 + $0x10] sm:$0xff]  }
 0x9e0   : > { %v3457_v30 = vpop.eup %3456  ;;  %3188 = vmatprep.subr.bf16.mxu0 %v3990_v0 }
 0x9e1   : > { %v2074_v31 = vsel %vm1182_vm2, %v3457_v30, 0.0 }
 0x9e2   : > { %2075 = vadd.xlane.f32.xlu1 %v2074_v31  ;;  %v2976_v31 = vld [vmem:[%s4931_s18] ss:$0 sm:$0xff] }
 0x9e4   : > { %v3459_v32 = vpop.eup %3458 }
 0x9e5   : > { %v2077_v34 = vsel %vm1182_vm2, %v3459_v32, 0.0 }
 0x9e6   : > { %2078 = vadd.xlane.f32.xlu0 %v2077_v34 }
 0x9e8   : > { %v3461_v35 = vpop.eup %3460 }
 0x9e9   : > { %v2080_v36 = vsel %vm1182_vm2, %v3461_v35, 0.0 }
 0x9ea   : > { %2081 = vadd.xlane.f32.xlu1 %v2080_v36 }
 0x9fb   : > { %2194 = vrot.lane.b32.xlu1 %v4657_v33, %s3995_s24 }
 0x9fc   : > { %2243 = vrot.lane.b32.xlu0 %v4668_v42, %s3995_s24  ;;  %s5035_s24 = smov 24  }
 0xa0a   : > { %v2073_v37 = vpop.xlane.xlu0 %2072 }
 0xa0b   : > { %3462 = vrcp.f32 %v2073_v37 }
 0xa15   : > { %v3463_v38 = vpop.eup %3462 }
 0xa16   : > { %v2087_v39 = vmul.f32 %v3463_v38, %v3455_v15 }
 0xa18   : > { %2373 = vst.msk [vmem:[%s4704_s0] sm:$0xff] %vm1182_vm2, %v2087_v39  ;;  %v2091_v40 = vpack.c.bf16 %v2087_v39, %v2087_v39 }
 0xa1a   : > { %3173 = vmatmul.mubr.msk.bf16.vlgmr.msra.gmra.mrb[32].mxu1 %vm1182_vm2, %v2091_v40 }
 0xa1b   : > { %3184 = vmatprep.mubr.msk.bf16.mxu1 %vm3991_vm0, %v3990_v0 }
 0xa6f   : > { %v2076_v33 = vpop.xlane.xlu1 %2075 }
 0xa70   : > { %3464 = vrcp.f32 %v2076_v33 }
 0xa73   : > { %v2079_v41 = vpop.xlane.xlu0 %2078 }
 0xa74   : > { %3466 = vrcp.f32 %v2079_v41 }
 0xa77   : > { %v2082_v42 = vpop.xlane.xlu1 %2081  ;;  %v2244_v46 = vpop.permute.xlu0 %2243 }
 0xa78   : > { %3468 = vrcp.f32 %v2082_v42  ;;  %v2249_v51 = vsel %vm1421_vm3, %v2244_v46, 0 }
 0xa7a   : > { %v3465_v43 = vpop.eup %3464 }
 0xa7b   : > { %v2088_v44 = vmul.f32 %v3465_v43, %v3457_v30  ;;  %v2195_v45 = vpop.permute.xlu1 %2194  ;;  %v3437_v30 = vld [vmem:[%s4932_s19 + $0x18] sm:$0xff]  }
 0xa7c   : > { %v2200_v47 = vsel %vm1421_vm3, %v2195_v45, 0 }
 0xa7d   : > { %2374 = vst.msk [vmem:[%s4704_s0 + $0x8] sm:$0xff] %vm1182_vm2, %v2088_v44  ;;  %3183 = vmatpush3.bf16.msra.mxu1 %v2200_v47  ;;  %v2092_v48 = vpack.c.bf16 %v2088_v44, %v2088_v44 }
 0xa7e   : > { %v3467_v49 = vpop.eup %3466  ;;  %3194 = vmatprep.subr.bf16.mxu1 %v3990_v0 }
 0xa7f   : > { %v2089_v50 = vmul.f32 %v3467_v49, %v3459_v32  ;;  %3179 = vmatmul.mubr.msk.bf16.vlgmr.msra.gmra.mrb[36].mxu0 %vm1182_vm2, %v2092_v48 }
 0xa80   : > { %3189 = vmatpush3.bf16.msra.mxu0 %v2249_v51  ;;  %3190 = vmatprep.mubr.msk.bf16.mxu0 %vm3991_vm0, %v3990_v0 }
 0xa81   : > { %2375 = vst.msk [vmem:[%s4704_s0 + $0x10] sm:$0xff] %vm1182_vm2, %v2089_v50  ;;  %v2093_v52 = vpack.c.bf16 %v2089_v50, %v2089_v50  ;;  %3202 = vmatprep.subr.bf16.mxu0 %v3990_v0 }
 0xa82   : > { %v3469_v53 = vpop.eup %3468 }
 0xa83   : > { %v2090_v54 = vmul.f32 %v3469_v53, %v3461_v35  ;;  %3185 = vmatmul.mubr.msk.bf16.vlgmr.msra.gmra.mrb[36].mxu1 %vm1182_vm2, %v2093_v52 }
 0xa84   : > { %3198 = vmatprep.mubr.msk.bf16.mxu1 %vm3991_vm0, %v3990_v0  ;;  %3195 = vmatpush3.bf16.msra.mxu1 %v3430_v60 }
 0xa85   : > { %2376 = vst.msk [vmem:[%s4704_s0 + $0x18] sm:$0xff] %vm1182_vm2, %v2090_v54  ;;  %v2094_v55 = vpack.c.bf16 %v2090_v54, %v2090_v54  ;;  %3196 = vmatprep.subr.bf16.mxu1 %v3990_v0 }
 0xa87   : > { %3191 = vmatmul.mubr.msk.bf16.vlgmr.msra.gmra.mrb[40].mxu0 %vm1182_vm2, %v2094_v55 }
 0xa88   : > { %3206 = vmatprep.mubr.msk.bf16.mxu0 %vm3991_vm0, %v3990_v0  ;;  %3197 = vmatpush3.bf16.msra.mxu1 %v3431_v61 }
 0xa89   : > { %3210 = vmatprep.subr.bf16.mxu1 %v3990_v0  ;;  %3203 = vmatpush3.bf16.msra.mxu0 %v3432_v62 }
 0xa8a   : > { %3204 = vmatprep.subr.bf16.mxu0 %v3990_v0 }
 0xa8d   : > { %3205 = vmatpush3.bf16.msra.mxu0 %v3433_v19 }
 0xaed   : > { %v2138_v56 = vpop.f32.mrb[32].mxu1 }
 0xaee   : > { %v3174_v57 = vpop.f32.mrb[33].mxu1 }
 0xaef   : > { %v2141_v58 = vpop.f32.mrb[34].mxu1 }
 0xaf0   : > { %v3175_v59 = vpop.f32.mrb[35].mxu1 }
 0xb52   : > { %v2187_v63 = vpop.f32.mrb[36].mxu0 }
 0xb53   : > { %2292 = vrot.lane.b32.xlu1 %v2187_v63, %s3996_s5  ;;  %v3180_v1 = vpop.f32.mrb[37].mxu0 }
 0xb54   : > { %v2190_v2 = vpop.f32.mrb[38].mxu0 }
 0xb55   : > { %v3181_v3 = vpop.f32.mrb[39].mxu0 }
 0xb56   : > { %v2236_v4 = vpop.f32.mrb[36].mxu1 }
 0xb57   : > { %2296 = vrot.lane.b32.xlu0 %v2236_v4, %s5034_s28  ;;  %v3186_v5 = vpop.f32.mrb[37].mxu1  ;;  %s3808_s28 = scalar_lea.vmem %s4786_s29, 512 }
 0xb58   : > { %v2239_v6 = vpop.f32.mrb[38].mxu1  ;;  %p3809_p1 = scmp.ne.s32.totalorder %s4786_s29, %s3808_s28 }
 0xb59   : > { %v3187_v7 = vpop.f32.mrb[39].mxu1 }
 0xb5a   : > { %v2285_v8 = vpop.f32.mrb[40].mxu0  ;;  %p3810_p4 = pnand %p3809_p1, %p5039_p8 }
 0xb5b   : > { %2300 = vrot.lane.b32.xlu1 %v2285_v8, %s5035_s24  ;;  %v3192_v9 = vpop.f32.mrb[41].mxu0  ;;  %s3812_s24 = sshll.u32 %s3999_s26, 4  ;;  %s3813_s24 = int_to_ptr.vmem [resolvable:$false] %s3812_s24 }
 0xb5c   : > { %v2288_v10 = vpop.f32.mrb[42].mxu0  ;;  %p3811_p10 = pneg %p3810_p4  ;;  %s3814_s14 = scalar_lea.vmem %s3813_s24, 1024 }
 0xb5d   : > { %v3193_v11 = vpop.f32.mrb[43].mxu0  ;;  %p3815_p13 = scmp.lt.s32.totalorder %s4786_s29, %s3813_s24  ;;  %p3816_p11 = scmp.lt.s32.totalorder %s3814_s14, %s3808_s28 }
 0xb5f   : > { %p3817_p3 = por %p3816_p11, %p3815_p13 }
 0xb61   : > { %p3818_p5 = pnand %p3817_p3, %p3811_p10 }
 0xbc5   : > { %v2293_v12 = vpop.permute.xlu1 %2292 }
 0xbc6   : > { %v2303_v14 = vsel %vm1182_vm2, %v2138_v56, %v2293_v12 }
 0xbc9   : > { %v2297_v13 = vpop.permute.xlu0 %2296 }
 0xbca   : > { %v2304_v15 = vsel %vm1625_vm4, %v2303_v14, %v2297_v13 }
 0xbcd   : > { %v2301_v16 = vpop.permute.xlu1 %2300 }
 0xbce   : > { %v2305_v17 = vsel %vm1627_vm5, %v2304_v15, %v2301_v16 }
 0xbcf   : > { %v2306_v18 = vpack.c.bf16 %v2305_v17, %v2305_v17 }
 0xbd1   : > { %3199 = vmatmul.mubr.msk.bf16.vlgmr.msra.gmra.mrb[40].mxu1 %vm1043_vm1, %v2306_v18 }
 0xbd2   : > { %3218 = vmatprep.mubr.msk.bf16.mxu1 %vm3991_vm0, %v3990_v0  ;;  %3211 = vmatpush3.bf16.msra.mxu1 %v3434_v20 }
 0xbd3   : > { %3212 = vmatprep.subr.bf16.mxu1 %v3990_v0 }
 0xbd6   : > { %3213 = vmatpush3.bf16.msra.mxu1 %v3435_v21 }
 0xbd7   : > { %3214 = vmatprep.subr.bf16.mxu1 %v3990_v0 }
 0xbda   : > { %3215 = vmatpush3.bf16.msra.mxu1 %v3436_v29 }
 0xbdb   : > { %3216 = vmatprep.subr.bf16.mxu1 %v3990_v0  ;;  %v2980_v0 = vld [vmem:[%s4933_s20] ss:$0 sm:$0xff] }
 0xbde   : > { %3217 = vmatpush3.bf16.msra.mxu1 %v3437_v30 }
 0xca4   : > { %v2367_v23 = vpop.f32.mrb[40].mxu1 }
 0xca5   : > { %v2368_v24 = vadd.f32 %v2972_v22, %v2367_v23  ;;  %v3200_v25 = vpop.f32.mrb[41].mxu1 }
 0xca6   : > { %v2370_v27 = vpop.f32.mrb[42].mxu1 }
 0xca7   : > { %v2377_v26 = vpack.c.bf16 %v2368_v24, %v2368_v24  ;;  %v3201_v28 = vpop.f32.mrb[43].mxu1 }
 0xca9   : > { %3207 = vmatmul.mubr.msk.bf16.vlgmr.msra.gmra.mrb[44].mxu0 %vm1043_vm1, %v2377_v26 }
 0xd7c   : > { %v2438_v32 = vpop.f32.mrb[44].mxu0 }
 0xd7d   : > { %v2439_v34 = vadd.f32 %v2976_v31, %v2438_v32  ;;  %v3208_v35 = vpop.f32.mrb[45].mxu0 }
 0xd7e   : > { %v2441_v36 = vpop.f32.mrb[46].mxu0 }
 0xd7f   : > { %v2444_v37 = vmax.f32 %v2439_v34, 0.0  ;;  %v3209_v38 = vpop.f32.mrb[47].mxu0 }
 0xd81   : > { %v2445_v39 = vpack.c.bf16 %v2444_v37, %v2444_v37 }
 0xd83   : > { %3219 = vmatmul.mubr.msk.bf16.vlgmr.msra.gmra.mrb[44].mxu1 %vm2485_vm6, %v2445_v39 }
 0xe56   : > { %v2523_v40 = vpop.f32.mrb[44].mxu1 }
 0xe57   : > { %v2524_v33 = vadd.f32 %v2980_v0, %v2523_v40  ;;  %v3220_v41 = vpop.f32.mrb[45].mxu1 }
 0xe58   : > { %v2526_v42 = vpop.f32.mrb[46].mxu1 }
 0xe59   : > { %v3221_v43 = vpop.f32.mrb[47].mxu1  ;;  %v2529_v44 = vadd.f32 %v2524_v33, %v2368_v24 }
 0xe5b   : > { %v2530_v45 = vsel %vm1043_vm1, %v2529_v44, 0.0 }
 0xe5c   : > { %2531 = vadd.xlane.f32.xlu0 %v2530_v45 }
 0xee9   : > { %v2532_v46 = vpop.xlane.xlu0 %2531 }
 0xeea   : > { %v2534_v47 = vmul.f32 0.03125, %v2532_v46 }
 0xeec   : > { %v4771_v48 = vsub.f32 %v2529_v44, %v2534_v47 }
 0xeee   : > { %v2536_v49 = vmul.f32 %v4771_v48, %v4771_v48 }
 0xef0   : > { %v2537_v50 = vsel %vm1043_vm1, %v2536_v49, 0.0 }
 0xef1   : > { %2538 = vadd.xlane.f32.xlu1 %v2537_v50 }
 0xef2   : > { %3821 = shalt.err (!%p3818_p5)
}
 0xef3   : > { %s3822_s23 = scalar_lea.hbm %s4783_s6, 512  ;;  %s3826_s27 = scalar_lea.hbm %s5038_s25, 1024 }
 0xef4   : > { %p3823_p6 = scmp.ne.s32.totalorder %s4783_s6, %s3822_s23  ;;  %p3827_p12 = scmp.lt.u32.totalorder %s4783_s6, %s5038_s25 }
 0xef5   : > { %p3828_p0 = scmp.lt.u32.totalorder %s3826_s27, %s3822_s23  ;;  %p3830_p1 = scmp.lt.u32.totalorder %s3822_s23, %s4783_s6 }
 0xef6   : > { %p3824_p7 = pnand %p3823_p6, %p5039_p8 }
 0xef7   : > { %p3829_p2 = por %p3828_p0, %p3827_p12 }
 0xef8   : > { %p3825_p9 = pneg %p3824_p7 }
 0xef9   : > { %p3831_p4 = por %p3830_p1, %p3829_p2 }
 0xefb   : > { %p3832_p10 = pnand %p3831_p4, %p3825_p9 }
 0xefd   : > { %3835 = shalt.err (!%p3832_p10)
}
 0xefe   : > { %s4000_s28 = smov 128   ;;  %s5040_s23 = sld [smem:[#allocation59_spill]] }
 0xeff   : > { %3271 = dma.vmem_to_hbm [thread:$0]  (%p5039_p8), %s4786_s29, 512, %s4783_s6, %s4788_s1, %s4000_s28, %s4000_s28, %s3996_s5  }
 0xf00   : > { %s2617_s4 = sshll.u32 %s4704_s0, 4  ;;  %s4001_s7 = smov [#allocation25]   ;;  %s4823_s4 = int_to_ptr.vmem [resolvable:$true] %s2617_s4 }
 0xf01   : > { %s3836_s27 = scalar_lea.vmem %s4823_s4, 512  ;;  %s3840_s26 = sshll.u32 %s4001_s7, 4  ;;  %s3841_s26 = int_to_ptr.vmem [resolvable:$false] %s3840_s26 }
 0xf02   : > { %p3837_p13 = scmp.ne.s32.totalorder %s4823_s4, %s3836_s27  ;;  %s3842_s6 = scalar_lea.vmem %s3841_s26, 1024 }
 0xf03   : > { %p3843_p5 = scmp.lt.s32.totalorder %s4823_s4, %s3841_s26  ;;  %p3844_p6 = scmp.lt.s32.totalorder %s3842_s6, %s3836_s27 }
 0xf04   : > { %s4820_s3 = scalar_lea.hbm %s5040_s23, %s2998_s9  ;;  %p3838_p11 = pnand %p3837_p13, %p5039_p8 }
 0xf05   : > { %p3845_p7 = por %p3844_p6, %p3843_p5 }
 0xf06   : > { %p3839_p3 = pneg %p3838_p11 }
 0xf08   : > { %p3846_p9 = pnand %p3845_p7, %p3839_p3 }
 0xf0a   : > { %3849 = shalt.err (!%p3846_p9)
}
 0xf0b   : > { %s3850_s0 = scalar_lea.hbm %s4820_s3, 512  ;;  %s3854_s24 = scalar_lea.hbm %s5040_s23, 1024 }
 0xf0c   : > { %p3851_p12 = scmp.ne.s32.totalorder %s4820_s3, %s3850_s0  ;;  %p3855_p1 = scmp.lt.u32.totalorder %s4820_s3, %s5040_s23 }
 0xf0d   : > { %p3856_p4 = scmp.lt.u32.totalorder %s3854_s24, %s3850_s0  ;;  %p3858_p13 = scmp.lt.u32.totalorder %s3850_s0, %s4820_s3 }
 0xf0e   : > { %p3852_p0 = pnand %p3851_p12, %p5039_p8 }
 0xf0f   : > { %p3857_p10 = por %p3856_p4, %p3855_p1 }
 0xf10   : > { %p3853_p2 = pneg %p3852_p0 }
 0xf11   : > { %p3859_p11 = por %p3858_p13, %p3857_p10 }
 0xf13   : > { %p3860_p3 = pnand %p3859_p11, %p3853_p2 }
 0xf15   : > { %3863 = shalt.err (!%p3860_p3)
}
 0xf16   : > { %3272 = dma.vmem_to_hbm [thread:$0]  (%p5039_p8), %s4823_s4, 512, %s4820_s3, %s4788_s1, %s4000_s28, %s4000_s28, %s3996_s5  }
 0xf17   : > { %s2930_s27 = sshll.u32 %s4574_s11, 3  ;;  %s5041_s0 = sld [smem:[#allocation55_spill]] }
 0xf18   : > { %s5042_s24 = sld [smem:[#allocation56_spill]]  ;;  %s2991_s14 = sshll.u32 %s3966_s30, 7 }
 0xf19   : > { %s984_s5 = scalar_lea.vmem [#allocation22], %s2930_s27  ;;  %s5043_s4 = sld [smem:[#allocation57_spill]] }
 0xf1a   : > { %s2586_s1 = sshll.u32 %s984_s5, 4  ;;  %s2562_s26 = scalar_lea.sflag [#allocation4], %s4574_s11  ;;  %s4864_s1 = int_to_ptr.vmem [resolvable:$true] %s2586_s1 }
 0xf1b   : > { %s3864_s6 = scalar_lea.vmem %s4864_s1, 128  ;;  %s4002_s30 = smov [#allocation22]  }
 0xf1c   : > { %p3865_p5 = scmp.ne.s32.totalorder %s4864_s1, %s3864_s6  ;;  %s3868_s27 = sshll.u32 %s4002_s30, 4  ;;  %s3869_s27 = int_to_ptr.vmem [resolvable:$false] %s3868_s27 }
 0xf1d   : > { %v2986_v55 = vld [vmem:[%s5041_s0] ss:$0 sm:$0xff]  ;;  %s3870_s0 = scalar_lea.vmem %s3869_s27, 256  ;;  %p3871_p9 = scmp.lt.s32.totalorder %s4864_s1, %s3869_s27 }
 0xf1e   : > { %v2987_v57 = vld [vmem:[%s5042_s24] ss:$0 sm:$0xff]  ;;  %p3866_p6 = pnand %p3865_p5, %p5039_p8  ;;  %p3872_p12 = scmp.lt.s32.totalorder %s3870_s0, %s3864_s6 }
 0xf1f   : > { %s4862_s7 = scalar_lea.hbm %s5043_s4, %s2991_s14 }
 0xf20   : > { %p3867_p7 = pneg %p3866_p6  ;;  %p3873_p0 = por %p3872_p12, %p3871_p9 }
 0xf22   : > { %p3874_p2 = pnand %p3873_p0, %p3867_p7 }
 0xf7e   : > { %v2539_v51 = vpop.xlane.xlu1 %2538 }
 0xf7f   : > { %v2540_v52 = vmul.f32 0.03125, %v2539_v51 }
 0xf81   : > { %v2541_v53 = vadd.f32 1e-06, %v2540_v52 }
 0xf83   : > { %3470 = vrsqrt.f32 %v2541_v53 }
 0xf8d   : > { %v3471_v54 = vpop.eup %3470 }
 0xf8e   : > { %v2543_v56 = vmul.f32 %v3471_v54, %v4771_v48 }
 0xf90   : > { %v2551_v58 = vmul.f32 %v2986_v55, %v2543_v56 }
 0xf92   : > { %v2559_v59 = vadd.f32 %v2987_v57, %v2551_v58 }
 0xf94   : > { %2560 = vst.msk [vmem:[%s984_s5] sm:$0xff] %vm1043_vm1, %v2559_v59 }
 0xf95   : > { %3877 = shalt.err (!%p3874_p2)
}
 0xf96   : > { %s3878_s11 = scalar_lea.hbm %s4862_s7, 128  ;;  %s3882_s24 = scalar_lea.hbm %s5043_s4, 256 }
 0xf97   : > { %p3879_p1 = scmp.ne.s32.totalorder %s4862_s7, %s3878_s11  ;;  %p3883_p13 = scmp.lt.u32.totalorder %s4862_s7, %s5043_s4 }
 0xf98   : > { %p3884_p11 = scmp.lt.u32.totalorder %s3882_s24, %s3878_s11  ;;  %p3886_p5 = scmp.lt.u32.totalorder %s3878_s11, %s4862_s7 }
 0xf99   : > { %p3880_p4 = pnand %p3879_p1, %p5039_p8 }
 0xf9a   : > { %p3885_p3 = por %p3884_p11, %p3883_p13 }
 0xf9b   : > { %p3881_p10 = pneg %p3880_p4 }
 0xf9c   : > { %p3887_p6 = por %p3886_p5, %p3885_p3 }
 0xf9e   : > { %p3888_p7 = pnand %p3887_p6, %p3881_p10 }
 0xfa0   : > { %3891 = shalt.err (!%p3888_p7)
}
 0xfa1   : > { %3270 = dma.vmem_to_hbm [thread:$0]  (%p5039_p8), %s4864_s1, 128, %s4862_s7, %s2562_s26  }
 0xfa2 PF: > { %s5044_s28 = sld [smem:[#allocation38_spill]]  ;;  %s5045_s3 = sld [smem:[#allocation35_spill]] }
 0xfa3   : > { %s5046_s6 = sld [smem:[#allocation41_spill]] }
 0xfa8   : > { %p3347_p9 = scmp.ge.s32.totalorder %s5044_s28, 2  ;;  %s2632_s30 = sand.u32 1, %s5045_s3  }
 0xfa9   : > { %p5047_p12 = scmp.ne.s32.totalorder %s5046_s6, 0  ;;  %s2633_s27 = scalar_lea.sflag [#allocation4], %s2632_s30 }
 0xfab   : > { %p3314_p0 = pnand %p3347_p9, %p5047_p12 }
 0xfad   : > { %3945 = dma.done.wait (!%p3314_p0), %s2633_s27, 128  }
 0xfae   : > { %3947 = vsyncadd (!%p3314_p0), %s2633_s27, 4294967168  ;;  %s5048_s0 = sadd.s32 4294967294, %s5044_s28  }
 0xfaf   : > { %s2641_s11 = sand.u32 1, %s5048_s0  }
 0xfb0   : > { %s2642_s9 = scalar_lea.sflag [#allocation24], %s2641_s11 }
 0xfb1   : > { %3949 = dma.done.wait (!%p3314_p0), %s2642_s9, 1024  }
 0xfb2   : > { %3951 = vsyncadd (!%p3314_p0), %s2642_s9, 4294966272  ;;  %s49_s3 = sadd.s32 1, %s5044_s28   ;;  %s5049_s22 = sld [smem:[#allocation36_spill]] }
 0xfb3   : > { %p46_p8 = scmp.ge.s32.totalorder %s49_s3, 4   ;;  %s5050_s6 = sld [smem:[#allocation42_spill]] }
 0xfb4   : > { %s5051_s30 = sld [smem:[#allocation37_spill]]  ;;  %s5052_s7 = sld [smem:[#allocation39_spill]] }
 0xfb5   : > { %s5053_s29 = smov %s3958_s2  ;;  %48 = sbr.rel (!%p46_p8) target bundleno = 31 (0x1f), region = 236 }
 0xfb8   : > { %s5054_s2 = smov %s5049_s22 }
 0xfbc   :  { %2656 = vsyncpa [#allocation3], 1 }
 0xfbd   :  { %2658 = vsyncpa [#allocation3 + $0x1], 1 }
 0xfbe   :  { %2659 = vsyncpa [#allocation6], 1 }
 0xfbf   :  { %2660 = vsyncpa [#allocation9], 1 }
 0xfc0   :  { %2661 = vsyncpa [#allocation12], 1 }
 0xfc1   :  { %2662 = vsyncpa [#allocation15], 1 }
 0xfc2   :  { %2663 = vsyncpa [#allocation18], 1 }
 0xfc3   :  { %2664 = vsyncpa [#allocation21], 1 }
 0xfc4   :  { %2665 = vsyncpa [#allocation4], 1 }
 0xfc5   :  { %2667 = vsyncpa [#allocation4 + $0x1], 1 }
 0xfc6   :  { %2668 = vsyncpa [#allocation24], 1 }
 0xfc7   :  { %2670 = vsyncpa [#allocation24 + $0x1], 1 }

</bundles_post_ra>
